<compile_context>
chip_gen: v6e
topology: v6e:2x2x1
jax: 0.10.0
libtpu: 0.0.40
codegen_flags: <defaults>
</compile_context>

<pallas_src>
import functools

import jax
import jax.numpy as jnp
from jax.experimental import pallas as pl
from jax.experimental.pallas import tpu as pltpu

_VMEM_LIMIT = 32 * 1024 * 1024


# ---------------------------------------------------------------------------
# Kernel 1: fused per-batch decoder core
#   seq1 (pool+conv1+bn+relu+broadcast-upsample), seq2 (conv1+bn+relu),
#   concat + conv2 + bn + relu + dropout(identity) + conv3
# ---------------------------------------------------------------------------
def _decoder_core_kernel(x_ref, w1_ref, w2t_ref, w2b_ref, w3_ref,
                         scale_ref, bias_ref, o_ref):
    x = x_ref[0]                                                    # (HW, 320) bf16

    # --- pooled branch (seq1): GAP -> conv1 -> BN -> ReLU --------------------
    pooled = jnp.mean(x.astype(jnp.float32), axis=0, keepdims=True)  # (1, 320)
    p1 = jnp.dot(pooled.astype(jnp.bfloat16), w1_ref[...],
                 preferred_element_type=jnp.float32)                 # (1, 256)
    p1 = jnp.maximum(p1 * scale_ref[...] + bias_ref[...], 0.0)
    # biup1 (1x1 -> HxW bilinear) == broadcast; fold it into conv2 as a
    # per-batch bias:  concat(s1, s2) @ W2 == s1 @ W2[:256] + s2 @ W2[256:]
    s1w = jnp.dot(p1.astype(jnp.bfloat16), w2t_ref[...],
                  preferred_element_type=jnp.float32)                # (1, 256)

    # --- pixel branch (seq2): conv1 -> BN -> ReLU ----------------------------
    h1 = jnp.dot(x, w1_ref[...], preferred_element_type=jnp.float32)  # (HW, 256)
    h1 = jnp.maximum(h1 * scale_ref[...] + bias_ref[...], 0.0)

    # --- seq3 head: conv2 -> BN -> ReLU -> dropout -> conv3 ------------------
    t = jnp.dot(h1.astype(jnp.bfloat16), w2b_ref[...],
                preferred_element_type=jnp.float32) + s1w            # (HW, 256)
    h2 = jnp.maximum(t * scale_ref[...] + bias_ref[...], 0.0)
    # TODO(synk): nn.Dropout(p=0.1) implemented as inference-mode identity.
    o_ref[0] = jnp.dot(h2.astype(jnp.bfloat16), w3_ref[...],
                       preferred_element_type=jnp.float32)           # (HW, Cpad)


def decoder_core(x_nsc, w1, w2_top, w2_bot, w3_pad, bn_scale2, bn_bias2):
    """x: (N, HW, Cin) bf16 -> lane-dense logits (N, HW, Cpad) f32."""
    N, S, Cin = x_nsc.shape
    Cmid = w1.shape[1]
    Cpad = w3_pad.shape[1]
    return pl.pallas_call(
        _decoder_core_kernel,
        out_shape=jax.ShapeDtypeStruct((N, S, Cpad), jnp.float32),
        grid=(N,),
        in_specs=[
            pl.BlockSpec((1, S, Cin), lambda n: (n, 0, 0)),
            pl.BlockSpec((Cin, Cmid), lambda n: (0, 0)),
            pl.BlockSpec((Cmid, Cmid), lambda n: (0, 0)),
            pl.BlockSpec((Cmid, Cmid), lambda n: (0, 0)),
            pl.BlockSpec((Cmid, Cpad), lambda n: (0, 0)),
            pl.BlockSpec((1, Cmid), lambda n: (0, 0)),
            pl.BlockSpec((1, Cmid), lambda n: (0, 0)),
        ],
        out_specs=pl.BlockSpec((1, S, Cpad), lambda n: (n, 0, 0)),
        compiler_params=pltpu.CompilerParams(
            dimension_semantics=("parallel",),
            vmem_limit_bytes=_VMEM_LIMIT,
        ),
    )(x_nsc, w1, w2_top, w2_bot, w3_pad, bn_scale2, bn_bias2)


# ---------------------------------------------------------------------------
# Kernel 2: bilinear Resize((224,224)) + Sigmoid, a group of planes per step
# ---------------------------------------------------------------------------
def _resize_sigmoid_kernel(x_ref, rh_ref, rwT_ref, o_ref, *, planes):
    rh = rh_ref[...]
    rwT = rwT_ref[...]
    for b in range(planes):  # small, unrolled
        t = jnp.dot(x_ref[b], rwT, preferred_element_type=jnp.float32)   # (H, OW)
        y = jnp.dot(rh, t, preferred_element_type=jnp.float32)           # (OH, OW)
        o_ref[b] = jax.nn.sigmoid(y)


def resize_sigmoid(x_bhw, rh, rw, planes_per_step):
    """x: (B, H, W), rh: (OH, H), rw: (OW, W) -> sigmoid(rh @ x @ rw.T)."""
    B, H, W = x_bhw.shape
    OH, OW = rh.shape[0], rw.shape[0]
    rwT = jnp.transpose(rw)                                               # (W, OW)
    kernel = functools.partial(_resize_sigmoid_kernel, planes=planes_per_step)
    return pl.pallas_call(
        kernel,
        out_shape=jax.ShapeDtypeStruct((B, OH, OW), jnp.float32),
        grid=(B // planes_per_step,),
        in_specs=[
            pl.BlockSpec((planes_per_step, H, W), lambda g: (g, 0, 0)),
            pl.BlockSpec((OH, H), lambda g: (0, 0)),
            pl.BlockSpec((W, OW), lambda g: (0, 0)),
        ],
        out_specs=pl.BlockSpec((planes_per_step, OH, OW), lambda g: (g, 0, 0)),
        compiler_params=pltpu.CompilerParams(
            dimension_semantics=("parallel",),
            vmem_limit_bytes=_VMEM_LIMIT,
        ),
    )(x_bhw.astype(jnp.float32), rh.astype(jnp.float32), rwT.astype(jnp.float32))


# ---------------------------------------------------------------------------
# Glue
# ---------------------------------------------------------------------------
def bilinear_resize_matrix(in_size, out_size):
    # torchvision Resize (bilinear, align_corners=False).  antialias=True is a
    # no-op when upsampling, which is the case here (in_size < 224).
    # TODO(synk): antialiased downsampling (in_size > 224) not implemented.
    i = jnp.arange(out_size, dtype=jnp.float32)
    scale = in_size / out_size
    src = jnp.clip((i + 0.5) * scale - 0.5, 0.0, float(in_size - 1))
    lo = jnp.floor(src).astype(jnp.int32)
    hi = jnp.minimum(lo + 1, in_size - 1)
    frac = src - lo.astype(jnp.float32)
    rows = jnp.arange(out_size)
    mat = jnp.zeros((out_size, in_size), jnp.float32)
    mat = mat.at[rows, lo].add(1.0 - frac)
    mat = mat.at[rows, hi].add(frac)
    return mat


def _pick_plane_group(b):
    for g in (8, 4, 2, 1):
        if b % g == 0 and b // g >= 2:
            return g
    return b


# ---------------------------------------------------------------------------
# Parameters (deterministic synthetic init; BatchNorm folded to eval affine)
# ---------------------------------------------------------------------------
def init_params(key, classes):
    k1, k2, k3, k4, k5 = jax.random.split(key, 5)
    # conv2d1: 320->256, conv2d2: 512->256, conv2d3: 256->classes; (Cin, Cout)
    w1 = 0.05 * jax.random.normal(k1, (320, 256), jnp.float32)
    w2 = 0.05 * jax.random.normal(k2, (512, 256), jnp.float32)
    w3 = 0.05 * jax.random.normal(k3, (256, classes), jnp.float32)
    gamma = 1.0 + 0.1 * jax.random.normal(k4, (256,), jnp.float32)
    beta = 0.1 * jax.random.normal(k5, (256,), jnp.float32)
    running_mean = jnp.zeros((256,), jnp.float32)
    running_var = jnp.ones((256,), jnp.float32)
    eps = 1e-5
    bn_scale = gamma / jnp.sqrt(running_var + eps)
    bn_bias = beta - running_mean * bn_scale
    return {"w1": w1, "w2": w2, "w3": w3, "bn_scale": bn_scale, "bn_bias": bn_bias}


# ---------------------------------------------------------------------------
# Forward pass (matches MobileNetV2Decoder.forward, eval mode)
# ---------------------------------------------------------------------------
def mobilenetv2_decoder_forward(x_nchw, params):
    N, Cin, H, W = x_nchw.shape
    w1 = params["w1"].astype(jnp.bfloat16)             # (320, 256)
    w2 = params["w2"]                                   # (512, 256)
    w3 = params["w3"]                                   # (256, classes)
    cmid = w1.shape[1]
    classes = w3.shape[1]
    cpad = ((classes + 127) // 128) * 128               # lane-dense projection
    w3_pad = jnp.zeros((w3.shape[0], cpad), jnp.float32).at[:, :classes].set(w3)
    w3_pad = w3_pad.astype(jnp.bfloat16)
    # concat order is (s1, s2): s1 hits the top rows of W2, s2 the bottom rows.
    w2_top = w2[:cmid, :].astype(jnp.bfloat16)
    w2_bot = w2[cmid:, :].astype(jnp.bfloat16)
    bn_scale2 = params["bn_scale"].reshape(1, cmid).astype(jnp.float32)
    bn_bias2 = params["bn_bias"].reshape(1, cmid).astype(jnp.float32)

    # channels-last pixel rows; bf16 halves activation DMA bytes
    x_nsc = jnp.transpose(x_nchw, (0, 2, 3, 1)).reshape(N, H * W, Cin)
    x_nsc = x_nsc.astype(jnp.bfloat16)

    # one fused kernel: pooled branch + pixel branch + concat-conv2 + conv3
    logits_pad = decoder_core(x_nsc, w1, w2_top, w2_bot, w3_pad,
                              bn_scale2, bn_bias2)      # (N, HW, cpad) f32

    # tiny (N*HW*classes) relayout to (n, c) planes for the resize kernel
    planes = (logits_pad[:, :, :classes]
              .reshape(N, H, W, classes)
              .transpose(0, 3, 1, 2)
              .reshape(N * classes, H, W))

    rh = bilinear_resize_matrix(H, 224)
    rw = bilinear_resize_matrix(W, 224)
    out = resize_sigmoid(planes, rh, rw, _pick_plane_group(N * classes))
    return out.reshape(N, classes, 224, 224)


if __name__ == "__main__":
    N, C_IN, H, W = 2, 320, 8, 8
    CLASSES = 4

    key = jax.random.PRNGKey(0)
    kx, kp = jax.random.split(key)
    x = jax.random.normal(kx, (N, C_IN, H, W), jnp.float32)
    params = init_params(kp, CLASSES)

    out = jax.jit(mobilenetv2_decoder_forward)(x, params)
    out = jax.block_until_ready(out)

    assert out.shape == (N, CLASSES, 224, 224), out.shape
    assert out.dtype == jnp.float32
    assert bool(jnp.all(jnp.isfinite(out)))
    assert bool(jnp.all((out >= 0.0) & (out <= 1.0)))  # sigmoid range
    print("KERNEL_OK")
</pallas_src>

<mosaic_0001>
module attributes {stable_mosaic.version = 11 : i64} {
  func.func private @main(%arg0: i32) attributes {dimension_semantics = [#tpu.dimension_semantics<core_parallel>], iteration_bounds = array<i64: 2>, tpu.core_type = #tpu.core_type<sc_scalar_subcore>, window_params = []} {
    return
  }
}

module attributes {stable_mosaic.version = 11 : i64} {
  func.func private @main(%arg0: i32) attributes {dimension_semantics = [#tpu.dimension_semantics<core_parallel>], iteration_bounds = array<i64: 2>, tpu.core_type = #tpu.core_type<sc_scalar_subcore>, window_params = []} {
    return
  }
}

module attributes {stable_mosaic.version = 11 : i64} {
  func.func @_decoder_core_kernel(%arg0: i32, %arg1: memref<1x64x320xbf16, #tpu.memory_space<vmem>>, %arg2: memref<320x256xbf16, #tpu.memory_space<vmem>>, %arg3: memref<256x256xbf16, #tpu.memory_space<vmem>>, %arg4: memref<256x256xbf16, #tpu.memory_space<vmem>>, %arg5: memref<256x128xbf16, #tpu.memory_space<vmem>>, %arg6: memref<1x256xf32, #tpu.memory_space<vmem>>, %arg7: memref<1x256xf32, #tpu.memory_space<vmem>>, %arg8: memref<1x64x128xf32, #tpu.memory_space<vmem>>) attributes {dimension_semantics = [#tpu.dimension_semantics<parallel>], iteration_bounds = array<i64: 2>, scalar_prefetch = 0 : i64, scratch_operands = 0 : i64, tpu.core_type = #tpu.core_type<tc>, window_params = [{transform_indices = @transform_0, window_bounds = array<i64: 1, 64, 320>}, {pipeline_mode = #tpu.pipeline_mode<synchronous>, transform_indices = @transform_1, window_bounds = array<i64: 320, 256>}, {pipeline_mode = #tpu.pipeline_mode<synchronous>, transform_indices = @transform_2, window_bounds = array<i64: 256, 256>}, {pipeline_mode = #tpu.pipeline_mode<synchronous>, transform_indices = @transform_3, window_bounds = array<i64: 256, 256>}, {pipeline_mode = #tpu.pipeline_mode<synchronous>, transform_indices = @transform_4, window_bounds = array<i64: 256, 128>}, {pipeline_mode = #tpu.pipeline_mode<synchronous>, transform_indices = @transform_5, window_bounds = array<i64: 1, 256>}, {pipeline_mode = #tpu.pipeline_mode<synchronous>, transform_indices = @transform_6, window_bounds = array<i64: 1, 256>}, {transform_indices = @transform_7, window_bounds = array<i64: 1, 64, 128>}]} {
    %c0 = arith.constant 0 : index
    %c0_0 = arith.constant 0 : index
    %c0_1 = arith.constant 0 : index
    %0 = vector.load %arg1[%c0, %c0_0, %c0_1] : memref<1x64x320xbf16, #tpu.memory_space<vmem>>, vector<1x64x320xbf16>
    %1 = vector.shape_cast %0 : vector<1x64x320xbf16> to vector<64x320xbf16>
    %2 = arith.extf %1 : vector<64x320xbf16> to vector<64x320xf32>
    %cst = arith.constant dense<0.000000e+00> : vector<320xf32>
    %3 = vector.multi_reduction <add>, %2, %cst [0] : vector<64x320xf32> to vector<320xf32>
    %4 = vector.shape_cast %3 : vector<320xf32> to vector<1x320xf32>
    %cst_2 = arith.constant 6.400000e+01 : f32
    %5 = vector.broadcast %cst_2 : f32 to vector<1x320xf32>
    %6 = arith.divf %4, %5 : vector<1x320xf32>
    %7 = arith.truncf %6 : vector<1x320xf32> to vector<1x320xbf16>
    %c0_3 = arith.constant 0 : index
    %c0_4 = arith.constant 0 : index
    %8 = vector.load %arg2[%c0_3, %c0_4] : memref<320x256xbf16, #tpu.memory_space<vmem>>, vector<320x256xbf16>
    %cst_5 = arith.constant dense<0.000000e+00> : vector<1x256xf32>
    %9 = tpu.matmul %7, %8, %cst_5 {dimension_numbers = #tpu.dot_dimension_numbers<[1], [0], [0], [1], [0, 0, 1, 1], [], []>} : vector<1x320xbf16>, vector<320x256xbf16>, vector<1x256xf32> -> vector<1x256xf32>
    %c0_6 = arith.constant 0 : index
    %c0_7 = arith.constant 0 : index
    %10 = vector.load %arg6[%c0_6, %c0_7] : memref<1x256xf32, #tpu.memory_space<vmem>>, vector<1x256xf32>
    %11 = arith.mulf %9, %10 : vector<1x256xf32>
    %c0_8 = arith.constant 0 : index
    %c0_9 = arith.constant 0 : index
    %12 = vector.load %arg7[%c0_8, %c0_9] : memref<1x256xf32, #tpu.memory_space<vmem>>, vector<1x256xf32>
    %13 = arith.addf %11, %12 : vector<1x256xf32>
    %cst_10 = arith.constant 0.000000e+00 : f32
    %14 = vector.broadcast %cst_10 : f32 to vector<1x256xf32>
    %15 = arith.maximumf %13, %14 : vector<1x256xf32>
    %16 = arith.truncf %15 : vector<1x256xf32> to vector<1x256xbf16>
    %c0_11 = arith.constant 0 : index
    %c0_12 = arith.constant 0 : index
    %17 = vector.load %arg3[%c0_11, %c0_12] : memref<256x256xbf16, #tpu.memory_space<vmem>>, vector<256x256xbf16>
    %cst_13 = arith.constant dense<0.000000e+00> : vector<1x256xf32>
    %18 = tpu.matmul %16, %17, %cst_13 {dimension_numbers = #tpu.dot_dimension_numbers<[1], [0], [0], [1], [0, 0, 1, 1], [], []>} : vector<1x256xbf16>, vector<256x256xbf16>, vector<1x256xf32> -> vector<1x256xf32>
    %c0_14 = arith.constant 0 : index
    %c0_15 = arith.constant 0 : index
    %19 = vector.load %arg2[%c0_14, %c0_15] : memref<320x256xbf16, #tpu.memory_space<vmem>>, vector<320x256xbf16>
    %cst_16 = arith.constant dense<0.000000e+00> : vector<64x256xf32>
    %20 = tpu.matmul %1, %19, %cst_16 {dimension_numbers = #tpu.dot_dimension_numbers<[1], [0], [0], [1], [0, 0, 1, 1], [], []>} : vector<64x320xbf16>, vector<320x256xbf16>, vector<64x256xf32> -> vector<64x256xf32>
    %c0_17 = arith.constant 0 : index
    %c0_18 = arith.constant 0 : index
    %21 = vector.load %arg6[%c0_17, %c0_18] : memref<1x256xf32, #tpu.memory_space<vmem>>, vector<1x256xf32>
    %22 = vector.broadcast %21 : vector<1x256xf32> to vector<64x256xf32>
    %23 = arith.mulf %20, %22 : vector<64x256xf32>
    %c0_19 = arith.constant 0 : index
    %c0_20 = arith.constant 0 : index
    %24 = vector.load %arg7[%c0_19, %c0_20] : memref<1x256xf32, #tpu.memory_space<vmem>>, vector<1x256xf32>
    %25 = vector.broadcast %24 : vector<1x256xf32> to vector<64x256xf32>
    %26 = arith.addf %23, %25 : vector<64x256xf32>
    %cst_21 = arith.constant 0.000000e+00 : f32
    %27 = vector.broadcast %cst_21 : f32 to vector<64x256xf32>
    %28 = arith.maximumf %26, %27 : vector<64x256xf32>
    %29 = arith.truncf %28 : vector<64x256xf32> to vector<64x256xbf16>
    %c0_22 = arith.constant 0 : index
    %c0_23 = arith.constant 0 : index
    %30 = vector.load %arg4[%c0_22, %c0_23] : memref<256x256xbf16, #tpu.memory_space<vmem>>, vector<256x256xbf16>
    %cst_24 = arith.constant dense<0.000000e+00> : vector<64x256xf32>
    %31 = tpu.matmul %29, %30, %cst_24 {dimension_numbers = #tpu.dot_dimension_numbers<[1], [0], [0], [1], [0, 0, 1, 1], [], []>} : vector<64x256xbf16>, vector<256x256xbf16>, vector<64x256xf32> -> vector<64x256xf32>
    %32 = vector.broadcast %18 : vector<1x256xf32> to vector<64x256xf32>
    %33 = arith.addf %31, %32 : vector<64x256xf32>
    %c0_25 = arith.constant 0 : index
    %c0_26 = arith.constant 0 : index
    %34 = vector.load %arg6[%c0_25, %c0_26] : memref<1x256xf32, #tpu.memory_space<vmem>>, vector<1x256xf32>
    %35 = vector.broadcast %34 : vector<1x256xf32> to vector<64x256xf32>
    %36 = arith.mulf %33, %35 : vector<64x256xf32>
    %c0_27 = arith.constant 0 : index
    %c0_28 = arith.constant 0 : index
    %37 = vector.load %arg7[%c0_27, %c0_28] : memref<1x256xf32, #tpu.memory_space<vmem>>, vector<1x256xf32>
    %38 = vector.broadcast %37 : vector<1x256xf32> to vector<64x256xf32>
    %39 = arith.addf %36, %38 : vector<64x256xf32>
    %cst_29 = arith.constant 0.000000e+00 : f32
    %40 = vector.broadcast %cst_29 : f32 to vector<64x256xf32>
    %41 = arith.maximumf %39, %40 : vector<64x256xf32>
    %42 = arith.truncf %41 : vector<64x256xf32> to vector<64x256xbf16>
    %c0_30 = arith.constant 0 : index
    %c0_31 = arith.constant 0 : index
    %43 = vector.load %arg5[%c0_30, %c0_31] : memref<256x128xbf16, #tpu.memory_space<vmem>>, vector<256x128xbf16>
    %cst_32 = arith.constant dense<0.000000e+00> : vector<64x128xf32>
    %44 = tpu.matmul %42, %43, %cst_32 {dimension_numbers = #tpu.dot_dimension_numbers<[1], [0], [0], [1], [0, 0, 1, 1], [], []>} : vector<64x256xbf16>, vector<256x128xbf16>, vector<64x128xf32> -> vector<64x128xf32>
    %c0_33 = arith.constant 0 : index
    %c0_34 = arith.constant 0 : index
    %c0_35 = arith.constant 0 : index
    %45 = vector.load %arg8[%c0_33, %c0_34, %c0_35] : memref<1x64x128xf32, #tpu.memory_space<vmem>>, vector<1x64x128xf32>
    %46 = vector.shape_cast %45 : vector<1x64x128xf32> to vector<64x128xf32>
    %47 = vector.shape_cast %44 : vector<64x128xf32> to vector<1x64x128xf32>
    tpu.vector_store %arg8[%c0_33, %c0_34, %c0_35], %47 {strides = array<i32>} : memref<1x64x128xf32, #tpu.memory_space<vmem>>, vector<1x64x128xf32>,
    return
  }
  func.func @transform_0(%arg0: i32) -> (i32, i32, i32) {
    %c0_i32 = arith.constant 0 : i32
    %c0_i32_0 = arith.constant 0 : i32
    %c0_i32_1 = arith.constant 0 : i32
    return %arg0, %c0_i32, %c0_i32_0 : i32, i32, i32
  }
  func.func @transform_1(%arg0: i32) -> (i32, i32) {
    %c0_i32 = arith.constant 0 : i32
    %c0_i32_0 = arith.constant 0 : i32
    %c0_i32_1 = arith.constant 0 : i32
    return %c0_i32, %c0_i32_0 : i32, i32
  }
  func.func @transform_2(%arg0: i32) -> (i32, i32) {
    %c0_i32 = arith.constant 0 : i32
    %c0_i32_0 = arith.constant 0 : i32
    %c0_i32_1 = arith.constant 0 : i32
    return %c0_i32, %c0_i32_0 : i32, i32
  }
  func.func @transform_3(%arg0: i32) -> (i32, i32) {
    %c0_i32 = arith.constant 0 : i32
    %c0_i32_0 = arith.constant 0 : i32
    %c0_i32_1 = arith.constant 0 : i32
    return %c0_i32, %c0_i32_0 : i32, i32
  }
  func.func @transform_4(%arg0: i32) -> (i32, i32) {
    %c0_i32 = arith.constant 0 : i32
    %c0_i32_0 = arith.constant 0 : i32
    %c0_i32_1 = arith.constant 0 : i32
    return %c0_i32, %c0_i32_0 : i32, i32
  }
  func.func @transform_5(%arg0: i32) -> (i32, i32) {
    %c0_i32 = arith.constant 0 : i32
    %c0_i32_0 = arith.constant 0 : i32
    %c0_i32_1 = arith.constant 0 : i32
    return %c0_i32, %c0_i32_0 : i32, i32
  }
  func.func @transform_6(%arg0: i32) -> (i32, i32) {
    %c0_i32 = arith.constant 0 : i32
    %c0_i32_0 = arith.constant 0 : i32
    %c0_i32_1 = arith.constant 0 : i32
    return %c0_i32, %c0_i32_0 : i32, i32
  }
  func.func @transform_7(%arg0: i32) -> (i32, i32, i32) {
    %c0_i32 = arith.constant 0 : i32
    %c0_i32_0 = arith.constant 0 : i32
    %c0_i32_1 = arith.constant 0 : i32
    return %arg0, %c0_i32, %c0_i32_0 : i32, i32, i32
  }
}

module attributes {stable_mosaic.version = 11 : i64} {
  func.func @_resize_sigmoid_kernel(%arg0: i32, %arg1: memref<4x8x8xf32, #tpu.memory_space<vmem>>, %arg2: memref<224x8xf32, #tpu.memory_space<vmem>>, %arg3: memref<8x224xf32, #tpu.memory_space<vmem>>, %arg4: memref<4x224x224xf32, #tpu.memory_space<vmem>>) attributes {dimension_semantics = [#tpu.dimension_semantics<parallel>], iteration_bounds = array<i64: 2>, scalar_prefetch = 0 : i64, scratch_operands = 0 : i64, tpu.core_type = #tpu.core_type<tc>, window_params = [{transform_indices = @transform_0, window_bounds = array<i64: 4, 8, 8>}, {pipeline_mode = #tpu.pipeline_mode<synchronous>, transform_indices = @transform_1, window_bounds = array<i64: 224, 8>}, {pipeline_mode = #tpu.pipeline_mode<synchronous>, transform_indices = @transform_2, window_bounds = array<i64: 8, 224>}, {transform_indices = @transform_3, window_bounds = array<i64: 4, 224, 224>}]} {
    %c0 = arith.constant 0 : index
    %c0_0 = arith.constant 0 : index
    %0 = vector.load %arg2[%c0, %c0_0] : memref<224x8xf32, #tpu.memory_space<vmem>>, vector<224x8xf32>
    %c0_1 = arith.constant 0 : index
    %c0_2 = arith.constant 0 : index
    %1 = vector.load %arg3[%c0_1, %c0_2] : memref<8x224xf32, #tpu.memory_space<vmem>>, vector<8x224xf32>
    %c0_3 = arith.constant 0 : index
    %c0_4 = arith.constant 0 : index
    %c0_5 = arith.constant 0 : index
    %2 = vector.load %arg1[%c0_3, %c0_4, %c0_5] : memref<4x8x8xf32, #tpu.memory_space<vmem>>, vector<1x8x8xf32>
    %3 = vector.shape_cast %2 : vector<1x8x8xf32> to vector<8x8xf32>
    %cst = arith.constant dense<0.000000e+00> : vector<8x224xf32>
    %4 = tpu.matmul %3, %1, %cst {dimension_numbers = #tpu.dot_dimension_numbers<[1], [0], [0], [1], [0, 0, 1, 1], [], []>} : vector<8x8xf32>, vector<8x224xf32>, vector<8x224xf32> -> vector<8x224xf32>
    %cst_6 = arith.constant dense<0.000000e+00> : vector<224x224xf32>
    %5 = tpu.matmul %0, %4, %cst_6 {dimension_numbers = #tpu.dot_dimension_numbers<[1], [0], [0], [1], [0, 0, 1, 1], [], []>} : vector<224x8xf32>, vector<8x224xf32>, vector<224x224xf32> -> vector<224x224xf32>
    %6 = arith.negf %5 : vector<224x224xf32>
    %7 = math.exp %6 : vector<224x224xf32>
    %cst_7 = arith.constant 1.000000e+00 : f32
    %8 = vector.broadcast %cst_7 : f32 to vector<224x224xf32>
    %9 = arith.addf %8, %7 : vector<224x224xf32>
    %10 = arith.divf %8, %9 : vector<224x224xf32>
    %c0_8 = arith.constant 0 : index
    %c0_9 = arith.constant 0 : index
    %c0_10 = arith.constant 0 : index
    %11 = vector.load %arg4[%c0_8, %c0_9, %c0_10] : memref<4x224x224xf32, #tpu.memory_space<vmem>>, vector<1x224x224xf32>
    %12 = vector.shape_cast %11 : vector<1x224x224xf32> to vector<224x224xf32>
    %13 = vector.shape_cast %10 : vector<224x224xf32> to vector<1x224x224xf32>
    tpu.vector_store %arg4[%c0_8, %c0_9, %c0_10], %13 {strides = array<i32>} : memref<4x224x224xf32, #tpu.memory_space<vmem>>, vector<1x224x224xf32>,
    %c1 = arith.constant 1 : index
    %c0_11 = arith.constant 0 : index
    %c0_12 = arith.constant 0 : index
    %14 = vector.load %arg1[%c1, %c0_11, %c0_12] : memref<4x8x8xf32, #tpu.memory_space<vmem>>, vector<1x8x8xf32>
    %15 = vector.shape_cast %14 : vector<1x8x8xf32> to vector<8x8xf32>
    %cst_13 = arith.constant dense<0.000000e+00> : vector<8x224xf32>
    %16 = tpu.matmul %15, %1, %cst_13 {dimension_numbers = #tpu.dot_dimension_numbers<[1], [0], [0], [1], [0, 0, 1, 1], [], []>} : vector<8x8xf32>, vector<8x224xf32>, vector<8x224xf32> -> vector<8x224xf32>
    %cst_14 = arith.constant dense<0.000000e+00> : vector<224x224xf32>
    %17 = tpu.matmul %0, %16, %cst_14 {dimension_numbers = #tpu.dot_dimension_numbers<[1], [0], [0], [1], [0, 0, 1, 1], [], []>} : vector<224x8xf32>, vector<8x224xf32>, vector<224x224xf32> -> vector<224x224xf32>
    %18 = arith.negf %17 : vector<224x224xf32>
    %19 = math.exp %18 : vector<224x224xf32>
    %cst_15 = arith.constant 1.000000e+00 : f32
    %20 = vector.broadcast %cst_15 : f32 to vector<224x224xf32>
    %21 = arith.addf %20, %19 : vector<224x224xf32>
    %22 = arith.divf %20, %21 : vector<224x224xf32>
    %c1_16 = arith.constant 1 : index
    %c0_17 = arith.constant 0 : index
    %c0_18 = arith.constant 0 : index
    %23 = vector.load %arg4[%c1_16, %c0_17, %c0_18] : memref<4x224x224xf32, #tpu.memory_space<vmem>>, vector<1x224x224xf32>
    %24 = vector.shape_cast %23 : vector<1x224x224xf32> to vector<224x224xf32>
    %25 = vector.shape_cast %22 : vector<224x224xf32> to vector<1x224x224xf32>
    tpu.vector_store %arg4[%c1_16, %c0_17, %c0_18], %25 {strides = array<i32>} : memref<4x224x224xf32, #tpu.memory_space<vmem>>, vector<1x224x224xf32>,
    %c2 = arith.constant 2 : index
    %c0_19 = arith.constant 0 : index
    %c0_20 = arith.constant 0 : index
    %26 = vector.load %arg1[%c2, %c0_19, %c0_20] : memref<4x8x8xf32, #tpu.memory_space<vmem>>, vector<1x8x8xf32>
    %27 = vector.shape_cast %26 : vector<1x8x8xf32> to vector<8x8xf32>
    %cst_21 = arith.constant dense<0.000000e+00> : vector<8x224xf32>
    %28 = tpu.matmul %27, %1, %cst_21 {dimension_numbers = #tpu.dot_dimension_numbers<[1], [0], [0], [1], [0, 0, 1, 1], [], []>} : vector<8x8xf32>, vector<8x224xf32>, vector<8x224xf32> -> vector<8x224xf32>
    %cst_22 = arith.constant dense<0.000000e+00> : vector<224x224xf32>
    %29 = tpu.matmul %0, %28, %cst_22 {dimension_numbers = #tpu.dot_dimension_numbers<[1], [0], [0], [1], [0, 0, 1, 1], [], []>} : vector<224x8xf32>, vector<8x224xf32>, vector<224x224xf32> -> vector<224x224xf32>
    %30 = arith.negf %29 : vector<224x224xf32>
    %31 = math.exp %30 : vector<224x224xf32>
    %cst_23 = arith.constant 1.000000e+00 : f32
    %32 = vector.broadcast %cst_23 : f32 to vector<224x224xf32>
    %33 = arith.addf %32, %31 : vector<224x224xf32>
    %34 = arith.divf %32, %33 : vector<224x224xf32>
    %c2_24 = arith.constant 2 : index
    %c0_25 = arith.constant 0 : index
    %c0_26 = arith.constant 0 : index
    %35 = vector.load %arg4[%c2_24, %c0_25, %c0_26] : memref<4x224x224xf32, #tpu.memory_space<vmem>>, vector<1x224x224xf32>
    %36 = vector.shape_cast %35 : vector<1x224x224xf32> to vector<224x224xf32>
    %37 = vector.shape_cast %34 : vector<224x224xf32> to vector<1x224x224xf32>
    tpu.vector_store %arg4[%c2_24, %c0_25, %c0_26], %37 {strides = array<i32>} : memref<4x224x224xf32, #tpu.memory_space<vmem>>, vector<1x224x224xf32>,
    %c3 = arith.constant 3 : index
    %c0_27 = arith.constant 0 : index
    %c0_28 = arith.constant 0 : index
    %38 = vector.load %arg1[%c3, %c0_27, %c0_28] : memref<4x8x8xf32, #tpu.memory_space<vmem>>, vector<1x8x8xf32>
    %39 = vector.shape_cast %38 : vector<1x8x8xf32> to vector<8x8xf32>
    %cst_29 = arith.constant dense<0.000000e+00> : vector<8x224xf32>
    %40 = tpu.matmul %39, %1, %cst_29 {dimension_numbers = #tpu.dot_dimension_numbers<[1], [0], [0], [1], [0, 0, 1, 1], [], []>} : vector<8x8xf32>, vector<8x224xf32>, vector<8x224xf32> -> vector<8x224xf32>
    %cst_30 = arith.constant dense<0.000000e+00> : vector<224x224xf32>
    %41 = tpu.matmul %0, %40, %cst_30 {dimension_numbers = #tpu.dot_dimension_numbers<[1], [0], [0], [1], [0, 0, 1, 1], [], []>} : vector<224x8xf32>, vector<8x224xf32>, vector<224x224xf32> -> vector<224x224xf32>
    %42 = arith.negf %41 : vector<224x224xf32>
    %43 = math.exp %42 : vector<224x224xf32>
    %cst_31 = arith.constant 1.000000e+00 : f32
    %44 = vector.broadcast %cst_31 : f32 to vector<224x224xf32>
    %45 = arith.addf %44, %43 : vector<224x224xf32>
    %46 = arith.divf %44, %45 : vector<224x224xf32>
    %c3_32 = arith.constant 3 : index
    %c0_33 = arith.constant 0 : index
    %c0_34 = arith.constant 0 : index
    %47 = vector.load %arg4[%c3_32, %c0_33, %c0_34] : memref<4x224x224xf32, #tpu.memory_space<vmem>>, vector<1x224x224xf32>
    %48 = vector.shape_cast %47 : vector<1x224x224xf32> to vector<224x224xf32>
    %49 = vector.shape_cast %46 : vector<224x224xf32> to vector<1x224x224xf32>
    tpu.vector_store %arg4[%c3_32, %c0_33, %c0_34], %49 {strides = array<i32>} : memref<4x224x224xf32, #tpu.memory_space<vmem>>, vector<1x224x224xf32>,
    return
  }
  func.func @transform_0(%arg0: i32) -> (i32, i32, i32) {
    %c0_i32 = arith.constant 0 : i32
    %c0_i32_0 = arith.constant 0 : i32
    %c0_i32_1 = arith.constant 0 : i32
    return %arg0, %c0_i32, %c0_i32_0 : i32, i32, i32
  }
  func.func @transform_1(%arg0: i32) -> (i32, i32) {
    %c0_i32 = arith.constant 0 : i32
    %c0_i32_0 = arith.constant 0 : i32
    %c0_i32_1 = arith.constant 0 : i32
    return %c0_i32, %c0_i32_0 : i32, i32
  }
  func.func @transform_2(%arg0: i32) -> (i32, i32) {
    %c0_i32 = arith.constant 0 : i32
    %c0_i32_0 = arith.constant 0 : i32
    %c0_i32_1 = arith.constant 0 : i32
    return %c0_i32, %c0_i32_0 : i32, i32
  }
  func.func @transform_3(%arg0: i32) -> (i32, i32, i32) {
    %c0_i32 = arith.constant 0 : i32
    %c0_i32_0 = arith.constant 0 : i32
    %c0_i32_1 = arith.constant 0 : i32
    return %arg0, %c0_i32, %c0_i32_0 : i32, i32, i32
  }
}

</mosaic_0001>

<bundles_post_ra>
// kernel: mobilenetv2_decoder_forward.2
= control target key start
LH: loop header
LB: loop body
LE: loop exit
PB: predicated region body
PF: predicated region fallthrough
CT: control target
= control target key end

     0   :  { %s2255_s24 = smov 0   ;;  %s3036_s0 = inlined_call_operand.vmem [shape: bf16[2,64,320], index: 0, kind: input, shape index: {}]   ;;  %s3037_s1 = inlined_call_operand.vmem [shape: bf16[320,256], index: 1, kind: input, shape index: {}]   ;;  %s3038_s2 = inlined_call_operand.vmem [shape: bf16[256,256], index: 2, kind: input, shape index: {}]   ;;  %s3039_s3 = inlined_call_operand.vmem [shape: bf16[256,256], index: 3, kind: input, shape index: {}]   ;;  %s3040_s4 = inlined_call_operand.vmem [shape: bf16[256,128], index: 4, kind: input, shape index: {}]   ;;  %s3041_s5 = inlined_call_operand.vmem [shape: f32[1,256], index: 5, kind: input, shape index: {}]   ;;  %s3042_s6 = inlined_call_operand.vmem [shape: f32[1,256], index: 6, kind: input, shape index: {}]   ;;  %s3043_s7 = inlined_call_operand.vmem [shape: f32[2,64,128], index: 7, kind: output, shape index: {}]  }
   0x1 LB: > { %s1824_s25 = sadd.s32 4294967295, %s2212_s24   ;;  %p1828_p0 = scmp.ge.s32.totalorder %s2212_s24, 1  ;;  %s2212_s24 = sphi %s2255_s24, %s17_s24  }
   0x2   : > { %p237_p1 = scmp.lt.s32.totalorder %s2212_s24, 3 }
   0x4   : > { %p238_p2 = pnand %p1828_p0, %p237_p1 }
   0x6   : > { %241 = sbr.rel (%p238_p2) target bundleno = 944 (0x3b0), region = 48 }
   0xb   : > { %v2266_v0 = vld [vmem:[%s3037_s1 + $0x74] ss:$8 sps:$4 sm:$0xff]   ;;  %v2271_v1 = vld [vmem:[%s3037_s1 + $0x70] ss:$8 sps:$4 sm:$0xff]   ;;  %v3044_v2 = vmov 0   ;;  %p269_p3 = scmp.lt.s32.totalorder %s1824_s25, 1 }
   0xc   : > { %691 = vmatprep.mubr.bf16.mxu1 %v3044_v2  ;;  %618 = vmatprep.subr.bf16.mxu0 %v2266_v0  ;;  %v2278_v3 = vld [vmem:[%s3037_s1 + $0x64] ss:$8 sps:$4 sm:$0xff]   ;;  %v2284_v4 = vld [vmem:[%s3037_s1 + $0x60] ss:$8 sps:$4 sm:$0xff]   ;;  %v2290_v5 = vld [vmem:[%s3037_s1 + $0x54] ss:$8 sps:$4 sm:$0xff]  }
   0xd   : > { %619 = vmatpush1.bf16.msra.mxu0 %v2271_v1  ;;  %v2296_v6 = vld [vmem:[%s3037_s1 + $0x50] ss:$8 sps:$4 sm:$0xff]   ;;  %v2302_v7 = vld [vmem:[%s3037_s1 + $0x44] ss:$8 sps:$4 sm:$0xff]   ;;  %v2308_v8 = vld [vmem:[%s3037_s1 + $0x40] ss:$8 sps:$4 sm:$0xff]  }
   0xe   : > { %620 = vmatprep.subr.bf16.mxu0 %v2278_v3  ;;  %v2314_v9 = vld [vmem:[%s3037_s1 + $0x34] ss:$8 sps:$4 sm:$0xff]   ;;  %v2319_v10 = vld [vmem:[%s3037_s1 + $0x30] ss:$8 sps:$4 sm:$0xff]   ;;  %s3066_s25 = smov (!%p269_p3, %s1824_s25), 1  ;;  %vm346_vm0 = vcmask 523264  }
   0xf   : > { %v2327_v11 = vld [vmem:[%s3037_s1 + $0x134] ss:$8 sps:$4 sm:$0xff]   ;;  %v2332_v12 = vld [vmem:[%s3037_s1 + $0x130] ss:$8 sps:$4 sm:$0xff]   ;;  %v2338_v13 = vld [vmem:[%s3037_s1 + $0x24] ss:$8 sps:$4 sm:$0xff]  }
  0x10   : > { %667 = vmatprep.subr.bf16.mxu1 %v2327_v11  ;;  %v2345_v14 = vld [vmem:[%s3037_s1 + $0x124] ss:$8 sps:$4 sm:$0xff]   ;;  %v2350_v15 = vld [vmem:[%s3037_s1 + $0x120] ss:$8 sps:$4 sm:$0xff]   ;;  %s2012_s12 = smul.u32 96, %s3066_s25  ;;  %s1971_s20 = sshll.u32 %s3066_s25, 6 }
  0x11   : > { %621 = vmatpush1.bf16.msra.mxu0 %v2284_v4  ;;  %668 = vmatpush1.bf16.msra.mxu1 %v2332_v12  ;;  %v2357_v16 = vld [vmem:[%s3037_s1 + $0x20] ss:$8 sps:$4 sm:$0xff]   ;;  %v2362_v17 = vld [vmem:[%s3037_s1 + $0x14] ss:$8 sps:$4 sm:$0xff]   ;;  %v2375_v19 = vld [vmem:[%s3037_s1 + $0x110] ss:$8 sps:$4 sm:$0xff]   ;;  %s3023_s26 = scalar_lea.vmem %s3043_s7, %s1971_s20 }
  0x12   : > { %622 = vmatprep.subr.bf16.mxu0 %v2290_v5  ;;  %669 = vmatprep.subr.bf16.mxu1 %v2345_v14  ;;  %v2369_v18 = vld [vmem:[%s3037_s1 + $0x114] ss:$8 sps:$4 sm:$0xff]   ;;  %s2380_s23 = scalar_lea.vmem %s3036_s0, %s2012_s12  ;;  %v2386_v20 = vld [vmem:[%s3037_s1 + $0x10] ss:$8 sps:$4 sm:$0xff]   ;;  %v2392_v21 = vld [vmem:[%s3037_s1 + $0x104] ss:$8 sps:$4 sm:$0xff]  }
  0x13   : > { %v2398_v22 = vld [vmem:[%s3037_s1 + $0x4] ss:$8 sps:$4 sm:$0xff]   ;;  %v2403_v23 = vld [vmem:[%s3037_s1 + $0x100] ss:$8 sps:$4 sm:$0xff]   ;;  %v2409_v25 = vld [vmem:[%s2380_s23 + $0x14] sm:$0xf] }
  0x14   : > { %v2406_v24 = vld [vmem:[%s2380_s23 + $0x8] sm:$0xf]  ;;  %v2413_v26 = vld [vmem:[%s2380_s23 + $0x20] sm:$0xf]  ;;  %v2416_v27 = vld [vmem:[%s2380_s23 + $0x2c] sm:$0xf]  ;;  %v301_v30 = vunpack.c.l.bf16 %v2409_v25 }
  0x15   : > { %623 = vmatpush1.bf16.msra.mxu0 %v2296_v6  ;;  %670 = vmatpush1.bf16.msra.mxu1 %v2350_v15  ;;  %3052 = vst [vmem:[#allocation2_spill] sm:$0xff] %v2413_v26  ;;  %3053 = vst [vmem:[#allocation3_spill] sm:$0xff] %v2416_v27  ;;  %v2419_v28 = vld [vmem:[%s2380_s23 + $0x38] sm:$0xf]  ;;  %v298_v29 = vunpack.c.l.bf16 %v2406_v24  ;;  %v2427_v31 = vld [vmem:[%s3037_s1] ss:$8 sps:$4 sm:$0xff]   ;;  %v304_v33 = vunpack.c.l.bf16 %v2413_v26  ;;  %v307_v34 = vunpack.c.l.bf16 %v2416_v27 }
  0x16   : > { %624 = vmatprep.subr.bf16.mxu0 %v2302_v7  ;;  %671 = vmatprep.subr.bf16.mxu1 %v2369_v18  ;;  %3054 = vst [vmem:[#allocation4_spill] sm:$0xff] %v2419_v28  ;;  %v2431_v32 = vld [vmem:[%s2380_s23 + $0x44] sm:$0xf]  ;;  %v2439_v35 = vld [vmem:[%s3037_s1 + $0xf4] ss:$8 sps:$4 sm:$0xff]   ;;  %v310_v38 = vunpack.c.l.bf16 %v2419_v28  ;;  %v348_v39 = vsel %vm346_vm0, %v301_v30, 0.0 }
  0x17   : > { %3055 = vst [vmem:[#allocation5_spill] sm:$0xff] %v2431_v32  ;;  %v347_v36 = vsel %vm346_vm0, %v298_v29, 0.0  ;;  %v2443_v37 = vld [vmem:[%s2380_s23 + $0x50] sm:$0xf]  ;;  %v350_v40 = vsel %vm346_vm0, %v304_v33, 0.0  ;;  %v313_v41 = vunpack.c.l.bf16 %v2431_v32  ;;  %v2451_v43 = vld [vmem:[%s2380_s23] sm:$0xff] }
  0x18   : > { %3056 = vst [vmem:[#allocation6_spill] sm:$0xff] %v2443_v37  ;;  %v349_v42 = vadd.f32 %v348_v39, %v347_v36  ;;  %v2454_v44 = vld [vmem:[%s2380_s23 + $0xc] sm:$0xff]  ;;  %v2457_v45 = vld [vmem:[%s2380_s23 + $0x18] sm:$0xff]  ;;  %v352_v48 = vsel %vm346_vm0, %v307_v34, 0.0  ;;  %v2472_v49 = vld [vmem:[%s2380_s23 + $0x24] sm:$0xff]  ;;  %v297_v50 = vunpack.c.h.bf16 %v2451_v43  ;;  %v316_v54 = vunpack.c.l.bf16 %v2443_v37 }
  0x19   : > { %625 = vmatpush1.bf16.msra.mxu0 %v2308_v8  ;;  %672 = vmatpush1.bf16.msra.mxu1 %v2375_v19  ;;  %v2463_v46 = vld [vmem:[%s3037_s1 + $0xf0] ss:$8 sps:$4 sm:$0xff]   ;;  %v2468_v47 = vld [vmem:[%s3037_s1 + $0xe4] ss:$8 sps:$4 sm:$0xff]   ;;  %v300_v51 = vunpack.c.h.bf16 %v2454_v44  ;;  %v303_v52 = vunpack.c.h.bf16 %v2457_v45  ;;  %v2479_v53 = vld [vmem:[%s2380_s23 + $0x5c] sm:$0xf]  ;;  %v296_v57 = vunpack.c.l.bf16 %v2451_v43  ;;  %v306_v59 = vunpack.c.h.bf16 %v2472_v49 }
  0x1a   : > { %626 = vmatprep.subr.bf16.mxu0 %v2314_v9  ;;  %673 = vmatprep.subr.bf16.mxu1 %v2392_v21  ;;  %3057 = vst [vmem:[#allocation7_spill] sm:$0xff] %v2479_v53  ;;  %v351_v55 = vadd.f32 %v350_v40, %v349_v42  ;;  %v2483_v56 = vld [vmem:[%s2380_s23 + $0x30] sm:$0xff]  ;;  %v354_v58 = vsel %vm346_vm0, %v310_v38, 0.0  ;;  %v299_v61 = vunpack.c.l.bf16 %v2454_v44  ;;  %v2493_v29 = vld [vmem:[%s2380_s23 + $0x3c] sm:$0xff]  ;;  %v302_v30 = vunpack.c.l.bf16 %v2457_v45 }
  0x1b   : > { %v333_v60 = vadd.f32 %v300_v51, %v297_v50  ;;  %v2084_v62 = vld [vmem:[%s3038_s2 + $0x74] ss:$8 sps:$4 sm:$0xff]   ;;  %v2500_v33 = vld [vmem:[%s3037_s1 + $0xe0] ss:$8 sps:$4 sm:$0xff]   ;;  %v319_v34 = vunpack.c.l.bf16 %v2479_v53  ;;  %v356_v36 = vsel %vm346_vm0, %v313_v41, 0.0  ;;  %v309_v38 = vunpack.c.h.bf16 %v2483_v56 }
  0x1c   : > { %v353_v63 = vadd.f32 %v352_v48, %v351_v55  ;;  %v2509_v40 = vld [vmem:[%s3037_s1 + $0xd4] ss:$8 sps:$4 sm:$0xff]   ;;  %v2512_v48 = vld [vmem:[%s2380_s23 + $0x48] sm:$0xff]  ;;  %v305_v50 = vunpack.c.l.bf16 %v2472_v49  ;;  %v320_v51 = vadd.f32 %v299_v61, %v296_v57  ;;  %v358_v55 = vsel %vm346_vm0, %v316_v54, 0.0 }
  0x1d   : > { %627 = vmatpush1.bf16.msra.mxu0 %v2319_v10  ;;  %674 = vmatpush1.bf16.msra.mxu1 %v2403_v23  ;;  %v334_v39 = vadd.f32 %v333_v60, %v303_v52  ;;  %v312_v41 = vunpack.c.h.bf16 %v2493_v29  ;;  %v2518_v60 = vld [vmem:[%s2380_s23 + $0x54] sm:$0xff]  ;;  %v360_v57 = vsel %vm346_vm0, %v319_v34, 0.0  ;;  %v315_v54 = vunpack.c.h.bf16 %v2512_v48 }
  0x1e   : > { %628 = vmatprep.subr.bf16.mxu0 %v2338_v13  ;;  %924 = vmatprep.subr.bf16.mxu1 %v2084_v62  ;;  %v355_v42 = vadd.f32 %v354_v58, %v353_v63  ;;  %v308_v62 = vunpack.c.l.bf16 %v2483_v56  ;;  %v321_v37 = vadd.f32 %v320_v51, %v302_v30  ;;  %v2525_v58 = vld [vmem:[%s3037_s1 + $0xd0] ss:$8 sps:$4 sm:$0xff]   ;;  %v311_v30 = vunpack.c.l.bf16 %v2493_v29 }
  0x1f   : > { %v335_v2 = vadd.f32 %v334_v39, %v306_v59  ;;  %v2533_v59 = vld [vmem:[%s3037_s1 + $0xc4] ss:$8 sps:$4 sm:$0xff]   ;;  %v318_v39 = vunpack.c.h.bf16 %v2518_v60  ;;  %v314_v34 = vunpack.c.l.bf16 %v2512_v48 }
  0x20   : > { %v357_v52 = vadd.f32 %v356_v36, %v355_v42  ;;  %v322_v36 = vadd.f32 %v321_v37, %v305_v50  ;;  %v2548_v37 = vld [vmem:[%s3037_s1 + $0xb4] ss:$8 sps:$4 sm:$0xff]  }
  0x21   : > { %629 = vmatpush1.bf16.msra.mxu0 %v2357_v16  ;;  %v336_v61 = vadd.f32 %v335_v2, %v309_v38  ;;  %v2542_v2 = vld [vmem:[%s3037_s1 + $0xc0] ss:$8 sps:$4 sm:$0xff]  }
  0x22   : > { %630 = vmatprep.subr.bf16.mxu0 %v2362_v17  ;;  %v359_v63 = vadd.f32 %v358_v55, %v357_v52  ;;  %v323_v53 = vadd.f32 %v322_v36, %v308_v62  ;;  %v317_v55 = vunpack.c.l.bf16 %v2518_v60 }
  0x23   : > { %v337_v42 = vadd.f32 %v336_v61, %v312_v41 }
  0x24   : > { %v361_v51 = vadd.f32 %v360_v57, %v359_v63  ;;  %v324_v41 = vadd.f32 %v323_v53, %v311_v30  ;;  %v2561_v63 = vld [vmem:[%s3037_s1 + $0xa4] ss:$8 sps:$4 sm:$0xff]   ;;  %v2566_v30 = vld [vmem:[%s3037_s1 + $0xa0] ss:$8 sps:$4 sm:$0xff]  }
  0x25   : > { %631 = vmatpush1.bf16.msra.mxu0 %v2386_v20  ;;  %v338_v38 = vadd.f32 %v337_v42, %v315_v54  ;;  %v2555_v54 = vld [vmem:[%s3037_s1 + $0xb0] ss:$8 sps:$4 sm:$0xff]   ;;  %v2571_v42 = vld [vmem:[%s3037_s1 + $0x94] ss:$8 sps:$4 sm:$0xff]  }
  0x26   : > { %632 = vmatprep.subr.bf16.mxu0 %v2398_v22  ;;  %v362_v50 = vrot.slane %v361_v51, 4  ;;  %v325_v57 = vadd.f32 %v324_v41, %v314_v34  ;;  %v2578_v41 = vld [vmem:[%s3037_s1 + $0x90] ss:$8 sps:$4 sm:$0xff]  }
  0x27   : > { %v339_v52 = vadd.f32 %v338_v38, %v318_v39 }
  0x28   : > { %v363_v62 = vadd.f32 %v362_v50, %v361_v51  ;;  %v326_v53 = vadd.f32 %v325_v57, %v317_v55 }
  0x29   : > { %633 = vmatpush1.bf16.msra.mxu0 %v2427_v31  ;;  %v340_v61 = vrot.slane %v339_v52, 4 }
  0x2a   : > { %634 = vmatprep.subr.bf16.mxu0 %v2439_v35  ;;  %v364_v36 = vrot.slane %v363_v62, 2  ;;  %v327_v34 = vrot.slane %v326_v53, 4 }
  0x2b   : > { %v341_v39 = vadd.f32 %v340_v61, %v339_v52  ;;  %v2583_v61 = vld [vmem:[%s3037_s1 + $0x84] ss:$8 sps:$4 sm:$0xff]  }
  0x2c   : > { %v365_v51 = vadd.f32 %v364_v36, %v363_v62  ;;  %v328_v55 = vadd.f32 %v327_v34, %v326_v53  ;;  %v2082_v53 = vld [vmem:[%s3038_s2 + $0x70] ss:$8 sps:$4 sm:$0xff]  }
  0x2d   : > { %635 = vmatpush2.bf16.msra.mxu0 %v2463_v46  ;;  %v342_v38 = vrot.slane %v341_v39, 2 }
  0x2e   : > { %636 = vmatprep.subr.bf16.mxu0 %v2468_v47  ;;  %v366_v50 = vrot.slane %v365_v51, 1  ;;  %v329_v62 = vrot.slane %v328_v55, 2 }
  0x2f   : > { %v343_v52 = vadd.f32 %v342_v38, %v341_v39  ;;  %v2087_v39 = vld [vmem:[%s3038_s2 + $0x64] ss:$8 sps:$4 sm:$0xff]  }
  0x30   : > { %v367_v57 = vadd.f32 %v366_v50, %v365_v51  ;;  %v330_v28 = vadd.f32 %v329_v62, %v328_v55  ;;  %v2596_v51 = vld [vmem:[%s3037_s1 + $0x80] ss:$8 sps:$4 sm:$0xff]   ;;  %v2090_v62 = vld [vmem:[%s3038_s2 + $0x54] ss:$8 sps:$4 sm:$0xff]  }
  0x31   : > { %637 = vmatpush2.bf16.msra.mxu0 %v2500_v33  ;;  %v344_v36 = vrot.slane %v343_v52, 1 }
  0x32   : > { %638 = vmatprep.subr.bf16.mxu0 %v2509_v40  ;;  %v371_v34 = vmul.f32 0.015625, %v367_v57  ;;  %v331_v32 = vrot.slane %v330_v28, 1  ;;  %v2085_v57 = vld [vmem:[%s3038_s2 + $0x60] ss:$8 sps:$4 sm:$0xff]  }
  0x33   : > { %v345_v38 = vadd.f32 %v344_v36, %v343_v52  ;;  %v2088_v36 = vld [vmem:[%s3038_s2 + $0x50] ss:$8 sps:$4 sm:$0xff]  }
  0x34   : > { %v374_v50 = vpack.c.bf16 %v371_v34, %v371_v34  ;;  %v332_v55 = vadd.f32 %v331_v32, %v330_v28  ;;  %v2093_v28 = vld [vmem:[%s3038_s2 + $0x44] ss:$8 sps:$4 sm:$0xff]   ;;  %v2118_v32 = vld [vmem:[%s3038_s2 + $0xb0] ss:$8 sps:$4 sm:$0xff]  }
  0x35   : > { %639 = vmatpush2.bf16.msra.mxu0 %v2525_v58  ;;  %v370_v26 = vmul.f32 0.015625, %v345_v38 }
  0x36   : > { %640 = vmatprep.subr.bf16.mxu0 %v2533_v59  ;;  %1872 = vmatmul.mubr.msk.bf16.vlgmr.msra.gmra.mxu1 %vm346_vm0, %v374_v50  ;;  %v369_v52 = vmul.f32 0.015625, %v332_v55 }
  0x37   : > { %v373_v27 = vpack.c.bf16 %v370_v26, %v370_v26  ;;  %925 = vmatpush1.bf16.msra.mxu1 %v2082_v53  ;;  %v2091_v26 = vld [vmem:[%s3038_s2 + $0x40] ss:$8 sps:$4 sm:$0xff]  }
  0x38   : > { %926 = vmatprep.subr.bf16.mxu1 %v2087_v39  ;;  %v372_v34 = vpack.c.bf16 %v369_v52, %v369_v52  ;;  %v714_v53 = vld [vmem:[%s3042_s6] sm:$0x3] }
  0x39   : > { %641 = vmatpush2.bf16.msra.mxu0 %v2542_v2  ;;  %650 = vmatprep.mubr.bf16.mxu0 %v373_v27  ;;  %v2096_v27 = vld [vmem:[%s3038_s2 + $0x34] ss:$8 sps:$4 sm:$0xff]  }
  0x3a   : > { %642 = vmatprep.subr.bf16.mxu0 %v2548_v37 }
  0x3b   : > { %927 = vmatpush1.bf16.msra.mxu1 %v2085_v57 }
  0x3c   : > { %928 = vmatprep.subr.bf16.mxu1 %v2090_v62 }
  0x3d   : > { %643 = vmatpush2.bf16.msra.mxu0 %v2555_v54 }
  0x3e   : > { %644 = vmatprep.subr.bf16.mxu0 %v2561_v63 }
  0x3f   : > { %929 = vmatpush1.bf16.msra.mxu1 %v2088_v36 }
  0x40   : > { %930 = vmatprep.subr.bf16.mxu1 %v2093_v28 }
  0x41   : > { %645 = vmatpush2.bf16.msra.mxu0 %v2566_v30 }
  0x42   : > { %646 = vmatprep.subr.bf16.mxu0 %v2571_v42 }
  0x43   : > { %931 = vmatpush1.bf16.msra.mxu1 %v2091_v26 }
  0x44   : > { %932 = vmatprep.subr.bf16.mxu1 %v2096_v27 }
  0x45   : > { %647 = vmatpush2.bf16.msra.mxu0 %v2578_v41 }
  0x46   : > { %648 = vmatprep.subr.bf16.mxu0 %v2583_v61 }
  0x49   : > { %649 = vmatpush2.bf16.msra.mxu0 %v2596_v51 }
  0x4a   : > { %1037 = vmatprep.subr.bf16.mxu0 %v2266_v0  ;;  %v2094_v0 = vld [vmem:[%s3038_s2 + $0x30] ss:$8 sps:$4 sm:$0xff]  }
  0x4b   : > { %933 = vmatpush1.bf16.msra.mxu1 %v2094_v0 }
  0x4c   : > { %651 = vmatmul.mubr.bf16.vlgmr.msra.gmra.mxu0 %v372_v34 }
  0x4d   : > { %1038 = vmatpush1.bf16.msra.mxu0 %v2271_v1  ;;  %v2099_v1 = vld [vmem:[%s3038_s2 + $0x24] ss:$8 sps:$4 sm:$0xff]  }
  0x4e   : > { %1039 = vmatprep.subr.bf16.mxu0 %v2278_v3  ;;  %v2097_v3 = vld [vmem:[%s3038_s2 + $0x20] ss:$8 sps:$4 sm:$0xff]   ;;  %934 = vmatprep.subr.bf16.mxu1 %v2099_v1 }
  0x4f   : > { %935 = vmatpush1.bf16.msra.mxu1 %v2097_v3 }
  0x51   : > { %1040 = vmatpush1.bf16.msra.mxu0 %v2284_v4  ;;  %v2102_v4 = vld [vmem:[%s3038_s2 + $0x14] ss:$8 sps:$4 sm:$0xff]  }
  0x52   : > { %1041 = vmatprep.subr.bf16.mxu0 %v2290_v5  ;;  %v2100_v5 = vld [vmem:[%s3038_s2 + $0x10] ss:$8 sps:$4 sm:$0xff]   ;;  %936 = vmatprep.subr.bf16.mxu1 %v2102_v4 }
  0x53   : > { %937 = vmatpush1.bf16.msra.mxu1 %v2100_v5  ;;  %v3058_v5 = vmov 0  }
  0x55   : > { %1042 = vmatpush1.bf16.msra.mxu0 %v2296_v6  ;;  %v2105_v6 = vld [vmem:[%s3038_s2 + $0x4] ss:$8 sps:$4 sm:$0xff]  }
  0x56   : > { %1043 = vmatprep.subr.bf16.mxu0 %v2302_v7  ;;  %v2103_v7 = vld [vmem:[%s3038_s2] ss:$8 sps:$4 sm:$0xff]   ;;  %938 = vmatprep.subr.bf16.mxu1 %v2105_v6  ;;  %v2144_v6 = vld [vmem:[%s3039_s3 + $0x74] ss:$8 sps:$4 sm:$0xff]  }
  0x57   : > { %939 = vmatpush1.bf16.msra.mxu1 %v2103_v7  ;;  %v1907_v7 = vcombine.low %v2406_v24, %v2409_v25  ;;  %v2148_v24 = vld [vmem:[%s3039_s3 + $0x50] ss:$8 sps:$4 sm:$0xff]   ;;  %v2153_v25 = vld [vmem:[%s3039_s3 + $0x44] ss:$8 sps:$4 sm:$0xff]  }
  0x59   : > { %1044 = vmatpush1.bf16.msra.mxu0 %v2308_v8  ;;  %v2108_v8 = vld [vmem:[%s3038_s2 + $0xf4] ss:$8 sps:$4 sm:$0xff]  }
  0x5a   : > { %1045 = vmatprep.subr.bf16.mxu0 %v2314_v9  ;;  %v2106_v9 = vld [vmem:[%s3038_s2 + $0xf0] ss:$8 sps:$4 sm:$0xff]   ;;  %940 = vmatprep.subr.bf16.mxu1 %v2108_v8  ;;  %v2151_v8 = vld [vmem:[%s3039_s3 + $0x40] ss:$8 sps:$4 sm:$0xff]  }
  0x5b   : > { %941 = vmatpush2.bf16.msra.mxu1 %v2106_v9  ;;  %v2156_v9 = vld [vmem:[%s3039_s3 + $0x34] ss:$8 sps:$4 sm:$0xff]  }
  0x5d   : > { %1046 = vmatpush1.bf16.msra.mxu0 %v2319_v10  ;;  %v2111_v10 = vld [vmem:[%s3038_s2 + $0xe4] ss:$8 sps:$4 sm:$0xff]  }
  0x5e   : > { %1047 = vmatprep.subr.bf16.mxu0 %v2338_v13  ;;  %v2109_v13 = vld [vmem:[%s3038_s2 + $0xe0] ss:$8 sps:$4 sm:$0xff]   ;;  %942 = vmatprep.subr.bf16.mxu1 %v2111_v10  ;;  %v3061_v10 = vld [vmem:[#allocation5_spill] sm:$0xff] }
  0x5f   : > { %943 = vmatpush2.bf16.msra.mxu1 %v2109_v13  ;;  %v3062_v13 = vld [vmem:[#allocation4_spill] sm:$0xff] }
  0x61   : > { %1048 = vmatpush1.bf16.msra.mxu0 %v2357_v16  ;;  %v2114_v16 = vld [vmem:[%s3038_s2 + $0xd4] ss:$8 sps:$4 sm:$0xff]  }
  0x62   : > { %1049 = vmatprep.subr.bf16.mxu0 %v2362_v17  ;;  %v2112_v17 = vld [vmem:[%s3038_s2 + $0xd0] ss:$8 sps:$4 sm:$0xff]   ;;  %944 = vmatprep.subr.bf16.mxu1 %v2114_v16  ;;  %v1913_v16 = vcombine.low %v3062_v13, %v3061_v10 }
  0x63   : > { %945 = vmatpush2.bf16.msra.mxu1 %v2112_v17  ;;  %v2154_v17 = vld [vmem:[%s3039_s3 + $0x30] ss:$8 sps:$4 sm:$0xff]  }
  0x65   : > { %1050 = vmatpush1.bf16.msra.mxu0 %v2386_v20  ;;  %v2117_v20 = vld [vmem:[%s3038_s2 + $0xc4] ss:$8 sps:$4 sm:$0xff]  }
  0x66   : > { %1051 = vmatprep.subr.bf16.mxu0 %v2398_v22  ;;  %v2115_v22 = vld [vmem:[%s3038_s2 + $0xc0] ss:$8 sps:$4 sm:$0xff]   ;;  %946 = vmatprep.subr.bf16.mxu1 %v2117_v20  ;;  %v2159_v20 = vld [vmem:[%s3039_s3 + $0x24] ss:$8 sps:$4 sm:$0xff]  }
  0x67   : > { %947 = vmatpush2.bf16.msra.mxu1 %v2115_v22  ;;  %v2157_v22 = vld [vmem:[%s3039_s3 + $0x20] ss:$8 sps:$4 sm:$0xff]  }
  0x69   : > { %1052 = vmatpush1.bf16.msra.mxu0 %v2427_v31  ;;  %v2120_v31 = vld [vmem:[%s3038_s2 + $0xb4] ss:$8 sps:$4 sm:$0xff]  }
  0x6a   : > { %1053 = vmatprep.subr.bf16.mxu0 %v2439_v35  ;;  %948 = vmatprep.subr.bf16.mxu1 %v2120_v31  ;;  %v2123_v35 = vld [vmem:[%s3038_s2 + $0xa4] ss:$8 sps:$4 sm:$0xff]   ;;  %v2162_v31 = vld [vmem:[%s3039_s3 + $0x14] ss:$8 sps:$4 sm:$0xff]  }
  0x6b   : > { %949 = vmatpush2.bf16.msra.mxu1 %v2118_v32  ;;  %v3063_v32 = vld [vmem:[#allocation7_spill] sm:$0xff] }
  0x6c   : > { %950 = vmatprep.subr.bf16.mxu1 %v2123_v35  ;;  %v3064_v35 = vld [vmem:[#allocation6_spill] sm:$0xff] }
  0x6d   : > { %1054 = vmatpush2.bf16.msra.mxu0 %v2463_v46  ;;  %v2121_v46 = vld [vmem:[%s3038_s2 + $0xa0] ss:$8 sps:$4 sm:$0xff]  }
  0x6e   : > { %1055 = vmatprep.subr.bf16.mxu0 %v2468_v47  ;;  %v2126_v47 = vld [vmem:[%s3038_s2 + $0x94] ss:$8 sps:$4 sm:$0xff]  }
  0x6f   : > { %951 = vmatpush2.bf16.msra.mxu1 %v2121_v46  ;;  %v1916_v46 = vcombine.low %v3064_v35, %v3063_v32 }
  0x70   : > { %952 = vmatprep.subr.bf16.mxu1 %v2126_v47  ;;  %v2160_v47 = vld [vmem:[%s3039_s3 + $0x10] ss:$8 sps:$4 sm:$0xff]  }
  0x71   : > { %1056 = vmatpush2.bf16.msra.mxu0 %v2500_v33  ;;  %v2124_v33 = vld [vmem:[%s3038_s2 + $0x90] ss:$8 sps:$4 sm:$0xff]  }
  0x72   : > { %1057 = vmatprep.subr.bf16.mxu0 %v2509_v40  ;;  %v2129_v40 = vld [vmem:[%s3038_s2 + $0x84] ss:$8 sps:$4 sm:$0xff]  }
  0x73   : > { %953 = vmatpush2.bf16.msra.mxu1 %v2124_v33  ;;  %v2165_v33 = vld [vmem:[%s3039_s3 + $0x4] ss:$8 sps:$4 sm:$0xff]  }
  0x74   : > { %954 = vmatprep.subr.bf16.mxu1 %v2129_v40  ;;  %v2163_v40 = vld [vmem:[%s3039_s3] ss:$8 sps:$4 sm:$0xff]  }
  0x75   : > { %1058 = vmatpush2.bf16.msra.mxu0 %v2525_v58  ;;  %v2127_v58 = vld [vmem:[%s3038_s2 + $0x80] ss:$8 sps:$4 sm:$0xff]  }
  0x76   : > { %1059 = vmatprep.subr.bf16.mxu0 %v2533_v59  ;;  %v1906_v59 = vcombine.high %v2451_v43, %v2454_v44 }
  0x77   : > { %955 = vmatpush2.bf16.msra.mxu1 %v2127_v58  ;;  %v2168_v58 = vld [vmem:[%s3039_s3 + $0xf4] ss:$8 sps:$4 sm:$0xff]  }
  0x78   : > { %1118 = vmatprep.subr.bf16.mxu1 %v2327_v11  ;;  %1069 = vmatprep.mubr.bf16.mxu0 %v1906_v59  ;;  %v1911_v11 = vcombine.low %v2483_v56, %v2493_v29  ;;  %v2166_v59 = vld [vmem:[%s3039_s3 + $0xf0] ss:$8 sps:$4 sm:$0xff]  }
  0x79   : > { %1060 = vmatpush2.bf16.msra.mxu0 %v2542_v2  ;;  %v1905_v2 = vcombine.low %v2451_v43, %v2454_v44  ;;  %v1915_v43 = vcombine.high %v2512_v48, %v2518_v60  ;;  %v1914_v44 = vcombine.low %v2512_v48, %v2518_v60 }
  0x7a   : > { %1061 = vmatprep.subr.bf16.mxu0 %v2548_v37  ;;  %v1909_v37 = vcombine.high %v2457_v45, %v2472_v49 }
  0x7d   : > { %1062 = vmatpush2.bf16.msra.mxu0 %v2555_v54  ;;  %v1908_v54 = vcombine.low %v2457_v45, %v2472_v49 }
  0x7e   : > { %1063 = vmatprep.subr.bf16.mxu0 %v2561_v63  ;;  %v1912_v63 = vcombine.high %v2483_v56, %v2493_v29  ;;  %v700_v56 = vld [vmem:[%s3041_s5] sm:$0x3] }
  0x81   : > { %1064 = vmatpush2.bf16.msra.mxu0 %v2566_v30  ;;  %v702_v30 = vlaneseq }
  0x82   : > { %1065 = vmatprep.subr.bf16.mxu0 %v2571_v42 }
  0x83   : > { %v703_v45 = vshrl.u32 %v702_v30, 7  ;;  %v2178_v30 = vld [vmem:[%s3039_s3 + $0xb0] ss:$8 sps:$4 sm:$0xff]  }
  0x85   : > { %1066 = vmatpush2.bf16.msra.mxu0 %v2578_v41  ;;  %v2738_v42 = vsub.s32 0, %v703_v45  ;;  %v708_v29 = vsub.s32 1, %v703_v45  ;;  %v2183_v45 = vld [vmem:[%s3039_s3 + $0xa4] ss:$8 sps:$4 sm:$0xff]  }
  0x86   : > { %1067 = vmatprep.subr.bf16.mxu0 %v2583_v61 }
  0x87   : > { %v2747_v48 = vrot.slane %v700_v56, %v2738_v42  ;;  %v2750_v38 = vrot.slane %v714_v53, %v2738_v42  ;;  %v2752_v50 = vrot.slane %v700_v56, %v708_v29  ;;  %v2755_v52 = vrot.slane %v714_v53, %v708_v29  ;;  %v2184_v56 = vld [vmem:[%s3039_s3 + $0x90] ss:$8 sps:$4 sm:$0xff]   ;;  %v2189_v29 = vld [vmem:[%s3039_s3 + $0x84] ss:$8 sps:$4 sm:$0xff]  }
  0x88   : > { %v2190_v53 = vld [vmem:[%s3040_s4 + $0x78] sm:$0xff]  }
  0x89   : > { %1068 = vmatpush2.bf16.msra.mxu0 %v2596_v51 }
  0x8a   : > { %1972 = vmatprep.subr.bf16.mxu0 %v2190_v53 }
  0x8c   : > { %1070 = vmatmul.mubr.bf16.vlgmr.msra.gmra.mxu0 %v1905_v2  ;;  %v2169_v2 = vld [vmem:[%s3039_s3 + $0xe0] ss:$8 sps:$4 sm:$0xff]  }
  0x8d   : > { %1079 = vmatprep.mubr.bf16.mxu0 %v1909_v37  ;;  %v2171_v37 = vld [vmem:[%s3039_s3 + $0xe4] ss:$8 sps:$4 sm:$0xff]  }
  0x94   : > { %1080 = vmatmul.mubr.bf16.gmra.mxu0 %v1908_v54  ;;  %v2174_v54 = vld [vmem:[%s3039_s3 + $0xd4] ss:$8 sps:$4 sm:$0xff]  }
  0x95   : > { %1089 = vmatprep.mubr.bf16.mxu0 %v1912_v63  ;;  %v2172_v63 = vld [vmem:[%s3039_s3 + $0xd0] ss:$8 sps:$4 sm:$0xff]  }
  0x9c   : > { %1090 = vmatmul.mubr.bf16.gmra.mxu0 %v1911_v11  ;;  %v2177_v11 = vld [vmem:[%s3039_s3 + $0xc4] ss:$8 sps:$4 sm:$0xff]  }
  0x9d   : > { %1099 = vmatprep.mubr.bf16.mxu0 %v1915_v43  ;;  %v2175_v43 = vld [vmem:[%s3039_s3 + $0xc0] ss:$8 sps:$4 sm:$0xff]  }
  0xa4   : > { %1100 = vmatmul.mubr.bf16.gmra.mxu0 %v1914_v44  ;;  %v2180_v44 = vld [vmem:[%s3039_s3 + $0xb4] ss:$8 sps:$4 sm:$0xff]  }
  0xf6   : > { %v693_v49 = vpop.f32.mrf.mxu1 }
  0xf8   : > { %v695_v41 = vpop.f32.mrf.mxu1 }
  0xfa   : > { %v697_v61 = vpop.f32.mrf.mxu1 }
  0xfb   : > { %v2187_v61 = vld [vmem:[%s3039_s3 + $0x80] ss:$8 sps:$4 sm:$0xff]  }
  0xfc   : > { %v698_v39 = vpop.f32.mrf.mxu1 }
  0xfd   : > { %v2192_v39 = vld [vmem:[%s3040_s4 + $0x70] sm:$0xff]  }
 0x10c   : > { %v652_v60 = vpop.f32.mrf.mxu0 }
 0x10d   : > { %v694_v51 = vadd.f32 %v693_v49, %v652_v60  ;;  %v2181_v49 = vld [vmem:[%s3039_s3 + $0xa0] ss:$8 sps:$4 sm:$0xff]   ;;  %v2191_v60 = vld [vmem:[%s3040_s4 + $0x38] sm:$0xff]  }
 0x10e   : > { %v654_v57 = vpop.f32.mrf.mxu0  ;;  %1973 = vmatpush3.bf16.msra.mxu0 %v2191_v60 }
 0x10f   : > { %v712_v55 = vmul.f32 %v2747_v48, %v694_v51  ;;  %v696_v62 = vadd.f32 %v695_v41, %v654_v57  ;;  %v2186_v41 = vld [vmem:[%s3039_s3 + $0x94] ss:$8 sps:$4 sm:$0xff]   ;;  %1974 = vmatprep.subr.bf16.mxu0 %v2192_v39  ;;  %v2194_v57 = vld [vmem:[%s3040_s4 + $0x68] sm:$0xff]  }
 0x110   : > { %v656_v36 = vpop.f32.mrf.mxu0  ;;  %v2193_v51 = vld [vmem:[%s3040_s4 + $0x30] sm:$0xff]  }
 0x111   : > { %v726_v34 = vadd.f32 %v2750_v38, %v712_v55  ;;  %v713_v28 = vmul.f32 %v2752_v50, %v696_v62  ;;  %v2195_v55 = vld [vmem:[%s3040_s4 + $0x28] sm:$0xff]   ;;  %v2196_v62 = vld [vmem:[%s3040_s4 + $0x60] sm:$0xff]  }
 0x112   : > { %v657_v26 = vpop.f32.mrf.mxu0  ;;  %1975 = vmatpush3.bf16.msra.mxu0 %v2193_v51  ;;  %v2197_v36 = vld [vmem:[%s3040_s4 + $0x20] sm:$0xff]  }
 0x113   : > { %v727_v27 = vadd.f32 %v2755_v52, %v713_v28  ;;  %v728_v0 = vmax.f32 %v726_v34, 0.0  ;;  %1976 = vmatprep.subr.bf16.mxu0 %v2194_v57 }
 0x115   : > { %v729_v1 = vmax.f32 %v727_v27, 0.0  ;;  %v730_v4 = vpack.c.bf16 %v728_v0, %v728_v0 }
 0x116   : > { %1977 = vmatpush3.bf16.msra.mxu0 %v2195_v55 }
 0x117   : > { %v731_v3 = vpack.c.bf16 %v729_v1, %v729_v1  ;;  %1978 = vmatprep.subr.bf16.mxu0 %v2196_v62 }
 0x119   : > { %956 = vmatprep.mubr.bf16.mxu1 %v731_v3 }
 0x11a   : > { %957 = vmatmul.mubr.bf16.vlgmr.msra.gmra.mxu1 %v730_v4  ;;  %1979 = vmatpush3.bf16.msra.mxu0 %v2197_v36 }
 0x11b   : > { %1119 = vmatpush1.bf16.msra.mxu1 %v2332_v12  ;;  %1142 = vmatprep.mubr.bf16.mxu1 %v3058_v5  ;;  %v2142_v12 = vld [vmem:[%s3039_s3 + $0x70] ss:$8 sps:$4 sm:$0xff]  }
 0x11c   : > { %1120 = vmatprep.subr.bf16.mxu1 %v2345_v14  ;;  %v2147_v14 = vld [vmem:[%s3039_s3 + $0x64] ss:$8 sps:$4 sm:$0xff]  }
 0x11f   : > { %1121 = vmatpush1.bf16.msra.mxu1 %v2350_v15  ;;  %v2145_v15 = vld [vmem:[%s3039_s3 + $0x60] ss:$8 sps:$4 sm:$0xff]  }
 0x120   : > { %1122 = vmatprep.subr.bf16.mxu1 %v2369_v18  ;;  %v2150_v18 = vld [vmem:[%s3039_s3 + $0x54] ss:$8 sps:$4 sm:$0xff]  }
 0x123   : > { %1123 = vmatpush1.bf16.msra.mxu1 %v2375_v19  ;;  %v3059_v19 = vld [vmem:[#allocation3_spill] sm:$0xff] }
 0x124   : > { %1124 = vmatprep.subr.bf16.mxu1 %v2392_v21  ;;  %v3060_v21 = vld [vmem:[#allocation2_spill] sm:$0xff] }
 0x127   : > { %1125 = vmatpush1.bf16.msra.mxu1 %v2403_v23  ;;  %v1910_v23 = vcombine.low %v3060_v21, %v3059_v19 }
 0x128   : > { %1439 = vmatprep.subr.bf16.mxu1 %v2144_v6 }
 0x12a   : > { %1917 = vmatmul.mubr.msk.bf16.vlgmr.msra.gmra.mxu1 %vm346_vm0, %v1907_v7 }
 0x12b   : > { %1152 = vmatprep.mubr.bf16.mxu1 %v3058_v5  ;;  %1440 = vmatpush1.bf16.msra.mxu1 %v2142_v12 }
 0x12c   : > { %1441 = vmatprep.subr.bf16.mxu1 %v2147_v14 }
 0x12f   : > { %1442 = vmatpush1.bf16.msra.mxu1 %v2145_v15 }
 0x130   : > { %1443 = vmatprep.subr.bf16.mxu1 %v2150_v18 }
 0x132   : > { %1918 = vmatmul.mubr.msk.bf16.gmra.mxu1 %vm346_vm0, %v1910_v23 }
 0x133   : > { %1162 = vmatprep.mubr.bf16.mxu1 %v3058_v5  ;;  %1444 = vmatpush1.bf16.msra.mxu1 %v2148_v24 }
 0x134   : > { %1445 = vmatprep.subr.bf16.mxu1 %v2153_v25 }
 0x137   : > { %1446 = vmatpush1.bf16.msra.mxu1 %v2151_v8 }
 0x138   : > { %1447 = vmatprep.subr.bf16.mxu1 %v2156_v9 }
 0x13a   : > { %1919 = vmatmul.mubr.msk.bf16.gmra.mxu1 %vm346_vm0, %v1913_v16 }
 0x13b   : > { %1172 = vmatprep.mubr.bf16.mxu1 %v3058_v5  ;;  %1448 = vmatpush1.bf16.msra.mxu1 %v2154_v17 }
 0x13c   : > { %1449 = vmatprep.subr.bf16.mxu1 %v2159_v20 }
 0x13f   : > { %1450 = vmatpush1.bf16.msra.mxu1 %v2157_v22 }
 0x140   : > { %1451 = vmatprep.subr.bf16.mxu1 %v2162_v31 }
 0x142   : > { %1920 = vmatmul.mubr.msk.bf16.gmra.mxu1 %vm346_vm0, %v1916_v46 }
 0x143   : > { %1452 = vmatpush1.bf16.msra.mxu1 %v2160_v47 }
 0x144   : > { %1453 = vmatprep.subr.bf16.mxu1 %v2165_v33 }
 0x147   : > { %1454 = vmatpush1.bf16.msra.mxu1 %v2163_v40 }
 0x148   : > { %1455 = vmatprep.subr.bf16.mxu1 %v2168_v58 }
 0x14b   : > { %1456 = vmatpush2.bf16.msra.mxu1 %v2166_v59 }
 0x14c   : > { %1457 = vmatprep.subr.bf16.mxu1 %v2171_v37  ;;  %v1071_v34 = vpop.f32.mrf.mxu0 }
 0x14e   : > { %v1073_v28 = vpop.f32.mrf.mxu0 }
 0x14f   : > { %1458 = vmatpush2.bf16.msra.mxu1 %v2169_v2 }
 0x150   : > { %1459 = vmatprep.subr.bf16.mxu1 %v2174_v54  ;;  %v1075_v26 = vpop.f32.mrf.mxu0 }
 0x152   : > { %v1077_v27 = vpop.f32.mrf.mxu0 }
 0x153   : > { %1460 = vmatpush2.bf16.msra.mxu1 %v2172_v63 }
 0x154   : > { %1461 = vmatprep.subr.bf16.mxu1 %v2177_v11  ;;  %v1081_v3 = vpop.f32.mrf.mxu0 }
 0x156   : > { %v1083_v6 = vpop.f32.mrf.mxu0 }
 0x157   : > { %1462 = vmatpush2.bf16.msra.mxu1 %v2175_v43 }
 0x158   : > { %1463 = vmatprep.subr.bf16.mxu1 %v2180_v44  ;;  %v1085_v7 = vpop.f32.mrf.mxu0 }
 0x15a   : > { %v1087_v12 = vpop.f32.mrf.mxu0 }
 0x15b   : > { %1464 = vmatpush2.bf16.msra.mxu1 %v2178_v30 }
 0x15c   : > { %1465 = vmatprep.subr.bf16.mxu1 %v2183_v45  ;;  %v1091_v19 = vpop.f32.mrf.mxu0 }
 0x15e   : > { %v1093_v10 = vpop.f32.mrf.mxu0 }
 0x15f   : > { %1466 = vmatpush2.bf16.msra.mxu1 %v2181_v49 }
 0x160   : > { %1467 = vmatprep.subr.bf16.mxu1 %v2186_v41  ;;  %v1095_v46 = vpop.f32.mrf.mxu0 }
 0x162   : > { %v1097_v44 = vpop.f32.mrf.mxu0 }
 0x163   : > { %1468 = vmatpush2.bf16.msra.mxu1 %v2184_v56 }
 0x164   : > { %1469 = vmatprep.subr.bf16.mxu1 %v2189_v29  ;;  %v1101_v39 = vpop.f32.mrf.mxu0 }
 0x167   : > { %1470 = vmatpush2.bf16.msra.mxu1 %v2187_v61 }
 0x1da   : > { %v2903_v0 = vpop.f32.mrf.mxu1 }
 0x1dc   : > { %v2905_v1 = vpop.f32.mrf.mxu1 }
 0x1de   : > { %v962_v4 = vpop.f32.mrf.mxu1 }
 0x1e0   : > { %v963_v5 = vpop.f32.mrf.mxu1 }
 0x1e1   : > { %v1103_v5 = vpop.f32.mrf.mxu0 }
 0x1ea   : > { %v1144_v14 = vpop.f32.mrf.mxu1 }
 0x1eb   : > { %v1145_v15 = vadd.f32 %v1144_v14, %v1071_v34 }
 0x1ec   : > { %v1146_v18 = vpop.f32.mrf.mxu1 }
 0x1ed   : > { %v1147_v21 = vadd.f32 %v1146_v18, %v1073_v28  ;;  %v1183_v8 = vmul.f32 %v1145_v15, %v2747_v48 }
 0x1ee   : > { %v1148_v23 = vpop.f32.mrf.mxu1 }
 0x1ef   : > { %v1184_v24 = vmul.f32 %v1147_v21, %v2752_v50  ;;  %v1149_v25 = vadd.f32 %v1148_v23, %v1075_v26  ;;  %v1199_v32 = vadd.f32 %v1183_v8, %v2750_v38  ;;  %v1105_v8 = vpop.f32.mrf.mxu0 }
 0x1f0   : > { %v1150_v9 = vpop.f32.mrf.mxu1 }
 0x1f1   : > { %v1185_v13 = vmul.f32 %v1149_v25, %v2747_v48  ;;  %v1151_v16 = vadd.f32 %v1150_v9, %v1077_v27  ;;  %v1200_v20 = vadd.f32 %v1184_v24, %v2755_v52  ;;  %v1215_v54 = vmax.f32 %v1199_v32, 0.0 }
 0x1f2   : > { %v1154_v17 = vpop.f32.mrf.mxu1 }
 0x1f3   : > { %v1201_v22 = vadd.f32 %v1185_v13, %v2750_v38  ;;  %v1186_v31 = vmul.f32 %v1151_v16, %v2752_v50  ;;  %v1155_v33 = vadd.f32 %v1154_v17, %v1081_v3  ;;  %v1216_v2 = vmax.f32 %v1200_v20, 0.0 }
 0x1f4   : > { %v1156_v35 = vpop.f32.mrf.mxu1 }
 0x1f5   : > { %v1202_v47 = vadd.f32 %v1186_v31, %v2755_v52  ;;  %v1157_v40 = vadd.f32 %v1156_v35, %v1083_v6  ;;  %v1217_v58 = vmax.f32 %v1201_v22, 0.0  ;;  %v1187_v30 = vmul.f32 %v1155_v33, %v2747_v48 }
 0x1f6   : > { %v1158_v59 = vpop.f32.mrf.mxu1 }
 0x1f7   : > { %v1218_v37 = vmax.f32 %v1202_v47, 0.0  ;;  %v1188_v63 = vmul.f32 %v1157_v40, %v2752_v50  ;;  %v1159_v11 = vadd.f32 %v1158_v59, %v1085_v7  ;;  %v1231_v41 = vpack.c.bf16 %v1217_v58, %v1215_v54  ;;  %v1107_v47 = vpop.f32.mrf.mxu0 }
 0x1f8   : > { %v1160_v43 = vpop.f32.mrf.mxu1  ;;  %v1203_v57 = vadd.f32 %v1187_v30, %v2750_v38 }
 0x1f9   : > { %v1161_v45 = vadd.f32 %v1160_v43, %v1087_v12  ;;  %v1232_v49 = vpack.c.bf16 %v1218_v37, %v1216_v2  ;;  %v1189_v56 = vmul.f32 %v1159_v11, %v2747_v48  ;;  %v1204_v53 = vadd.f32 %v1188_v63, %v2755_v52 }
 0x1fa   : > { %v1164_v29 = vpop.f32.mrf.mxu1  ;;  %v1219_v7 = vmax.f32 %v1203_v57, 0.0  ;;  %v2202_v57 = vld [vmem:[%s3040_s4 + $0x48] sm:$0xff]  }
 0x1fb   : > { %v1190_v61 = vmul.f32 %v1161_v45, %v2752_v50  ;;  %1471 = vmatprep.mubr.bf16.mxu1 %v1232_v49  ;;  %v1205_v60 = vadd.f32 %v1189_v56, %v2750_v38  ;;  %v1165_v62 = vadd.f32 %v1164_v29, %v1091_v19  ;;  %v1220_v3 = vmax.f32 %v1204_v53, 0.0  ;;  %v2198_v53 = vld [vmem:[%s3040_s4 + $0x58] sm:$0xff]  }
 0x1fc   : > { %v1166_v51 = vpop.f32.mrf.mxu1  ;;  %1472 = vmatmul.mubr.bf16.vlgmr.msra.gmra.mxu1 %v1231_v41  ;;  %1980 = vmatprep.subr.bf16.mxu0 %v2198_v53 }
 0x1fd   : > { %v1206_v55 = vadd.f32 %v1190_v61, %v2755_v52  ;;  %v1167_v36 = vadd.f32 %v1166_v51, %v1093_v10  ;;  %v1221_v28 = vmax.f32 %v1205_v60, 0.0  ;;  %v1191_v12 = vmul.f32 %v1165_v62, %v2747_v48  ;;  %v2199_v60 = vld [vmem:[%s3040_s4 + $0x18] sm:$0xff]   ;;  %v2201_v51 = vld [vmem:[%s3040_s4 + $0x10] sm:$0xff]   ;;  %v2204_v62 = vld [vmem:[%s3040_s4 + $0x40] sm:$0xff]  }
 0x1fe   : > { %v1168_v34 = vpop.f32.mrf.mxu1  ;;  %1981 = vmatpush3.bf16.msra.mxu0 %v2199_v60 }
 0x1ff   : > { %v1222_v26 = vmax.f32 %v1206_v55, 0.0  ;;  %v1169_v27 = vadd.f32 %v1168_v34, %v1095_v46  ;;  %v1192_v4 = vmul.f32 %v1167_v36, %v2752_v50  ;;  %v1233_v24 = vpack.c.bf16 %v1221_v28, %v1219_v7  ;;  %v2203_v55 = vld [vmem:[%s3040_s4 + $0x8] sm:$0xff]   ;;  %v2205_v36 = vld [vmem:[%s3040_s4] sm:$0xff]  }
 0x200   : > { %v1170_v6 = vpop.f32.mrf.mxu1  ;;  %v1207_v10 = vadd.f32 %v1191_v12, %v2750_v38  ;;  %v2965_v34 = vrot.slane %v2903_v0, %v2738_v42 }
 0x201   : > { %v1193_v14 = vmul.f32 %v1169_v27, %v2747_v48  ;;  %v1171_v15 = vadd.f32 %v1170_v6, %v1097_v44  ;;  %v1234_v21 = vpack.c.bf16 %v1222_v26, %v1220_v3  ;;  %v1208_v25 = vadd.f32 %v1192_v4, %v2755_v52 }
 0x202   : > { %v1174_v18 = vpop.f32.mrf.mxu1  ;;  %v1223_v40 = vmax.f32 %v1207_v10, 0.0  ;;  %v2969_v26 = vrot.slane %v2905_v1, %v2738_v42 }
 0x203   : > { %v1209_v19 = vadd.f32 %v1193_v14, %v2750_v38  ;;  %v1194_v23 = vmul.f32 %v1171_v15, %v2752_v50  ;;  %1481 = vmatprep.mubr.bf16.mxu1 %v1234_v21  ;;  %v1175_v16 = vadd.f32 %v1174_v18, %v1101_v39  ;;  %v1224_v46 = vmax.f32 %v1208_v25, 0.0  ;;  %v2200_v39 = vld [vmem:[%s3040_s4 + $0x50] sm:$0xff]  }
 0x204   : > { %v1176_v9 = vpop.f32.mrf.mxu1  ;;  %1482 = vmatmul.mubr.bf16.gmra.mxu1 %v1233_v24  ;;  %1982 = vmatprep.subr.bf16.mxu0 %v2200_v39 }
 0x205   : > { %v1210_v13 = vadd.f32 %v1194_v23, %v2755_v52  ;;  %v1177_v17 = vadd.f32 %v1176_v9, %v1103_v5  ;;  %v1225_v22 = vmax.f32 %v1209_v19, 0.0  ;;  %v1195_v58 = vmul.f32 %v1175_v16, %v2747_v48  ;;  %1983 = vmatpush3.bf16.msra.mxu0 %v2201_v51 }
 0x206   : > { %v1178_v20 = vpop.f32.mrf.mxu1  ;;  %1984 = vmatprep.subr.bf16.mxu0 %v2202_v57 }
 0x207   : > { %v1226_v31 = vmax.f32 %v1210_v13, 0.0  ;;  %v1196_v32 = vmul.f32 %v1177_v17, %v2752_v50  ;;  %v1179_v35 = vadd.f32 %v1178_v20, %v1105_v8  ;;  %v1235_v43 = vpack.c.bf16 %v1225_v22, %v1223_v40 }
 0x208   : > { %v1180_v33 = vpop.f32.mrf.mxu1  ;;  %v1211_v44 = vadd.f32 %v1195_v58, %v2750_v38 }
 0x209   : > { %v1197_v59 = vmul.f32 %v1179_v35, %v2747_v48  ;;  %v1181_v2 = vadd.f32 %v1180_v33, %v1107_v47  ;;  %v1236_v37 = vpack.c.bf16 %v1226_v31, %v1224_v46  ;;  %v1212_v54 = vadd.f32 %v1196_v32, %v2755_v52  ;;  %1985 = vmatpush3.bf16.msra.mxu0 %v2203_v55 }
 0x20a   : > { %v1227_v56 = vmax.f32 %v1211_v44, 0.0  ;;  %1986 = vmatprep.subr.bf16.mxu0 %v2204_v62 }
 0x20b   : > { %v1213_v63 = vadd.f32 %v1197_v59, %v2750_v38  ;;  %v1198_v11 = vmul.f32 %v1181_v2, %v2752_v50  ;;  %1491 = vmatprep.mubr.bf16.mxu1 %v1236_v37  ;;  %v1228_v45 = vmax.f32 %v1212_v54, 0.0 }
 0x20c   : > { %1492 = vmatmul.mubr.bf16.gmra.mxu1 %v1235_v43 }
 0x20d   : > { %v1214_v30 = vadd.f32 %v1198_v11, %v2755_v52  ;;  %v1229_v49 = vmax.f32 %v1213_v63, 0.0  ;;  %1987 = vmatpush3.bf16.msra.mxu0 %v2205_v36 }
 0x20f   : > { %v1230_v41 = vmax.f32 %v1214_v30, 0.0  ;;  %v1237_v61 = vpack.c.bf16 %v1229_v49, %v1227_v56 }
 0x211   : > { %v1238_v29 = vpack.c.bf16 %v1230_v41, %v1228_v45 }
 0x213   : > { %1501 = vmatprep.mubr.bf16.mxu1 %v1238_v29 }
 0x214   : > { %1502 = vmatmul.mubr.bf16.gmra.mxu1 %v1237_v61 }
 0x2bc   : > { %v1473_v28 = vpop.f32.mrf.mxu1 }
 0x2bd   : > { %v1474_v27 = vadd.f32 %v1473_v28, %v2965_v34 }
 0x2be   : > { %v1475_v3 = vpop.f32.mrf.mxu1 }
 0x2bf   : > { %v1476_v4 = vadd.f32 %v1475_v3, %v2969_v26  ;;  %v1512_v12 = vmul.f32 %v1474_v27, %v2747_v48 }
 0x2c0   : > { %v1477_v5 = vpop.f32.mrf.mxu1 }
 0x2c1   : > { %v1513_v6 = vmul.f32 %v1476_v4, %v2752_v50  ;;  %v1478_v7 = vadd.f32 %v1477_v5, %v2965_v34  ;;  %v1528_v19 = vadd.f32 %v1512_v12, %v2750_v38 }
 0x2c2   : > { %v1479_v14 = vpop.f32.mrf.mxu1 }
 0x2c3   : > { %v1514_v0 = vmul.f32 %v1478_v7, %v2747_v48  ;;  %v1480_v15 = vadd.f32 %v1479_v14, %v2969_v26  ;;  %v1529_v42 = vadd.f32 %v1513_v6, %v2755_v52  ;;  %v1544_v17 = vmax.f32 %v1528_v19, 0.0 }
 0x2c4   : > { %v1483_v21 = vpop.f32.mrf.mxu1 }
 0x2c5   : > { %v1530_v1 = vadd.f32 %v1514_v0, %v2750_v38  ;;  %v1515_v18 = vmul.f32 %v1480_v15, %v2752_v50  ;;  %v1484_v8 = vadd.f32 %v1483_v21, %v2965_v34  ;;  %v1545_v10 = vmax.f32 %v1529_v42, 0.0 }
 0x2c6   : > { %v1485_v24 = vpop.f32.mrf.mxu1 }
 0x2c7   : > { %v1531_v23 = vadd.f32 %v1515_v18, %v2755_v52  ;;  %v1546_v25 = vmax.f32 %v1530_v1, 0.0  ;;  %v1486_v9 = vadd.f32 %v1485_v24, %v2969_v26  ;;  %v1516_v46 = vmul.f32 %v1484_v8, %v2747_v48 }
 0x2c8   : > { %v1487_v16 = vpop.f32.mrf.mxu1 }
 0x2c9   : > { %v1547_v13 = vmax.f32 %v1531_v23, 0.0  ;;  %v1488_v20 = vadd.f32 %v1487_v16, %v2965_v34  ;;  %v1517_v22 = vmul.f32 %v1486_v9, %v2752_v50  ;;  %v1560_v35 = vpack.c.bf16 %v1546_v25, %v1544_v17 }
 0x2ca   : > { %v1489_v31 = vpop.f32.mrf.mxu1  ;;  %v1532_v54 = vadd.f32 %v1516_v46, %v2750_v38 }
 0x2cb   : > { %v1561_v32 = vpack.c.bf16 %v1547_v13, %v1545_v10  ;;  %v1518_v47 = vmul.f32 %v1488_v20, %v2747_v48  ;;  %v1490_v33 = vadd.f32 %v1489_v31, %v2969_v26  ;;  %v1533_v2 = vadd.f32 %v1517_v22, %v2755_v52 }
 0x2cc   : > { %v1493_v40 = vpop.f32.mrf.mxu1  ;;  %v1548_v61 = vmax.f32 %v1532_v54, 0.0 }
 0x2cd   : > { %1728 = vmatprep.mubr.bf16.mxu0 %v1561_v32  ;;  %v1534_v58 = vadd.f32 %v1518_v47, %v2750_v38  ;;  %v1519_v59 = vmul.f32 %v1490_v33, %v2752_v50  ;;  %v1494_v11 = vadd.f32 %v1493_v40, %v2965_v34  ;;  %v1549_v41 = vmax.f32 %v1533_v2, 0.0 }
 0x2ce   : > { %1729 = vmatmul.mubr.bf16.vlgmr.msra.gmra.mxu0 %v1560_v35  ;;  %v1495_v37 = vpop.f32.mrf.mxu1 }
 0x2cf   : > { %v1535_v63 = vadd.f32 %v1519_v59, %v2755_v52  ;;  %v1496_v43 = vadd.f32 %v1495_v37, %v2969_v26  ;;  %v1550_v30 = vmax.f32 %v1534_v58, 0.0  ;;  %v1520_v53 = vmul.f32 %v1494_v11, %v2747_v48 }
 0x2d0   : > { %v1497_v44 = vpop.f32.mrf.mxu1 }
 0x2d1   : > { %v1551_v45 = vmax.f32 %v1535_v63, 0.0  ;;  %v1498_v49 = vadd.f32 %v1497_v44, %v2965_v34  ;;  %v1521_v56 = vmul.f32 %v1496_v43, %v2752_v50  ;;  %v1562_v36 = vpack.c.bf16 %v1550_v30, %v1548_v61 }
 0x2d2   : > { %v1499_v29 = vpop.f32.mrf.mxu1  ;;  %v1536_v3 = vadd.f32 %v1520_v53, %v2750_v38 }
 0x2d3   : > { %v1522_v60 = vmul.f32 %v1498_v49, %v2747_v48  ;;  %v1500_v39 = vadd.f32 %v1499_v29, %v2969_v26  ;;  %v1563_v57 = vpack.c.bf16 %v1551_v45, %v1549_v41  ;;  %v1537_v28 = vadd.f32 %v1521_v56, %v2755_v52 }
 0x2d4   : > { %v1503_v51 = vpop.f32.mrf.mxu1  ;;  %v1552_v18 = vmax.f32 %v1536_v3, 0.0 }
 0x2d5   : > { %v1538_v55 = vadd.f32 %v1522_v60, %v2750_v38  ;;  %v1523_v62 = vmul.f32 %v1500_v39, %v2752_v50  ;;  %1736 = vmatprep.mubr.bf16.mxu0 %v1563_v57  ;;  %v1504_v5 = vadd.f32 %v1503_v51, %v2965_v34  ;;  %v1553_v42 = vmax.f32 %v1537_v28, 0.0 }
 0x2d6   : > { %v1505_v27 = vpop.f32.mrf.mxu1  ;;  %1737 = vmatmul.mubr.bf16.gmra.mxu0 %v1562_v36 }
 0x2d7   : > { %v1539_v4 = vadd.f32 %v1523_v62, %v2755_v52  ;;  %v1506_v6 = vadd.f32 %v1505_v27, %v2969_v26  ;;  %v1554_v12 = vmax.f32 %v1538_v55, 0.0  ;;  %v1524_v21 = vmul.f32 %v1504_v5, %v2747_v48 }
 0x2d8   : > { %v1507_v7 = vpop.f32.mrf.mxu1 }
 0x2d9   : > { %v1555_v14 = vmax.f32 %v1539_v4, 0.0  ;;  %v1525_v0 = vmul.f32 %v1506_v6, %v2752_v50  ;;  %v1508_v15 = vadd.f32 %v1507_v7, %v2965_v34  ;;  %v1564_v10 = vpack.c.bf16 %v1554_v12, %v1552_v18 }
 0x2da   : > { %v1509_v1 = vpop.f32.mrf.mxu1  ;;  %v1540_v34 = vadd.f32 %v1524_v21, %v2750_v38 }
 0x2db   : > { %v1526_v19 = vmul.f32 %v1508_v15, %v2747_v48  ;;  %v1510_v23 = vadd.f32 %v1509_v1, %v2969_v26  ;;  %v1565_v24 = vpack.c.bf16 %v1555_v14, %v1553_v42  ;;  %v1541_v25 = vadd.f32 %v1525_v0, %v2755_v52 }
 0x2dc   : > { %v1556_v20 = vmax.f32 %v1540_v34, 0.0 }
 0x2dd   : > { %v1542_v8 = vadd.f32 %v1526_v19, %v2750_v38  ;;  %v1527_v9 = vmul.f32 %v1510_v23, %v2752_v50  ;;  %1744 = vmatprep.mubr.bf16.mxu0 %v1565_v24  ;;  %v1557_v16 = vmax.f32 %v1541_v25, 0.0 }
 0x2de   : > { %1745 = vmatmul.mubr.bf16.gmra.mxu0 %v1564_v10 }
 0x2df   : > { %v1543_v13 = vadd.f32 %v1527_v9, %v2755_v52  ;;  %v1558_v17 = vmax.f32 %v1542_v8, 0.0 }
 0x2e1   : > { %v1559_v48 = vmax.f32 %v1543_v13, 0.0  ;;  %v1566_v22 = vpack.c.bf16 %v1558_v17, %v1556_v20 }
 0x2e3   : > { %v1567_v26 = vpack.c.bf16 %v1559_v48, %v1557_v16 }
 0x2e5   : > { %1752 = vmatprep.mubr.bf16.mxu0 %v1567_v26 }
 0x2e6   : > { %1753 = vmatmul.mubr.bf16.gmra.mxu0 %v1566_v22 }
 0x38e   : > { %v1988_v31 = vpop.f32.mrf.mxu0 }
 0x390   : > { %v1989_v38 = vpop.f32.mrf.mxu0 }
 0x391   : > { %v1990_v50 = vadd.f32 %v1989_v38, %v1988_v31 }
 0x392   : > { %v1991_v52 = vpop.f32.mrf.mxu0 }
 0x393   : > { %1761 = vst [vmem:[%s3023_s26] sm:$0xff] %v1990_v50 }
 0x394   : > { %v1992_v32 = vpop.f32.mrf.mxu0 }
 0x395   : > { %v1993_v35 = vadd.f32 %v1992_v32, %v1991_v52 }
 0x396   : > { %v1994_v46 = vpop.f32.mrf.mxu0 }
 0x397   : > { %1762 = vst [vmem:[%s3023_s26 + $0x8] sm:$0xff] %v1993_v35 }
 0x398   : > { %v1995_v47 = vpop.f32.mrf.mxu0 }
 0x399   : > { %v1996_v33 = vadd.f32 %v1995_v47, %v1994_v46 }
 0x39a   : > { %v1997_v40 = vpop.f32.mrf.mxu0 }
 0x39b   : > { %1763 = vst [vmem:[%s3023_s26 + $0x10] sm:$0xff] %v1996_v33 }
 0x39c   : > { %v1998_v58 = vpop.f32.mrf.mxu0 }
 0x39d   : > { %v1999_v59 = vadd.f32 %v1998_v58, %v1997_v40 }
 0x39e   : > { %v2000_v2 = vpop.f32.mrf.mxu0 }
 0x39f   : > { %1764 = vst [vmem:[%s3023_s26 + $0x18] sm:$0xff] %v1999_v59 }
 0x3a0   : > { %v2001_v37 = vpop.f32.mrf.mxu0 }
 0x3a1   : > { %v2002_v54 = vadd.f32 %v2001_v37, %v2000_v2 }
 0x3a2   : > { %v2003_v63 = vpop.f32.mrf.mxu0 }
 0x3a3   : > { %1765 = vst [vmem:[%s3023_s26 + $0x20] sm:$0xff] %v2002_v54 }
 0x3a4   : > { %v2004_v11 = vpop.f32.mrf.mxu0 }
 0x3a5   : > { %v2005_v43 = vadd.f32 %v2004_v11, %v2003_v63 }
 0x3a6   : > { %v2006_v44 = vpop.f32.mrf.mxu0 }
 0x3a7   : > { %1766 = vst [vmem:[%s3023_s26 + $0x28] sm:$0xff] %v2005_v43 }
 0x3a8   : > { %v2007_v30 = vpop.f32.mrf.mxu0 }
 0x3a9   : > { %v2008_v45 = vadd.f32 %v2007_v30, %v2006_v44 }
 0x3aa   : > { %v2009_v49 = vpop.f32.mrf.mxu0 }
 0x3ab   : > { %1767 = vst [vmem:[%s3023_s26 + $0x30] sm:$0xff] %v2008_v45 }
 0x3ac   : > { %v2010_v41 = vpop.f32.mrf.mxu0 }
 0x3ad   : > { %v2011_v56 = vadd.f32 %v2010_v41, %v2009_v49 }
 0x3af   : > { %1768 = vst [vmem:[%s3023_s26 + $0x38] sm:$0xff] %v2011_v56 }
 0x3b0 PF: > { %s17_s24 = sadd.s32 1, %s2212_s24  }
 0x3b1   : > { %p14_p4 = scmp.ge.s32.totalorder %s17_s24, 4  }
 0x3b3   :  { %16 = sbr.rel (!%p14_p4) target bundleno = 1 (0x1), region = 78 }

// kernel: mobilenetv2_decoder_forward.3
= control target key start
LH: loop header
LB: loop body
LE: loop exit
PB: predicated region body
PF: predicated region fallthrough
CT: control target
= control target key end

     0   :  { %8 = vsyncpa [#allocation3], 0  ;;  %s5972_s0 = inlined_call_operand.vmem [shape: f32[8,8,8], index: 0, kind: input, shape index: {}]   ;;  %s5973_s1 = inlined_call_operand.vmem [shape: f32[224,8], index: 1, kind: input, shape index: {}]   ;;  %s5974_s2 = inlined_call_operand.hbm [shape: f32[8,224], index: 2, kind: input, shape index: {}]   ;;  %s5975_s3 = inlined_call_operand.hbm [shape: f32[8,224,224], index: 3, kind: output, shape index: {}]  }
   0x1   :  { %9 = vsyncpa [#allocation4], 0 }
   0x2   :  { %11 = vsyncpa [#allocation4 + $0x1], 0  ;;  %s4816_s12 = smov 0   ;;  %s4818_s13 = smov 0  }
   0x3   :  { %s4820_s14 = smov 0   ;;  %s4822_s15 = smov 0  }
   0x4 LB: > { %s4837_s16 = sadd.s32 4294967295, %s4789_s15   ;;  %s3196_s17 = sadd.s32 4294967294, %s4789_s15   ;;  %s4789_s15 = sphi %s4822_s15, %s5988_s15   ;;  %s4785_s14 = sphi %s4820_s14, %s5987_s14   ;;  %s4781_s13 = sphi %s4818_s13, %s5986_s13   ;;  %s4777_s12 = sphi %s4816_s12, %s5985_s12  }
   0x5   : > { %s4841_s18 = sadd.s32 1, %s4789_s15   ;;  %s92_s19 = sadd.s32 1, %s4785_s14 }
   0x6   : > { %s89_s20 = ssub.s32 %s4789_s15, %s4841_s18  ;;  %p102_p0 = scmp.ne.s32.totalorder %s4785_s14, %s4781_s13 }
   0x7   : > { %p90_p1 = scmp.eq.s32.totalorder %s89_s20, 0  ;;  %p103_p2 = scmp.eq.s32.totalorder %s4837_s16, 1 }
   0x8   : > { %p108_p3 = scmp.ne.s32.totalorder %s4781_s13, %s4777_s12  ;;  %p109_p4 = scmp.eq.s32.totalorder %s3196_s17, 1 }
   0x9   : > { %s4852_s21 = scalar_select %p90_p1, %s4785_s14, %s92_s19  }
   0xa   : > { %p4854_p5 = por %p103_p2, %p102_p0  ;;  %p4858_p6 = por %p109_p4, %p108_p3 }
   0xb   : > { %p3197_p7 = scmp.ge.s32.totalorder %s4789_s15, 1  ;;  %p116_p8 = scmp.lt.s32.totalorder %s4789_s15, 3 }
   0xc   : > { %s5979_s23 = scalar_select %p4858_p6, 1, 0 }
   0xd   : > { %p3736_p9 = scmp.eq.s32.totalorder %s4837_s16, 0  ;;  %p4865_p10 = pnand %p3197_p7, %p116_p8 }
   0xe   : > { %s4791_s25 = smov [#allocation2]  }
   0xf   : > { %s132_s26 = sshll.u32 %s4791_s25, 4  ;;  %p3728_p11 = pneg %p4865_p10  ;;  %s133_s26 = int_to_ptr.vmem [resolvable:$true] %s132_s26 }
  0x10   : > { %s4710_s27 = scalar_lea.vmem %s133_s26, 256  ;;  %p4718_p3 = scmp.lt.s32.totalorder %s133_s26, %s133_s26 }
  0x11   : > { %p3729_p12 = pnand %p3736_p9, %p3728_p11  ;;  %p4711_p0 = scmp.ne.s32.totalorder %s133_s26, %s4710_s27 }
  0x12   : > { %p4719_p4 = scmp.lt.s32.totalorder %s4710_s27, %s4710_s27 }
  0x13   : > { %p4701_p13 = pneg %p3729_p12 }
  0x14   : > { %p4720_p6 = por %p4719_p4, %p4718_p3 }
  0x15   : > { %p4713_p1 = pnand %p4711_p0, %p4701_p13 }
  0x17   : > { %p4714_p2 = pneg %p4713_p1 }
  0x19   : > { %p4721_p7 = pnand %p4720_p6, %p4714_p2 }
  0x1b   : > { %4724 = shalt.err (!%p4721_p7)
}
  0x1c   : > { %3731 = dma.hbm_to_vmem [thread:$0]  (!%p3729_p12), %s5974_s2, 256, %s133_s26, [#allocation3]  }
  0x1d   : > { %154 = sbr.rel (%p4865_p10) target bundleno = 994 (0x3e2), region = 32 }
  0x22   : > { %4768 = dma.done.wait (%p3736_p9), [#allocation3], 256  }
  0x23   : > { %4770 = vsyncadd (%p3736_p9), [#allocation3], 4294967040  ;;  %s3202_s30 = sshll.u32 %s4837_s16, 2  ;;  %v5976_v0 = vmov 0.0   ;;  %v214_v1 = vld [vmem:[#allocation2 + $0x8] sm:$0xff]  ;;  %v213_v2 = vld [vmem:[#allocation2] sm:$0xff] }
  0x24   : > { %284 = vmatprep.mubr.f32.mxu1 %v5976_v0  ;;  %1070 = vmatprep.mubr.f32.mxu0 %v5976_v0  ;;  %p179_p6 = scmp.lt.s32.totalorder %s3202_s30, 7  ;;  %vm216_vm0 = vcmask 64512   ;;  %v185_v9 = vld [vmem:[%s5973_s1] sm:$0xff]  ;;  %v186_v10 = vld [vmem:[%s5973_s1 + $0x8] sm:$0xff]  ;;  %v187_v11 = vld [vmem:[%s5973_s1 + $0x10] sm:$0xff]  ;;  %vm945_vm1 = vcmask 785408  }
  0x25   : > { %250 = vmatprep.subr.mxu1 %v214_v1  ;;  %1036 = vmatprep.subr.mxu0 %v214_v1  ;;  %v188_v12 = vld [vmem:[%s5973_s1 + $0x18] sm:$0xff]  ;;  %v189_v13 = vld [vmem:[%s5973_s1 + $0x20] sm:$0xff]  ;;  %v190_v14 = vld [vmem:[%s5973_s1 + $0x28] sm:$0xff]  ;;  %s3721_s5 = smul.u32 28672, %s4837_s16  ;;  %s4793_s17 = smov [#allocation5]  }
  0x26   : > { %s5990_s30 = smov (!%p179_p6, %s3202_s30), 7  ;;  %251 = vmatpush1.msra.mxu1 %v213_v2  ;;  %1037 = vmatpush1.msra.mxu0 %v213_v2  ;;  %v191_v15 = vld [vmem:[%s5973_s1 + $0x30] sm:$0xff]  ;;  %v192_v16 = vld [vmem:[%s5973_s1 + $0x38] sm:$0xff]  ;;  %v193_v17 = vld [vmem:[%s5973_s1 + $0x40] sm:$0xff] }
  0x27   : > { %s3203_s4 = sshll.u32 %s5990_s30, 3  ;;  %v194_v18 = vld [vmem:[%s5973_s1 + $0x48] sm:$0xff]  ;;  %v195_v19 = vld [vmem:[%s5973_s1 + $0x50] sm:$0xff]  ;;  %v196_v20 = vld [vmem:[%s5973_s1 + $0x58] sm:$0xff]  ;;  %s5921_s10 = scalar_lea.hbm %s5975_s3, %s3721_s5 }
  0x28   : > { %s4888_s7 = scalar_lea.vmem %s5972_s0, %s3203_s4  ;;  %v197_v21 = vld [vmem:[%s5973_s1 + $0x60] sm:$0xff]  ;;  %v198_v22 = vld [vmem:[%s5973_s1 + $0x68] sm:$0xff]  ;;  %v199_v23 = vld [vmem:[%s5973_s1 + $0x70] sm:$0xff] }
  0x29   : > { %v215_v3 = vld [vmem:[%s4888_s7] sm:$0xff]  ;;  %v3289_v4 = vld [vmem:[%s4888_s7 + $0x8] sm:$0xff]  ;;  %v200_v24 = vld [vmem:[%s5973_s1 + $0x78] sm:$0xff] }
  0x2a   : > { %3204 = vmatmul.mubr.msk.f32.vlgmr.msra.gmra.mxu1 %vm216_vm0, %v215_v3  ;;  %3290 = vmatmul.mubr.msk.f32.vlgmr.msra.gmra.mxu0 %vm216_vm0, %v3289_v4  ;;  %v201_v25 = vld [vmem:[%s5973_s1 + $0x80] sm:$0xff]  ;;  %v202_v26 = vld [vmem:[%s5973_s1 + $0x88] sm:$0xff]  ;;  %v203_v27 = vld [vmem:[%s5973_s1 + $0x90] sm:$0xff] }
  0x2b   : > { %439 = vmatprep.mubr.f32.mxu1 %v5976_v0  ;;  %1141 = vmatprep.mubr.f32.mxu0 %v5976_v0  ;;  %v204_v28 = vld [vmem:[%s5973_s1 + $0x98] sm:$0xff]  ;;  %v205_v29 = vld [vmem:[%s5973_s1 + $0xa0] sm:$0xff]  ;;  %v206_v30 = vld [vmem:[%s5973_s1 + $0xa8] sm:$0xff] }
  0x2c   : > { %v207_v31 = vld [vmem:[%s5973_s1 + $0xb0] sm:$0xff]  ;;  %v208_v32 = vld [vmem:[%s5973_s1 + $0xb8] sm:$0xff]  ;;  %v209_v33 = vld [vmem:[%s5973_s1 + $0xc0] sm:$0xff] }
  0x2d   : > { %v210_v34 = vld [vmem:[%s5973_s1 + $0xc8] sm:$0xff]  ;;  %v211_v35 = vld [vmem:[%s5973_s1 + $0xd0] sm:$0xff]  ;;  %v212_v36 = vld [vmem:[%s5973_s1 + $0xd8] sm:$0xff] }
  0x2e   : > { %v3431_v37 = vld [vmem:[%s4888_s7 + $0x10] sm:$0xff]  ;;  %v3573_v38 = vld [vmem:[%s4888_s7 + $0x18] sm:$0xff]  ;;  %s175_s7 = sand.u32 1, %s4781_s13  }
  0x2f   : > { %s5119_s19 = smul.u32 1792, %s175_s7  ;;  %s5932_s16 = scalar_lea.sflag [#allocation4], %s175_s7 }
  0x31   : > { %s5139_s20 = scalar_lea.vmem [#allocation5], %s5119_s19  ;;  %s4729_s19 = sshll.u32 %s4793_s17, 4  ;;  %s4730_s19 = int_to_ptr.vmem [resolvable:$false] %s4729_s19 }
  0x32   : > { %s3122_s6 = sshll.u32 %s5139_s20, 4  ;;  %s4731_s24 = scalar_lea.vmem %s4730_s19, 57344  ;;  %s5923_s6 = int_to_ptr.vmem [resolvable:$true] %s3122_s6 }
  0x33   : > { %s4725_s11 = scalar_lea.vmem %s5923_s6, 28672  ;;  %p4732_p11 = scmp.lt.s32.totalorder %s5923_s6, %s4730_s19 }
  0x34   : > { %p4726_p8 = scmp.ne.s32.totalorder %s5923_s6, %s4725_s11  ;;  %p4733_p12 = scmp.lt.s32.totalorder %s4731_s24, %s4725_s11 }
  0x36   : > { %p4727_p9 = pnand %p4726_p8, %p4854_p5  ;;  %p4734_p13 = por %p4733_p12, %p4732_p11 }
  0x38   : > { %p4728_p10 = pneg %p4727_p9 }
  0x3a   : > { %p4735_p0 = pnand %p4734_p13, %p4728_p10 }
  0xea   : > { %v286_v5 = vpop.f32.mrf.mxu1  ;;  %v1072_v6 = vpop.f32.mrf.mxu0 }
  0xec   : > { %v288_v7 = vpop.f32.mrf.mxu1  ;;  %v1074_v8 = vpop.f32.mrf.mxu0 }
  0xed   : > { %405 = vmatprep.subr.mxu1 %v288_v7  ;;  %1107 = vmatprep.subr.mxu0 %v1074_v8 }
  0xee   : > { %406 = vmatpush1.msra.mxu1 %v286_v5  ;;  %1108 = vmatpush1.msra.mxu0 %v1072_v6 }
  0xef   : > { %3205 = vmatmul.mubr.msk.f32.vlgmr.msra.gmra.mxu1 %vm216_vm0, %v185_v9  ;;  %3291 = vmatmul.mubr.msk.f32.vlgmr.msra.gmra.mxu0 %vm216_vm0, %v185_v9 }
  0xf0   : > { %1738 = vmatprep.subr.mxu1 %v214_v1  ;;  %2440 = vmatprep.subr.mxu0 %v214_v1 }
  0xf1   : > { %445 = vmatprep.mubr.f32.mxu1 %v5976_v0  ;;  %1147 = vmatprep.mubr.f32.mxu0 %v5976_v0 }
  0xf2   : > { %1739 = vmatpush1.msra.mxu1 %v213_v2  ;;  %2441 = vmatpush1.msra.mxu0 %v213_v2 }
  0xf3   : > { %3206 = vmatmul.mubr.msk.f32.gmra.mxu1 %vm216_vm0, %v186_v10  ;;  %3292 = vmatmul.mubr.msk.f32.gmra.mxu0 %vm216_vm0, %v186_v10 }
  0xf4   : > { %451 = vmatprep.mubr.f32.mxu1 %v5976_v0  ;;  %1153 = vmatprep.mubr.f32.mxu0 %v5976_v0 }
  0xf7   : > { %3207 = vmatmul.mubr.msk.f32.gmra.mxu1 %vm216_vm0, %v187_v11  ;;  %3293 = vmatmul.mubr.msk.f32.gmra.mxu0 %vm216_vm0, %v187_v11 }
  0xf8   : > { %457 = vmatprep.mubr.f32.mxu1 %v5976_v0  ;;  %1159 = vmatprep.mubr.f32.mxu0 %v5976_v0 }
  0xfb   : > { %3208 = vmatmul.mubr.msk.f32.gmra.mxu1 %vm216_vm0, %v188_v12  ;;  %3294 = vmatmul.mubr.msk.f32.gmra.mxu0 %vm216_vm0, %v188_v12 }
  0xfc   : > { %463 = vmatprep.mubr.f32.mxu1 %v5976_v0  ;;  %1165 = vmatprep.mubr.f32.mxu0 %v5976_v0 }
  0xff   : > { %3209 = vmatmul.mubr.msk.f32.gmra.mxu1 %vm216_vm0, %v189_v13  ;;  %3295 = vmatmul.mubr.msk.f32.gmra.mxu0 %vm216_vm0, %v189_v13 }
 0x100   : > { %469 = vmatprep.mubr.f32.mxu1 %v5976_v0  ;;  %1171 = vmatprep.mubr.f32.mxu0 %v5976_v0 }
 0x103   : > { %3210 = vmatmul.mubr.msk.f32.gmra.mxu1 %vm216_vm0, %v190_v14  ;;  %3296 = vmatmul.mubr.msk.f32.gmra.mxu0 %vm216_vm0, %v190_v14 }
 0x104   : > { %475 = vmatprep.mubr.f32.mxu1 %v5976_v0  ;;  %1177 = vmatprep.mubr.f32.mxu0 %v5976_v0 }
 0x107   : > { %3211 = vmatmul.mubr.msk.f32.gmra.mxu1 %vm216_vm0, %v191_v15  ;;  %3297 = vmatmul.mubr.msk.f32.gmra.mxu0 %vm216_vm0, %v191_v15 }
 0x108   : > { %481 = vmatprep.mubr.f32.mxu1 %v5976_v0  ;;  %1183 = vmatprep.mubr.f32.mxu0 %v5976_v0 }
 0x10b   : > { %3212 = vmatmul.mubr.msk.f32.gmra.mxu1 %vm216_vm0, %v192_v16  ;;  %3298 = vmatmul.mubr.msk.f32.gmra.mxu0 %vm216_vm0, %v192_v16 }
 0x10c   : > { %487 = vmatprep.mubr.f32.mxu1 %v5976_v0  ;;  %1189 = vmatprep.mubr.f32.mxu0 %v5976_v0 }
 0x10f   : > { %3213 = vmatmul.mubr.msk.f32.gmra.mxu1 %vm216_vm0, %v193_v17  ;;  %3299 = vmatmul.mubr.msk.f32.gmra.mxu0 %vm216_vm0, %v193_v17 }
 0x110   : > { %493 = vmatprep.mubr.f32.mxu1 %v5976_v0  ;;  %1195 = vmatprep.mubr.f32.mxu0 %v5976_v0 }
 0x113   : > { %3214 = vmatmul.mubr.msk.f32.gmra.mxu1 %vm216_vm0, %v194_v18  ;;  %3300 = vmatmul.mubr.msk.f32.gmra.mxu0 %vm216_vm0, %v194_v18 }
 0x114   : > { %499 = vmatprep.mubr.f32.mxu1 %v5976_v0  ;;  %1201 = vmatprep.mubr.f32.mxu0 %v5976_v0 }
 0x117   : > { %3215 = vmatmul.mubr.msk.f32.gmra.mxu1 %vm216_vm0, %v195_v19  ;;  %3301 = vmatmul.mubr.msk.f32.gmra.mxu0 %vm216_vm0, %v195_v19 }
 0x118   : > { %505 = vmatprep.mubr.f32.mxu1 %v5976_v0  ;;  %1207 = vmatprep.mubr.f32.mxu0 %v5976_v0 }
 0x11b   : > { %3216 = vmatmul.mubr.msk.f32.gmra.mxu1 %vm216_vm0, %v196_v20  ;;  %3302 = vmatmul.mubr.msk.f32.gmra.mxu0 %vm216_vm0, %v196_v20 }
 0x11c   : > { %511 = vmatprep.mubr.f32.mxu1 %v5976_v0  ;;  %1213 = vmatprep.mubr.f32.mxu0 %v5976_v0 }
 0x11f   : > { %3217 = vmatmul.mubr.msk.f32.gmra.mxu1 %vm216_vm0, %v197_v21  ;;  %3303 = vmatmul.mubr.msk.f32.gmra.mxu0 %vm216_vm0, %v197_v21 }
 0x120   : > { %517 = vmatprep.mubr.f32.mxu1 %v5976_v0  ;;  %1219 = vmatprep.mubr.f32.mxu0 %v5976_v0 }
 0x123   : > { %3218 = vmatmul.mubr.msk.f32.gmra.mxu1 %vm216_vm0, %v198_v22  ;;  %3304 = vmatmul.mubr.msk.f32.gmra.mxu0 %vm216_vm0, %v198_v22 }
 0x124   : > { %523 = vmatprep.mubr.f32.mxu1 %v5976_v0  ;;  %1225 = vmatprep.mubr.f32.mxu0 %v5976_v0 }
 0x127   : > { %3219 = vmatmul.mubr.msk.f32.gmra.mxu1 %vm216_vm0, %v199_v23  ;;  %3305 = vmatmul.mubr.msk.f32.gmra.mxu0 %vm216_vm0, %v199_v23 }
 0x128   : > { %529 = vmatprep.mubr.f32.mxu1 %v5976_v0  ;;  %1231 = vmatprep.mubr.f32.mxu0 %v5976_v0 }
 0x12b   : > { %3220 = vmatmul.mubr.msk.f32.gmra.mxu1 %vm216_vm0, %v200_v24  ;;  %3306 = vmatmul.mubr.msk.f32.gmra.mxu0 %vm216_vm0, %v200_v24 }
 0x12c   : > { %535 = vmatprep.mubr.f32.mxu1 %v5976_v0  ;;  %1237 = vmatprep.mubr.f32.mxu0 %v5976_v0 }
 0x12f   : > { %3221 = vmatmul.mubr.msk.f32.gmra.mxu1 %vm216_vm0, %v201_v25  ;;  %3307 = vmatmul.mubr.msk.f32.gmra.mxu0 %vm216_vm0, %v201_v25 }
 0x130   : > { %541 = vmatprep.mubr.f32.mxu1 %v5976_v0  ;;  %1243 = vmatprep.mubr.f32.mxu0 %v5976_v0 }
 0x133   : > { %3222 = vmatmul.mubr.msk.f32.gmra.mxu1 %vm216_vm0, %v202_v26  ;;  %3308 = vmatmul.mubr.msk.f32.gmra.mxu0 %vm216_vm0, %v202_v26 }
 0x134   : > { %547 = vmatprep.mubr.f32.mxu1 %v5976_v0  ;;  %1249 = vmatprep.mubr.f32.mxu0 %v5976_v0 }
 0x137   : > { %3223 = vmatmul.mubr.msk.f32.gmra.mxu1 %vm216_vm0, %v203_v27  ;;  %3309 = vmatmul.mubr.msk.f32.gmra.mxu0 %vm216_vm0, %v203_v27 }
 0x138   : > { %553 = vmatprep.mubr.f32.mxu1 %v5976_v0  ;;  %1255 = vmatprep.mubr.f32.mxu0 %v5976_v0 }
 0x13b   : > { %3224 = vmatmul.mubr.msk.f32.gmra.mxu1 %vm216_vm0, %v204_v28  ;;  %3310 = vmatmul.mubr.msk.f32.gmra.mxu0 %vm216_vm0, %v204_v28 }
 0x13c   : > { %559 = vmatprep.mubr.f32.mxu1 %v5976_v0  ;;  %1261 = vmatprep.mubr.f32.mxu0 %v5976_v0 }
 0x13f   : > { %3225 = vmatmul.mubr.msk.f32.gmra.mxu1 %vm216_vm0, %v205_v29  ;;  %3311 = vmatmul.mubr.msk.f32.gmra.mxu0 %vm216_vm0, %v205_v29 }
 0x140   : > { %565 = vmatprep.mubr.f32.mxu1 %v5976_v0  ;;  %1267 = vmatprep.mubr.f32.mxu0 %v5976_v0 }
 0x143   : > { %3226 = vmatmul.mubr.msk.f32.gmra.mxu1 %vm216_vm0, %v206_v30  ;;  %3312 = vmatmul.mubr.msk.f32.gmra.mxu0 %vm216_vm0, %v206_v30 }
 0x144   : > { %571 = vmatprep.mubr.f32.mxu1 %v5976_v0  ;;  %1273 = vmatprep.mubr.f32.mxu0 %v5976_v0 }
 0x147   : > { %3227 = vmatmul.mubr.msk.f32.gmra.mxu1 %vm216_vm0, %v207_v31  ;;  %3313 = vmatmul.mubr.msk.f32.gmra.mxu0 %vm216_vm0, %v207_v31 }
 0x148   : > { %577 = vmatprep.mubr.f32.mxu1 %v5976_v0  ;;  %1279 = vmatprep.mubr.f32.mxu0 %v5976_v0 }
 0x14b   : > { %3228 = vmatmul.mubr.msk.f32.gmra.mxu1 %vm216_vm0, %v208_v32  ;;  %3314 = vmatmul.mubr.msk.f32.gmra.mxu0 %vm216_vm0, %v208_v32 }
 0x14c   : > { %583 = vmatprep.mubr.f32.mxu1 %v5976_v0  ;;  %1285 = vmatprep.mubr.f32.mxu0 %v5976_v0 }
 0x14f   : > { %3229 = vmatmul.mubr.msk.f32.gmra.mxu1 %vm216_vm0, %v209_v33  ;;  %3315 = vmatmul.mubr.msk.f32.gmra.mxu0 %vm216_vm0, %v209_v33 }
 0x150   : > { %589 = vmatprep.mubr.f32.mxu1 %v5976_v0  ;;  %1291 = vmatprep.mubr.f32.mxu0 %v5976_v0 }
 0x153   : > { %3230 = vmatmul.mubr.msk.f32.gmra.mxu1 %vm216_vm0, %v210_v34  ;;  %3316 = vmatmul.mubr.msk.f32.gmra.mxu0 %vm216_vm0, %v210_v34 }
 0x154   : > { %595 = vmatprep.mubr.f32.mxu1 %v5976_v0  ;;  %1297 = vmatprep.mubr.f32.mxu0 %v5976_v0 }
 0x157   : > { %3231 = vmatmul.mubr.msk.f32.gmra.mxu1 %vm216_vm0, %v211_v35  ;;  %3317 = vmatmul.mubr.msk.f32.gmra.mxu0 %vm216_vm0, %v211_v35 }
 0x158   : > { %601 = vmatprep.mubr.f32.mxu1 %v5976_v0  ;;  %1303 = vmatprep.mubr.f32.mxu0 %v5976_v0 }
 0x15b   : > { %3232 = vmatmul.mubr.msk.f32.gmra.mxu1 %vm216_vm0, %v212_v36  ;;  %3318 = vmatmul.mubr.msk.f32.gmra.mxu0 %vm216_vm0, %v212_v36 }
 0x15c   : > { %1772 = vmatprep.mubr.f32.mxu1 %v5976_v0  ;;  %2474 = vmatprep.mubr.f32.mxu0 %v5976_v0 }
 0x15f   : > { %3432 = vmatmul.mubr.msk.f32.vlgmr.msra.gmra.mxu1 %vm216_vm0, %v3431_v37  ;;  %3574 = vmatmul.mubr.msk.f32.vlgmr.msra.gmra.mxu0 %vm216_vm0, %v3573_v38 }
 0x160   : > { %1843 = vmatprep.mubr.f32.mxu1 %v5976_v0  ;;  %2545 = vmatprep.mubr.f32.mxu0 %v5976_v0 }
 0x1af   : > { %v441_v39 = vpop.f32.mrf.mxu1  ;;  %v1143_v40 = vpop.f32.mrf.mxu0 }
 0x1b0   : > { %v3233_v41 = vmul.f32 -1.442695, %v441_v39  ;;  %v3319_v42 = vmul.f32 -1.442695, %v1143_v40 }
 0x1b1   : > { %v443_v43 = vpop.f32.mrf.mxu1  ;;  %v1145_v44 = vpop.f32.mrf.mxu0 }
 0x1b2   : > { %3775 = vpow2.f32 %v3233_v41  ;;  %v3234_v45 = vmul.f32 -1.442695, %v443_v43  ;;  %v3320_v46 = vmul.f32 -1.442695, %v1145_v44 }
 0x1b3   : > { %3777 = vpow2.f32 %v3319_v42  ;;  %v447_v47 = vpop.f32.mrf.mxu1  ;;  %v1149_v48 = vpop.f32.mrf.mxu0 }
 0x1b4   : > { %3779 = vpow2.f32 %v3234_v45  ;;  %v3235_v49 = vmul.f32 -1.442695, %v447_v47  ;;  %v3321_v50 = vmul.f32 -1.442695, %v1149_v48 }
 0x1b5   : > { %3781 = vpow2.f32 %v3320_v46  ;;  %v449_v51 = vpop.f32.mrf.mxu1  ;;  %v1151_v52 = vpop.f32.mrf.mxu0 }
 0x1b6   : > { %3783 = vpow2.f32 %v3235_v49  ;;  %v3236_v53 = vmul.f32 -1.442695, %v449_v51  ;;  %v3322_v54 = vmul.f32 -1.442695, %v1151_v52 }
 0x1b7   : > { %3785 = vpow2.f32 %v3321_v50  ;;  %v453_v55 = vpop.f32.mrf.mxu1  ;;  %v1155_v56 = vpop.f32.mrf.mxu0 }
 0x1b8   : > { %3787 = vpow2.f32 %v3236_v53  ;;  %v3237_v57 = vmul.f32 -1.442695, %v453_v55  ;;  %v3323_v58 = vmul.f32 -1.442695, %v1155_v56 }
 0x1b9   : > { %3789 = vpow2.f32 %v3322_v54  ;;  %v455_v59 = vpop.f32.mrf.mxu1  ;;  %v1157_v60 = vpop.f32.mrf.mxu0 }
 0x1ba   : > { %3791 = vpow2.f32 %v3237_v57  ;;  %v3238_v61 = vmul.f32 -1.442695, %v455_v59  ;;  %v3324_v62 = vmul.f32 -1.442695, %v1157_v60 }
 0x1bb   : > { %3793 = vpow2.f32 %v3323_v58  ;;  %v459_v63 = vpop.f32.mrf.mxu1  ;;  %v1161_v1 = vpop.f32.mrf.mxu0 }
 0x1bc   : > { %3795 = vpow2.f32 %v3238_v61  ;;  %v3239_v2 = vmul.f32 -1.442695, %v459_v63  ;;  %v3325_v3 = vmul.f32 -1.442695, %v1161_v1 }
 0x1bd   : > { %3797 = vpow2.f32 %v3324_v62  ;;  %v461_v4 = vpop.f32.mrf.mxu1  ;;  %v1163_v5 = vpop.f32.mrf.mxu0 }
 0x1be   : > { %3799 = vpow2.f32 %v3239_v2  ;;  %v3240_v6 = vmul.f32 -1.442695, %v461_v4  ;;  %v3326_v7 = vmul.f32 -1.442695, %v1163_v5 }
 0x1bf   : > { %v3776_v8 = vpop.eup %3775  ;;  %3801 = vpow2.f32 %v3325_v3  ;;  %v465_v9 = vpop.f32.mrf.mxu1 }
 0x1c0   : > { %v5098_v10 = vpop.f32.mrf.mxu0  ;;  %v3778_v11 = vpop.eup %3777  ;;  %v776_v12 = vadd.f32 1.0, %v3776_v8  ;;  %3803 = vpow2.f32 %v3240_v6  ;;  %v3241_v55 = vmul.f32 -1.442695, %v465_v9 }
 0x1c1   : > { %v3780_v13 = vpop.eup %3779  ;;  %v1478_v14 = vadd.f32 1.0, %v3778_v11  ;;  %3805 = vpow2.f32 %v3326_v7  ;;  %v5100_v15 = vpop.f32.mrf.mxu1  ;;  %v3327_v58 = vmul.f32 -1.442695, %v5098_v10 }
 0x1c2   : > { %v5102_v16 = vpop.f32.mrf.mxu0  ;;  %v3782_v17 = vpop.eup %3781  ;;  %3807 = vrcp.f32 %v776_v12  ;;  %v777_v18 = vadd.f32 1.0, %v3780_v13  ;;  %v3242_v62 = vmul.f32 -1.442695, %v5100_v15 }
 0x1c3   : > { %v3784_v19 = vpop.eup %3783  ;;  %3809 = vrcp.f32 %v1478_v14  ;;  %v1479_v20 = vadd.f32 1.0, %v3782_v17  ;;  %v5104_v21 = vpop.f32.mrf.mxu1  ;;  %v3328_v1 = vmul.f32 -1.442695, %v5102_v16 }
 0x1c4   : > { %v5106_v22 = vpop.f32.mrf.mxu0  ;;  %v3786_v23 = vpop.eup %3785  ;;  %3811 = vrcp.f32 %v777_v18  ;;  %v778_v24 = vadd.f32 1.0, %v3784_v19  ;;  %v3243_v5 = vmul.f32 -1.442695, %v5104_v21 }
 0x1c5   : > { %v3788_v25 = vpop.eup %3787  ;;  %3813 = vrcp.f32 %v1479_v20  ;;  %v1480_v26 = vadd.f32 1.0, %v3786_v23  ;;  %v5108_v27 = vpop.f32.mrf.mxu1  ;;  %v3329_v7 = vmul.f32 -1.442695, %v5106_v22 }
 0x1c6   : > { %v5110_v28 = vpop.f32.mrf.mxu0  ;;  %v3790_v29 = vpop.eup %3789  ;;  %3815 = vrcp.f32 %v778_v24  ;;  %v779_v30 = vadd.f32 1.0, %v3788_v25  ;;  %v3244_v11 = vmul.f32 -1.442695, %v5108_v27 }
 0x1c7   : > { %v3792_v31 = vpop.eup %3791  ;;  %3817 = vrcp.f32 %v1480_v26  ;;  %v1481_v32 = vadd.f32 1.0, %v3790_v29  ;;  %v5113_v33 = vpop.f32.mrf.mxu1  ;;  %v3330_v13 = vmul.f32 -1.442695, %v5110_v28 }
 0x1c8   : > { %v5115_v34 = vpop.f32.mrf.mxu0  ;;  %v3794_v35 = vpop.eup %3793  ;;  %3819 = vrcp.f32 %v779_v30  ;;  %v780_v36 = vadd.f32 1.0, %v3792_v31  ;;  %v3245_v17 = vmul.f32 -1.442695, %v5113_v33 }
 0x1c9   : > { %v3796_v37 = vpop.eup %3795  ;;  %3821 = vrcp.f32 %v1481_v32  ;;  %v1482_v38 = vadd.f32 1.0, %v3794_v35  ;;  %v5121_v39 = vpop.f32.mrf.mxu1  ;;  %v3331_v19 = vmul.f32 -1.442695, %v5115_v34 }
 0x1ca   : > { %v5123_v40 = vpop.f32.mrf.mxu0  ;;  %v3798_v41 = vpop.eup %3797  ;;  %3823 = vrcp.f32 %v780_v36  ;;  %v781_v42 = vadd.f32 1.0, %v3796_v37  ;;  %v3246_v23 = vmul.f32 -1.442695, %v5121_v39 }
 0x1cb   : > { %v3800_v43 = vpop.eup %3799  ;;  %3825 = vrcp.f32 %v1482_v38  ;;  %v1483_v44 = vadd.f32 1.0, %v3798_v41  ;;  %v5125_v45 = vpop.f32.mrf.mxu1  ;;  %v3332_v25 = vmul.f32 -1.442695, %v5123_v40 }
 0x1cc   : > { %v5127_v46 = vpop.f32.mrf.mxu0  ;;  %v3802_v47 = vpop.eup %3801  ;;  %3827 = vrcp.f32 %v781_v42  ;;  %v782_v48 = vadd.f32 1.0, %v3800_v43  ;;  %v3247_v29 = vmul.f32 -1.442695, %v5125_v45 }
 0x1cd   : > { %v3804_v49 = vpop.eup %3803  ;;  %3829 = vrcp.f32 %v1483_v44  ;;  %v1484_v50 = vadd.f32 1.0, %v3802_v47  ;;  %v5129_v51 = vpop.f32.mrf.mxu1  ;;  %v3333_v31 = vmul.f32 -1.442695, %v5127_v46 }
 0x1ce   : > { %v5131_v52 = vpop.f32.mrf.mxu0  ;;  %v3806_v53 = vpop.eup %3805  ;;  %3831 = vrcp.f32 %v782_v48  ;;  %v783_v54 = vadd.f32 1.0, %v3804_v49  ;;  %v3248_v35 = vmul.f32 -1.442695, %v5129_v51 }
 0x1cf   : > { %v3808_v56 = vpop.eup %3807  ;;  %3833 = vrcp.f32 %v1484_v50  ;;  %v1485_v57 = vadd.f32 1.0, %v3806_v53  ;;  %v5134_v59 = vpop.f32.mrf.mxu1  ;;  %v3334_v37 = vmul.f32 -1.442695, %v5131_v52 }
 0x1d0   : > { %v5136_v60 = vpop.f32.mrf.mxu0  ;;  %v3810_v61 = vpop.eup %3809  ;;  %944 = vst [vmem:[%s5139_s20] sm:$0xff] %v3808_v56  ;;  %3835 = vrcp.f32 %v783_v54 }
 0x1d1   : > { %v3812_v63 = vpop.eup %3811  ;;  %3375 = vst [vmem:[%s5139_s20 + $0x1c0] sm:$0xff] %v3810_v61  ;;  %3837 = vrcp.f32 %v1485_v57  ;;  %v5145_v2 = vpop.f32.mrf.mxu1 }
 0x1d2   : > { %v5147_v3 = vpop.f32.mrf.mxu0  ;;  %v3814_v4 = vpop.eup %3813  ;;  %946 = vst.msk [vmem:[%s5139_s20 + $0x8] sm:$0xff] %vm945_vm1, %v3812_v63  ;;  %3839 = vpow2.f32 %v3241_v55 }
 0x1d3   : > { %v3816_v6 = vpop.eup %3815  ;;  %3376 = vst.msk [vmem:[%s5139_s20 + $0x1c8] sm:$0xff] %vm945_vm1, %v3814_v4  ;;  %3841 = vpow2.f32 %v3327_v58  ;;  %v5155_v8 = vpop.f32.mrf.mxu1 }
 0x1d4   : > { %v5157_v9 = vpop.f32.mrf.mxu0  ;;  %v3818_v10 = vpop.eup %3817  ;;  %947 = vst [vmem:[%s5139_s20 + $0x10] sm:$0xff] %v3816_v6  ;;  %3843 = vpow2.f32 %v3242_v62 }
 0x1d5   : > { %v3820_v12 = vpop.eup %3819  ;;  %3377 = vst [vmem:[%s5139_s20 + $0x1d0] sm:$0xff] %v3818_v10  ;;  %3845 = vpow2.f32 %v3328_v1  ;;  %v5163_v14 = vpop.f32.mrf.mxu1 }
 0x1d6   : > { %v5165_v15 = vpop.f32.mrf.mxu0  ;;  %v3822_v16 = vpop.eup %3821  ;;  %948 = vst.msk [vmem:[%s5139_s20 + $0x18] sm:$0xff] %vm945_vm1, %v3820_v12  ;;  %3847 = vpow2.f32 %v3243_v5 }
 0x1d7   : > { %v3824_v18 = vpop.eup %3823  ;;  %3378 = vst.msk [vmem:[%s5139_s20 + $0x1d8] sm:$0xff] %vm945_vm1, %v3822_v16  ;;  %3849 = vpow2.f32 %v3329_v7  ;;  %v5173_v20 = vpop.f32.mrf.mxu1 }
 0x1d8   : > { %v5175_v21 = vpop.f32.mrf.mxu0  ;;  %v3826_v22 = vpop.eup %3825  ;;  %949 = vst [vmem:[%s5139_s20 + $0x20] sm:$0xff] %v3824_v18  ;;  %3851 = vpow2.f32 %v3244_v11 }
 0x1d9   : > { %v3828_v24 = vpop.eup %3827  ;;  %3379 = vst [vmem:[%s5139_s20 + $0x1e0] sm:$0xff] %v3826_v22  ;;  %3853 = vpow2.f32 %v3330_v13  ;;  %v5181_v26 = vpop.f32.mrf.mxu1 }
 0x1da   : > { %v5183_v27 = vpop.f32.mrf.mxu0  ;;  %v3830_v28 = vpop.eup %3829  ;;  %950 = vst.msk [vmem:[%s5139_s20 + $0x28] sm:$0xff] %vm945_vm1, %v3828_v24  ;;  %3855 = vpow2.f32 %v3245_v17 }
 0x1db   : > { %v3832_v30 = vpop.eup %3831  ;;  %3380 = vst.msk [vmem:[%s5139_s20 + $0x1e8] sm:$0xff] %vm945_vm1, %v3830_v28  ;;  %3857 = vpow2.f32 %v3331_v19  ;;  %v5191_v32 = vpop.f32.mrf.mxu1 }
 0x1dc   : > { %v5193_v33 = vpop.f32.mrf.mxu0  ;;  %v3834_v34 = vpop.eup %3833  ;;  %951 = vst [vmem:[%s5139_s20 + $0x30] sm:$0xff] %v3832_v30  ;;  %3859 = vpow2.f32 %v3246_v23 }
 0x1dd   : > { %v3836_v36 = vpop.eup %3835  ;;  %3381 = vst [vmem:[%s5139_s20 + $0x1f0] sm:$0xff] %v3834_v34  ;;  %3861 = vpow2.f32 %v3332_v25  ;;  %v5199_v38 = vpop.f32.mrf.mxu1 }
 0x1de   : > { %v5201_v39 = vpop.f32.mrf.mxu0  ;;  %v3838_v40 = vpop.eup %3837  ;;  %952 = vst.msk [vmem:[%s5139_s20 + $0x38] sm:$0xff] %vm945_vm1, %v3836_v36  ;;  %3863 = vpow2.f32 %v3247_v29 }
 0x1df   : > { %v3840_v41 = vpop.eup %3839  ;;  %3382 = vst.msk [vmem:[%s5139_s20 + $0x1f8] sm:$0xff] %vm945_vm1, %v3838_v40  ;;  %3865 = vpow2.f32 %v3333_v31  ;;  %v5207_v42 = vpop.f32.mrf.mxu1 }
 0x1e0   : > { %v5209_v43 = vpop.f32.mrf.mxu0  ;;  %v3842_v44 = vpop.eup %3841  ;;  %v784_v45 = vadd.f32 1.0, %v3840_v41  ;;  %3867 = vpow2.f32 %v3248_v35  ;;  %v3249_v41 = vmul.f32 -1.442695, %v5134_v59  ;;  %v3336_v59 = vmul.f32 -1.442695, %v5147_v3 }
 0x1e1   : > { %v3844_v46 = vpop.eup %3843  ;;  %v1486_v47 = vadd.f32 1.0, %v3842_v44  ;;  %3869 = vpow2.f32 %v3334_v37  ;;  %v5211_v48 = vpop.f32.mrf.mxu1 }
 0x1e2   : > { %v5213_v49 = vpop.f32.mrf.mxu0  ;;  %v3846_v50 = vpop.eup %3845  ;;  %3871 = vrcp.f32 %v784_v45  ;;  %v785_v51 = vadd.f32 1.0, %v3844_v46  ;;  %v3335_v46 = vmul.f32 -1.442695, %v5136_v60 }
 0x1e3   : > { %v3848_v52 = vpop.eup %3847  ;;  %3873 = vrcp.f32 %v1486_v47  ;;  %v1487_v53 = vadd.f32 1.0, %v3846_v50  ;;  %v5215_v54 = vpop.f32.mrf.mxu1 }
 0x1e4   : > { %v5217_v55 = vpop.f32.mrf.mxu0  ;;  %v3850_v56 = vpop.eup %3849  ;;  %3875 = vrcp.f32 %v785_v51  ;;  %v786_v57 = vadd.f32 1.0, %v3848_v52  ;;  %v3250_v52 = vmul.f32 -1.442695, %v5145_v2  ;;  %v3337_v2 = vmul.f32 -1.442695, %v5157_v9 }
 0x1e5   : > { %v3852_v58 = vpop.eup %3851  ;;  %3877 = vrcp.f32 %v1487_v53  ;;  %v1488_v61 = vadd.f32 1.0, %v3850_v56  ;;  %v5219_v62 = vpop.f32.mrf.mxu1 }
 0x1e6   : > { %v5221_v63 = vpop.f32.mrf.mxu0  ;;  %v3854_v1 = vpop.eup %3853  ;;  %3879 = vrcp.f32 %v786_v57  ;;  %v787_v4 = vadd.f32 1.0, %v3852_v58  ;;  %v3251_v58 = vmul.f32 -1.442695, %v5155_v8  ;;  %v3338_v8 = vmul.f32 -1.442695, %v5165_v15 }
 0x1e7   : > { %v3856_v5 = vpop.eup %3855  ;;  %3881 = vrcp.f32 %v1488_v61  ;;  %v1489_v6 = vadd.f32 1.0, %v3854_v1  ;;  %v5223_v7 = vpop.f32.mrf.mxu1 }
 0x1e8   : > { %v5225_v10 = vpop.f32.mrf.mxu0  ;;  %v3858_v11 = vpop.eup %3857  ;;  %3883 = vrcp.f32 %v787_v4  ;;  %v788_v12 = vadd.f32 1.0, %v3856_v5  ;;  %v3252_v5 = vmul.f32 -1.442695, %v5163_v14  ;;  %v3339_v14 = vmul.f32 -1.442695, %v5175_v21 }
 0x1e9   : > { %v3860_v13 = vpop.eup %3859  ;;  %3885 = vrcp.f32 %v1489_v6  ;;  %v1490_v16 = vadd.f32 1.0, %v3858_v11  ;;  %v5227_v17 = vpop.f32.mrf.mxu1 }
 0x1ea   : > { %v5229_v18 = vpop.f32.mrf.mxu0  ;;  %v3862_v19 = vpop.eup %3861  ;;  %3887 = vrcp.f32 %v788_v12  ;;  %v789_v22 = vadd.f32 1.0, %v3860_v13  ;;  %v3253_v13 = vmul.f32 -1.442695, %v5173_v20  ;;  %v3340_v20 = vmul.f32 -1.442695, %v5183_v27 }
 0x1eb   : > { %v3864_v23 = vpop.eup %3863  ;;  %3889 = vrcp.f32 %v1490_v16  ;;  %v1491_v24 = vadd.f32 1.0, %v3862_v19  ;;  %v5231_v25 = vpop.f32.mrf.mxu1 }
 0x1ec   : > { %v5233_v28 = vpop.f32.mrf.mxu0  ;;  %v3866_v29 = vpop.eup %3865  ;;  %3891 = vrcp.f32 %v789_v22  ;;  %v790_v30 = vadd.f32 1.0, %v3864_v23  ;;  %v3254_v23 = vmul.f32 -1.442695, %v5181_v26  ;;  %v3341_v26 = vmul.f32 -1.442695, %v5193_v33 }
 0x1ed   : > { %v3868_v31 = vpop.eup %3867  ;;  %3893 = vrcp.f32 %v1491_v24  ;;  %v1492_v34 = vadd.f32 1.0, %v3866_v29  ;;  %v5235_v35 = vpop.f32.mrf.mxu1 }
 0x1ee   : > { %v5237_v36 = vpop.f32.mrf.mxu0  ;;  %v3870_v37 = vpop.eup %3869  ;;  %3895 = vrcp.f32 %v790_v30  ;;  %v791_v40 = vadd.f32 1.0, %v3868_v31  ;;  %v3255_v31 = vmul.f32 -1.442695, %v5191_v32  ;;  %v3342_v32 = vmul.f32 -1.442695, %v5201_v39 }
 0x1ef   : > { %v3872_v44 = vpop.eup %3871  ;;  %3897 = vrcp.f32 %v1492_v34  ;;  %v1493_v45 = vadd.f32 1.0, %v3870_v37  ;;  %v5241_v47 = vpop.f32.mrf.mxu1 }
 0x1f0   : > { %v5243_v50 = vpop.f32.mrf.mxu0  ;;  %v3874_v51 = vpop.eup %3873  ;;  %953 = vst [vmem:[%s5139_s20 + $0x40] sm:$0xff] %v3872_v44  ;;  %3899 = vrcp.f32 %v791_v40 }
 0x1f1   : > { %v3876_v53 = vpop.eup %3875  ;;  %3383 = vst [vmem:[%s5139_s20 + $0x200] sm:$0xff] %v3874_v51  ;;  %3901 = vrcp.f32 %v1493_v45  ;;  %v5249_v56 = vpop.f32.mrf.mxu1 }
 0x1f2   : > { %v5251_v57 = vpop.f32.mrf.mxu0  ;;  %v3878_v60 = vpop.eup %3877  ;;  %954 = vst.msk [vmem:[%s5139_s20 + $0x48] sm:$0xff] %vm945_vm1, %v3876_v53  ;;  %3903 = vpow2.f32 %v3249_v41  ;;  %v3256_v41 = vmul.f32 -1.442695, %v5199_v38 }
 0x1f3   : > { %v3880_v61 = vpop.eup %3879  ;;  %3384 = vst.msk [vmem:[%s5139_s20 + $0x208] sm:$0xff] %vm945_vm1, %v3878_v60  ;;  %3905 = vpow2.f32 %v3335_v46  ;;  %v5259_v1 = vpop.f32.mrf.mxu1 }
 0x1f4   : > { %v5261_v3 = vpop.f32.mrf.mxu0  ;;  %v3882_v4 = vpop.eup %3881  ;;  %955 = vst [vmem:[%s5139_s20 + $0x50] sm:$0xff] %v3880_v61  ;;  %3907 = vpow2.f32 %v3250_v52 }
 0x1f5   : > { %v3884_v6 = vpop.eup %3883  ;;  %3385 = vst [vmem:[%s5139_s20 + $0x210] sm:$0xff] %v3882_v4  ;;  %3909 = vpow2.f32 %v3336_v59  ;;  %v5267_v11 = vpop.f32.mrf.mxu1 }
 0x1f6   : > { %v5269_v12 = vpop.f32.mrf.mxu0  ;;  %v3886_v9 = vpop.eup %3885  ;;  %956 = vst.msk [vmem:[%s5139_s20 + $0x58] sm:$0xff] %vm945_vm1, %v3884_v6  ;;  %3911 = vpow2.f32 %v3251_v58 }
 0x1f7   : > { %v3888_v16 = vpop.eup %3887  ;;  %3386 = vst.msk [vmem:[%s5139_s20 + $0x218] sm:$0xff] %vm945_vm1, %v3886_v9  ;;  %3913 = vpow2.f32 %v3337_v2  ;;  %v5277_v19 = vpop.f32.mrf.mxu1 }
 0x1f8   : > { %v5279_v15 = vpop.f32.mrf.mxu0  ;;  %v3890_v22 = vpop.eup %3889  ;;  %957 = vst [vmem:[%s5139_s20 + $0x60] sm:$0xff] %v3888_v16  ;;  %3915 = vpow2.f32 %v3252_v5 }
 0x1f9   : > { %v3892_v24 = vpop.eup %3891  ;;  %3387 = vst [vmem:[%s5139_s20 + $0x220] sm:$0xff] %v3890_v22  ;;  %3917 = vpow2.f32 %v3338_v8  ;;  %v5285_v29 = vpop.f32.mrf.mxu1 }
 0x1fa   : > { %v5287_v30 = vpop.f32.mrf.mxu0  ;;  %v3894_v21 = vpop.eup %3893  ;;  %958 = vst.msk [vmem:[%s5139_s20 + $0x68] sm:$0xff] %vm945_vm1, %v3892_v24  ;;  %3919 = vpow2.f32 %v3253_v13 }
 0x1fb   : > { %v3896_v34 = vpop.eup %3895  ;;  %3388 = vst.msk [vmem:[%s5139_s20 + $0x228] sm:$0xff] %vm945_vm1, %v3894_v21  ;;  %3921 = vpow2.f32 %v3339_v14  ;;  %v5295_v37 = vpop.f32.mrf.mxu1 }
 0x1fc   : > { %v5297_v27 = vpop.f32.mrf.mxu0  ;;  %v3898_v40 = vpop.eup %3897  ;;  %959 = vst [vmem:[%s5139_s20 + $0x70] sm:$0xff] %v3896_v34  ;;  %3923 = vpow2.f32 %v3254_v23 }
 0x1fd   : > { %v3900_v44 = vpop.eup %3899  ;;  %3389 = vst [vmem:[%s5139_s20 + $0x230] sm:$0xff] %v3898_v40  ;;  %3925 = vpow2.f32 %v3340_v20  ;;  %v5303_v45 = vpop.f32.mrf.mxu1 }
 0x1fe   : > { %v5305_v46 = vpop.f32.mrf.mxu0  ;;  %v3902_v33 = vpop.eup %3901  ;;  %960 = vst.msk [vmem:[%s5139_s20 + $0x78] sm:$0xff] %vm945_vm1, %v3900_v44  ;;  %3927 = vpow2.f32 %v3255_v31 }
 0x1ff   : > { %v3904_v51 = vpop.eup %3903  ;;  %3390 = vst.msk [vmem:[%s5139_s20 + $0x238] sm:$0xff] %vm945_vm1, %v3902_v33  ;;  %3929 = vpow2.f32 %v3341_v26  ;;  %v5311_v52 = vpop.f32.mrf.mxu1 }
 0x200   : > { %v5313_v38 = vpop.f32.mrf.mxu0  ;;  %v3906_v53 = vpop.eup %3905  ;;  %v792_v59 = vadd.f32 1.0, %v3904_v51  ;;  %3931 = vpow2.f32 %v3256_v41 }
 0x201   : > { %v3908_v39 = vpop.eup %3907  ;;  %v1494_v60 = vadd.f32 1.0, %v3906_v53  ;;  %3933 = vpow2.f32 %v3342_v32  ;;  %v5315_v58 = vpop.f32.mrf.mxu1 }
 0x202   : > { %v5317_v61 = vpop.f32.mrf.mxu0  ;;  %v3910_v2 = vpop.eup %3909  ;;  %3935 = vrcp.f32 %v792_v59  ;;  %v793_v4 = vadd.f32 1.0, %v3908_v39 }
 0x203   : > { %v3912_v5 = vpop.eup %3911  ;;  %3937 = vrcp.f32 %v1494_v60  ;;  %v1495_v6 = vadd.f32 1.0, %v3910_v2  ;;  %v5319_v8 = vpop.f32.mrf.mxu1 }
 0x204   : > { %v5321_v9 = vpop.f32.mrf.mxu0  ;;  %v3914_v13 = vpop.eup %3913  ;;  %3939 = vrcp.f32 %v793_v4  ;;  %v794_v16 = vadd.f32 1.0, %v3912_v5 }
 0x205   : > { %v3916_v14 = vpop.eup %3915  ;;  %3941 = vrcp.f32 %v1495_v6  ;;  %v1496_v22 = vadd.f32 1.0, %v3914_v13  ;;  %v5323_v23 = vpop.f32.mrf.mxu1 }
 0x206   : > { %v5325_v24 = vpop.f32.mrf.mxu0  ;;  %v3918_v20 = vpop.eup %3917  ;;  %3943 = vrcp.f32 %v794_v16  ;;  %v795_v21 = vadd.f32 1.0, %v3916_v14 }
 0x207   : > { %v3920_v31 = vpop.eup %3919  ;;  %3945 = vrcp.f32 %v1496_v22  ;;  %v1497_v34 = vadd.f32 1.0, %v3918_v20  ;;  %v5327_v26 = vpop.f32.mrf.mxu1 }
 0x208   : > { %v5329_v40 = vpop.f32.mrf.mxu0  ;;  %v3922_v41 = vpop.eup %3921  ;;  %3947 = vrcp.f32 %v795_v21  ;;  %v796_v44 = vadd.f32 1.0, %v3920_v31 }
 0x209   : > { %v3924_v32 = vpop.eup %3923  ;;  %3949 = vrcp.f32 %v1497_v34  ;;  %v1498_v33 = vadd.f32 1.0, %v3922_v41  ;;  %v5331_v51 = vpop.f32.mrf.mxu1  ;;  %v3257_v34 = vmul.f32 -1.442695, %v5207_v42  ;;  %v3344_v42 = vmul.f32 -1.442695, %v5213_v49 }
 0x20a   : > { %v5333_v53 = vpop.f32.mrf.mxu0  ;;  %v3926_v59 = vpop.eup %3925  ;;  %3951 = vrcp.f32 %v796_v44  ;;  %v797_v39 = vadd.f32 1.0, %v3924_v32  ;;  %v3343_v32 = vmul.f32 -1.442695, %v5209_v43 }
 0x20b   : > { %v3928_v60 = vpop.eup %3927  ;;  %3953 = vrcp.f32 %v1498_v33  ;;  %v1499_v2 = vadd.f32 1.0, %v3926_v59  ;;  %v5335_v4 = vpop.f32.mrf.mxu1 }
 0x20c   : > { %v5337_v5 = vpop.f32.mrf.mxu0  ;;  %v3930_v6 = vpop.eup %3929  ;;  %3955 = vrcp.f32 %v797_v39  ;;  %v798_v13 = vadd.f32 1.0, %v3928_v60  ;;  %v3258_v60 = vmul.f32 -1.442695, %v5211_v48  ;;  %v3345_v48 = vmul.f32 -1.442695, %v5217_v55 }
 0x20d   : > { %v3932_v16 = vpop.eup %3931  ;;  %3957 = vrcp.f32 %v1499_v2  ;;  %v1500_v14 = vadd.f32 1.0, %v3930_v6  ;;  %v5339_v22 = vpop.f32.mrf.mxu1 }
 0x20e   : > { %v5341_v20 = vpop.f32.mrf.mxu0  ;;  %v3934_v21 = vpop.eup %3933  ;;  %3959 = vrcp.f32 %v798_v13  ;;  %v799_v31 = vadd.f32 1.0, %v3932_v16  ;;  %v3259_v16 = vmul.f32 -1.442695, %v5215_v54  ;;  %v3346_v54 = vmul.f32 -1.442695, %v5221_v63 }
 0x20f   : > { %v3936_v41 = vpop.eup %3935  ;;  %3961 = vrcp.f32 %v1500_v14  ;;  %v1501_v44 = vadd.f32 1.0, %v3934_v21  ;;  %v5345_v33 = vpop.f32.mrf.mxu1 }
 0x210   : > { %v5347_v59 = vpop.f32.mrf.mxu0  ;;  %v3938_v39 = vpop.eup %3937  ;;  %961 = vst [vmem:[%s5139_s20 + $0x80] sm:$0xff] %v3936_v41  ;;  %3963 = vrcp.f32 %v799_v31  ;;  %v3260_v41 = vmul.f32 -1.442695, %v5219_v62  ;;  %v3347_v62 = vmul.f32 -1.442695, %v5225_v10 }
 0x211   : > { %v3940_v2 = vpop.eup %3939  ;;  %3391 = vst [vmem:[%s5139_s20 + $0x240] sm:$0xff] %v3938_v39  ;;  %3965 = vrcp.f32 %v1501_v44  ;;  %v5353_v6 = vpop.f32.mrf.mxu1  ;;  %v3261_v39 = vmul.f32 -1.442695, %v5223_v7  ;;  %v3348_v7 = vmul.f32 -1.442695, %v5229_v18 }
 0x212   : > { %v5355_v13 = vpop.f32.mrf.mxu0  ;;  %v3942_v43 = vpop.eup %3941  ;;  %962 = vst.msk [vmem:[%s5139_s20 + $0x88] sm:$0xff] %vm945_vm1, %v3940_v2  ;;  %3967 = vpow2.f32 %v3257_v34 }
 0x213   : > { %v3944_v14 = vpop.eup %3943  ;;  %3392 = vst.msk [vmem:[%s5139_s20 + $0x248] sm:$0xff] %vm945_vm1, %v3942_v43  ;;  %3969 = vpow2.f32 %v3343_v32  ;;  %v5363_v21 = vpop.f32.mrf.mxu1  ;;  %v3262_v43 = vmul.f32 -1.442695, %v5227_v17  ;;  %v3349_v17 = vmul.f32 -1.442695, %v5233_v28 }
 0x214   : > { %v5365_v49 = vpop.f32.mrf.mxu0  ;;  %v3946_v31 = vpop.eup %3945  ;;  %963 = vst [vmem:[%s5139_s20 + $0x90] sm:$0xff] %v3944_v14  ;;  %3971 = vpow2.f32 %v3258_v60 }
 0x215   : > { %v3948_v34 = vpop.eup %3947  ;;  %3393 = vst [vmem:[%s5139_s20 + $0x250] sm:$0xff] %v3946_v31  ;;  %3973 = vpow2.f32 %v3344_v42  ;;  %v5371_v44 = vpop.f32.mrf.mxu1  ;;  %v3263_v31 = vmul.f32 -1.442695, %v5231_v25  ;;  %v3350_v25 = vmul.f32 -1.442695, %v5237_v36 }
 0x216   : > { %v5373_v32 = vpop.f32.mrf.mxu0  ;;  %v3950_v55 = vpop.eup %3949  ;;  %964 = vst.msk [vmem:[%s5139_s20 + $0x98] sm:$0xff] %vm945_vm1, %v3948_v34  ;;  %3975 = vpow2.f32 %v3259_v16 }
 0x217   : > { %v3952_v60 = vpop.eup %3951  ;;  %3394 = vst.msk [vmem:[%s5139_s20 + $0x258] sm:$0xff] %vm945_vm1, %v3950_v55  ;;  %3977 = vpow2.f32 %v3345_v48  ;;  %v5381_v2 = vpop.f32.mrf.mxu1  ;;  %v3264_v55 = vmul.f32 -1.442695, %v5235_v35 }
 0x218   : > { %v5383_v63 = vpop.f32.mrf.mxu0  ;;  %v3954_v42 = vpop.eup %3953  ;;  %965 = vst [vmem:[%s5139_s20 + $0xa0] sm:$0xff] %v3952_v60  ;;  %3979 = vpow2.f32 %v3260_v41 }
 0x219   : > { %v3956_v16 = vpop.eup %3955  ;;  %3395 = vst [vmem:[%s5139_s20 + $0x260] sm:$0xff] %v3954_v42  ;;  %3981 = vpow2.f32 %v3346_v54  ;;  %v5389_v14 = vpop.f32.mrf.mxu1 }
 0x21a   : > { %v5391_v48 = vpop.f32.mrf.mxu0  ;;  %v3958_v10 = vpop.eup %3957  ;;  %966 = vst.msk [vmem:[%s5139_s20 + $0xa8] sm:$0xff] %vm945_vm1, %v3956_v16  ;;  %3983 = vpow2.f32 %v3261_v39 }
 0x21b   : > { %v3960_v41 = vpop.eup %3959  ;;  %3396 = vst.msk [vmem:[%s5139_s20 + $0x268] sm:$0xff] %vm945_vm1, %v3958_v10  ;;  %3985 = vpow2.f32 %v3347_v62  ;;  %v5399_v34 = vpop.f32.mrf.mxu1 }
 0x21c   : > { %v5401_v18 = vpop.f32.mrf.mxu0  ;;  %v3962_v54 = vpop.eup %3961  ;;  %967 = vst [vmem:[%s5139_s20 + $0xb0] sm:$0xff] %v3960_v41  ;;  %3987 = vpow2.f32 %v3262_v43 }
 0x21d   : > { %v3964_v39 = vpop.eup %3963  ;;  %3397 = vst [vmem:[%s5139_s20 + $0x270] sm:$0xff] %v3962_v54  ;;  %3989 = vpow2.f32 %v3348_v7  ;;  %v5407_v60 = vpop.f32.mrf.mxu1 }
 0x21e   : > { %v5409_v62 = vpop.f32.mrf.mxu0  ;;  %v3966_v28 = vpop.eup %3965  ;;  %968 = vst.msk [vmem:[%s5139_s20 + $0xb8] sm:$0xff] %vm945_vm1, %v3964_v39  ;;  %3991 = vpow2.f32 %v3263_v31 }
 0x21f   : > { %5981 = vst [vmem:[#allocation8_spill] sm:$0xff] %v5409_v62  ;;  %v3968_v42 = vpop.eup %3967  ;;  %3398 = vst.msk [vmem:[%s5139_s20 + $0x278] sm:$0xff] %vm945_vm1, %v3966_v28  ;;  %3993 = vpow2.f32 %v3349_v17  ;;  %v1774_v43 = vpop.f32.mrf.mxu1 }
 0x220   : > { %v2476_v16 = vpop.f32.mrf.mxu0  ;;  %v3970_v35 = vpop.eup %3969  ;;  %v800_v10 = vadd.f32 1.0, %v3968_v42  ;;  %3995 = vpow2.f32 %v3264_v55  ;;  %v4671_v55 = vld [vmem:[%s5973_s1] sm:$0xff] }
 0x221   : > { %v3972_v7 = vpop.eup %3971  ;;  %v1502_v41 = vadd.f32 1.0, %v3970_v35  ;;  %3997 = vpow2.f32 %v3350_v25  ;;  %v1776_v36 = vpop.f32.mrf.mxu1  ;;  %v5982_v35 = vmov 0.0  }
 0x222   : > { %v2478_v54 = vpop.f32.mrf.mxu0  ;;  %v3974_v0 = vpop.eup %3973  ;;  %3999 = vrcp.f32 %v800_v10  ;;  %v801_v62 = vadd.f32 1.0, %v3972_v7  ;;  %1809 = vmatprep.subr.mxu1 %v1776_v36 }
 0x223   : > { %2511 = vmatprep.subr.mxu0 %v2478_v54  ;;  %v3976_v31 = vpop.eup %3975  ;;  %4001 = vrcp.f32 %v1502_v41  ;;  %v1503_v39 = vadd.f32 1.0, %v3974_v0  ;;  %1810 = vmatpush1.msra.mxu1 %v1774_v43  ;;  %v4672_v41 = vld [vmem:[%s5973_s1 + $0x8] sm:$0xff] }
 0x224   : > { %2512 = vmatpush1.msra.mxu0 %v2476_v16  ;;  %v3978_v17 = vpop.eup %3977  ;;  %4003 = vrcp.f32 %v801_v62  ;;  %v802_v28 = vadd.f32 1.0, %v3976_v31  ;;  %3433 = vmatmul.mubr.msk.f32.vlgmr.msra.gmra.mxu1 %vm216_vm0, %v4671_v55 }
 0x225   : > { %3575 = vmatmul.mubr.msk.f32.vlgmr.msra.gmra.mxu0 %vm216_vm0, %v4671_v55  ;;  %v3980_v25 = vpop.eup %3979  ;;  %4005 = vrcp.f32 %v1503_v39  ;;  %v1504_v42 = vadd.f32 1.0, %v3978_v17  ;;  %1849 = vmatprep.mubr.f32.mxu1 %v5982_v35 }
 0x226   : > { %2551 = vmatprep.mubr.f32.mxu0 %v5982_v35  ;;  %v3982_v0 = vpop.eup %3981  ;;  %4007 = vrcp.f32 %v802_v28  ;;  %v803_v43 = vadd.f32 1.0, %v3980_v25 }
 0x227   : > { %v3984_v62 = vpop.eup %3983  ;;  %4009 = vrcp.f32 %v1504_v42  ;;  %v1505_v16 = vadd.f32 1.0, %v3982_v0  ;;  %v4673_v42 = vld [vmem:[%s5973_s1 + $0x10] sm:$0xff] }
 0x228   : > { %v3986_v10 = vpop.eup %3985  ;;  %4011 = vrcp.f32 %v803_v43  ;;  %v804_v7 = vadd.f32 1.0, %v3984_v62  ;;  %3434 = vmatmul.mubr.msk.f32.gmra.mxu1 %vm216_vm0, %v4672_v41 }
 0x229   : > { %3576 = vmatmul.mubr.msk.f32.gmra.mxu0 %vm216_vm0, %v4672_v41  ;;  %v3988_v36 = vpop.eup %3987  ;;  %4013 = vrcp.f32 %v1505_v16  ;;  %v1506_v54 = vadd.f32 1.0, %v3986_v10  ;;  %1855 = vmatprep.mubr.f32.mxu1 %v5982_v35  ;;  %v3265_v10 = vmul.f32 -1.442695, %v5241_v47 }
 0x22a   : > { %2557 = vmatprep.mubr.f32.mxu0 %v5982_v35  ;;  %v3990_v31 = vpop.eup %3989  ;;  %4015 = vrcp.f32 %v804_v7  ;;  %v805_v39 = vadd.f32 1.0, %v3988_v36  ;;  %v3351_v36 = vmul.f32 -1.442695, %v5243_v50  ;;  %v3352_v50 = vmul.f32 -1.442695, %v5251_v57 }
 0x22b   : > { %v3992_v17 = vpop.eup %3991  ;;  %4017 = vrcp.f32 %v1506_v54  ;;  %v1507_v28 = vadd.f32 1.0, %v3990_v31  ;;  %v3266_v31 = vmul.f32 -1.442695, %v5249_v56  ;;  %v3267_v56 = vmul.f32 -1.442695, %v5259_v1 }
 0x22c   : > { %v3994_v55 = vpop.eup %3993  ;;  %4019 = vrcp.f32 %v805_v39  ;;  %v806_v25 = vadd.f32 1.0, %v3992_v17  ;;  %3435 = vmatmul.mubr.msk.f32.gmra.mxu1 %vm216_vm0, %v4673_v42  ;;  %v4674_v39 = vld [vmem:[%s5973_s1 + $0x18] sm:$0xff]  ;;  %v3268_v57 = vmul.f32 -1.442695, %v5267_v11  ;;  %v3269_v11 = vmul.f32 -1.442695, %v5277_v19 }
 0x22d   : > { %3577 = vmatmul.mubr.msk.f32.gmra.mxu0 %vm216_vm0, %v4673_v42  ;;  %v3996_v0 = vpop.eup %3995  ;;  %4021 = vrcp.f32 %v1507_v28  ;;  %v1508_v43 = vadd.f32 1.0, %v3994_v55  ;;  %1861 = vmatprep.mubr.f32.mxu1 %v5982_v35  ;;  %v3353_v55 = vmul.f32 -1.442695, %v5261_v3  ;;  %v4675_v42 = vld [vmem:[%s5973_s1 + $0x20] sm:$0xff]  ;;  %v3354_v3 = vmul.f32 -1.442695, %v5269_v12 }
 0x22e   : > { %2563 = vmatprep.mubr.f32.mxu0 %v5982_v35  ;;  %v3998_v62 = vpop.eup %3997  ;;  %4023 = vrcp.f32 %v806_v25  ;;  %v807_v16 = vadd.f32 1.0, %v3996_v0  ;;  %v3270_v12 = vmul.f32 -1.442695, %v5285_v29  ;;  %v3271_v29 = vmul.f32 -1.442695, %v5295_v37 }
 0x22f   : > { %v4000_v7 = vpop.eup %3999  ;;  %4025 = vrcp.f32 %v1508_v43  ;;  %v1509_v41 = vadd.f32 1.0, %v3998_v62  ;;  %v3355_v62 = vmul.f32 -1.442695, %v5279_v15  ;;  %v3356_v15 = vmul.f32 -1.442695, %v5287_v30 }
 0x230   : > { %v4002_v54 = vpop.eup %4001  ;;  %969 = vst [vmem:[%s5139_s20 + $0xc0] sm:$0xff] %v4000_v7  ;;  %4027 = vrcp.f32 %v807_v16  ;;  %3436 = vmatmul.mubr.msk.f32.gmra.mxu1 %vm216_vm0, %v4674_v39  ;;  %v3272_v30 = vmul.f32 -1.442695, %v5303_v45 }
 0x231   : > { %3578 = vmatmul.mubr.msk.f32.gmra.mxu0 %vm216_vm0, %v4674_v39  ;;  %v4004_v47 = vpop.eup %4003  ;;  %3399 = vst [vmem:[%s5139_s20 + $0x280] sm:$0xff] %v4002_v54  ;;  %4029 = vrcp.f32 %v1509_v41  ;;  %1867 = vmatprep.mubr.f32.mxu1 %v5982_v35  ;;  %v3358_v39 = vmul.f32 -1.442695, %v5305_v46 }
 0x232   : > { %2569 = vmatprep.mubr.f32.mxu0 %v5982_v35  ;;  %v4006_v17 = vpop.eup %4005  ;;  %970 = vst.msk [vmem:[%s5139_s20 + $0xc8] sm:$0xff] %vm945_vm1, %v4004_v47  ;;  %4031 = vpow2.f32 %v3265_v10  ;;  %v4676_v10 = vld [vmem:[%s5973_s1 + $0x28] sm:$0xff] }
 0x233   : > { %v4008_v28 = vpop.eup %4007  ;;  %3400 = vst.msk [vmem:[%s5139_s20 + $0x288] sm:$0xff] %vm945_vm1, %v4006_v17  ;;  %4033 = vpow2.f32 %v3351_v36  ;;  %v3357_v36 = vmul.f32 -1.442695, %v5297_v27  ;;  %v4678_v17 = vld [vmem:[%s5973_s1 + $0x38] sm:$0xff] }
 0x234   : > { %v4010_v25 = vpop.eup %4009  ;;  %971 = vst [vmem:[%s5139_s20 + $0xd0] sm:$0xff] %v4008_v28  ;;  %4035 = vpow2.f32 %v3266_v31  ;;  %3437 = vmatmul.mubr.msk.f32.gmra.mxu1 %vm216_vm0, %v4675_v42  ;;  %v4677_v31 = vld [vmem:[%s5973_s1 + $0x30] sm:$0xff] }
 0x235   : > { %3579 = vmatmul.mubr.msk.f32.gmra.mxu0 %vm216_vm0, %v4675_v42  ;;  %v4012_v1 = vpop.eup %4011  ;;  %3401 = vst [vmem:[%s5139_s20 + $0x290] sm:$0xff] %v4010_v25  ;;  %4037 = vpow2.f32 %v3352_v50  ;;  %1873 = vmatprep.mubr.f32.mxu1 %v5982_v35 }
 0x236   : > { %2575 = vmatprep.mubr.f32.mxu0 %v5982_v35  ;;  %v4014_v0 = vpop.eup %4013  ;;  %972 = vst.msk [vmem:[%s5139_s20 + $0xd8] sm:$0xff] %vm945_vm1, %v4012_v1  ;;  %4039 = vpow2.f32 %v3267_v56 }
 0x237   : > { %v4016_v43 = vpop.eup %4015  ;;  %3402 = vst.msk [vmem:[%s5139_s20 + $0x298] sm:$0xff] %vm945_vm1, %v4014_v0  ;;  %4041 = vpow2.f32 %v3353_v55 }
 0x238   : > { %v4018_v16 = vpop.eup %4017  ;;  %973 = vst [vmem:[%s5139_s20 + $0xe0] sm:$0xff] %v4016_v43  ;;  %4043 = vpow2.f32 %v3268_v57  ;;  %3438 = vmatmul.mubr.msk.f32.gmra.mxu1 %vm216_vm0, %v4676_v10 }
 0x239   : > { %3580 = vmatmul.mubr.msk.f32.gmra.mxu0 %vm216_vm0, %v4676_v10  ;;  %v4020_v19 = vpop.eup %4019  ;;  %3403 = vst [vmem:[%s5139_s20 + $0x2a0] sm:$0xff] %v4018_v16  ;;  %4045 = vpow2.f32 %v3354_v3  ;;  %1879 = vmatprep.mubr.f32.mxu1 %v5982_v35  ;;  %v4679_v3 = vld [vmem:[%s5973_s1 + $0x40] sm:$0xff] }
 0x23a   : > { %2581 = vmatprep.mubr.f32.mxu0 %v5982_v35  ;;  %v4022_v7 = vpop.eup %4021  ;;  %974 = vst.msk [vmem:[%s5139_s20 + $0xe8] sm:$0xff] %vm945_vm1, %v4020_v19  ;;  %4047 = vpow2.f32 %v3269_v11 }
 0x23b   : > { %v4024_v41 = vpop.eup %4023  ;;  %3404 = vst.msk [vmem:[%s5139_s20 + $0x2a8] sm:$0xff] %vm945_vm1, %v4022_v7  ;;  %4049 = vpow2.f32 %v3355_v62 }
 0x23c   : > { %v4026_v54 = vpop.eup %4025  ;;  %975 = vst [vmem:[%s5139_s20 + $0xf0] sm:$0xff] %v4024_v41  ;;  %4051 = vpow2.f32 %v3270_v12  ;;  %3439 = vmatmul.mubr.msk.f32.gmra.mxu1 %vm216_vm0, %v4677_v31 }
 0x23d   : > { %3581 = vmatmul.mubr.msk.f32.gmra.mxu0 %vm216_vm0, %v4677_v31  ;;  %v4028_v37 = vpop.eup %4027  ;;  %3405 = vst [vmem:[%s5139_s20 + $0x2b0] sm:$0xff] %v4026_v54  ;;  %4053 = vpow2.f32 %v3356_v15  ;;  %1885 = vmatprep.mubr.f32.mxu1 %v5982_v35  ;;  %v4680_v15 = vld [vmem:[%s5973_s1 + $0x48] sm:$0xff] }
 0x23e   : > { %2587 = vmatprep.mubr.f32.mxu0 %v5982_v35  ;;  %v4030_v27 = vpop.eup %4029  ;;  %976 = vst.msk [vmem:[%s5139_s20 + $0xf8] sm:$0xff] %vm945_vm1, %v4028_v37  ;;  %4055 = vpow2.f32 %v3271_v29 }
 0x23f   : > { %v4032_v45 = vpop.eup %4031  ;;  %3406 = vst.msk [vmem:[%s5139_s20 + $0x2b8] sm:$0xff] %vm945_vm1, %v4030_v27  ;;  %4057 = vpow2.f32 %v3357_v36 }
 0x240   : > { %v4034_v47 = vpop.eup %4033  ;;  %v808_v50 = vadd.f32 1.0, %v4032_v45  ;;  %4059 = vpow2.f32 %v3272_v30  ;;  %3440 = vmatmul.mubr.msk.f32.gmra.mxu1 %vm216_vm0, %v4678_v17 }
 0x241   : > { %3582 = vmatmul.mubr.msk.f32.gmra.mxu0 %vm216_vm0, %v4678_v17  ;;  %v4036_v46 = vpop.eup %4035  ;;  %v1510_v56 = vadd.f32 1.0, %v4034_v47  ;;  %4061 = vpow2.f32 %v3358_v39  ;;  %1891 = vmatprep.mubr.f32.mxu1 %v5982_v35  ;;  %v4681_v39 = vld [vmem:[%s5973_s1 + $0x50] sm:$0xff]  ;;  %v3273_v17 = vmul.f32 -1.442695, %v5311_v52 }
 0x242   : > { %2593 = vmatprep.mubr.f32.mxu0 %v5982_v35  ;;  %v4038_v28 = vpop.eup %4037  ;;  %4063 = vrcp.f32 %v808_v50  ;;  %v809_v55 = vadd.f32 1.0, %v4036_v46 }
 0x243   : > { %v4040_v25 = vpop.eup %4039  ;;  %4065 = vrcp.f32 %v1510_v56  ;;  %v1511_v57 = vadd.f32 1.0, %v4038_v28  ;;  %v3359_v28 = vmul.f32 -1.442695, %v5313_v38  ;;  %v3360_v38 = vmul.f32 -1.442695, %v5317_v61 }
 0x244   : > { %v4042_v42 = vpop.eup %4041  ;;  %4067 = vrcp.f32 %v809_v55  ;;  %v810_v1 = vadd.f32 1.0, %v4040_v25  ;;  %3441 = vmatmul.mubr.msk.f32.gmra.mxu1 %vm216_vm0, %v4679_v3  ;;  %v3274_v25 = vmul.f32 -1.442695, %v5315_v58  ;;  %v3275_v58 = vmul.f32 -1.442695, %v5319_v8 }
 0x245   : > { %3583 = vmatmul.mubr.msk.f32.gmra.mxu0 %vm216_vm0, %v4679_v3  ;;  %v4044_v0 = vpop.eup %4043  ;;  %4069 = vrcp.f32 %v1511_v57  ;;  %v1512_v11 = vadd.f32 1.0, %v4042_v42  ;;  %1897 = vmatprep.mubr.f32.mxu1 %v5982_v35  ;;  %v4682_v57 = vld [vmem:[%s5973_s1 + $0x58] sm:$0xff]  ;;  %v3361_v3 = vmul.f32 -1.442695, %v5321_v9  ;;  %v3276_v61 = vmul.f32 -1.442695, %v5323_v23 }
 0x246   : > { %2599 = vmatprep.mubr.f32.mxu0 %v5982_v35  ;;  %v4046_v43 = vpop.eup %4045  ;;  %4071 = vrcp.f32 %v810_v1  ;;  %v811_v62 = vadd.f32 1.0, %v4044_v0  ;;  %v3362_v9 = vmul.f32 -1.442695, %v5325_v24  ;;  %v3277_v23 = vmul.f32 -1.442695, %v5327_v26 }
 0x247   : > { %v4048_v16 = vpop.eup %4047  ;;  %4073 = vrcp.f32 %v1512_v11  ;;  %v1513_v12 = vadd.f32 1.0, %v4046_v43  ;;  %v4683_v11 = vld [vmem:[%s5973_s1 + $0x60] sm:$0xff]  ;;  %v3278_v24 = vmul.f32 -1.442695, %v5331_v51  ;;  %v3279_v51 = vmul.f32 -1.442695, %v5335_v4 }
 0x248   : > { %v4050_v10 = vpop.eup %4049  ;;  %4075 = vrcp.f32 %v811_v62  ;;  %v812_v19 = vadd.f32 1.0, %v4048_v16  ;;  %3442 = vmatmul.mubr.msk.f32.gmra.mxu1 %vm216_vm0, %v4680_v15  ;;  %v3363_v16 = vmul.f32 -1.442695, %v5329_v40  ;;  %v3364_v40 = vmul.f32 -1.442695, %v5333_v53 }
 0x249   : > { %3584 = vmatmul.mubr.msk.f32.gmra.mxu0 %vm216_vm0, %v4680_v15  ;;  %v4052_v7 = vpop.eup %4051  ;;  %4077 = vrcp.f32 %v1513_v12  ;;  %v1514_v29 = vadd.f32 1.0, %v4050_v10  ;;  %1903 = vmatprep.mubr.f32.mxu1 %v5982_v35  ;;  %v4684_v10 = vld [vmem:[%s5973_s1 + $0x68] sm:$0xff]  ;;  %v3280_v53 = vmul.f32 -1.442695, %v5339_v22 }
 0x24a   : > { %2605 = vmatprep.mubr.f32.mxu0 %v5982_v35  ;;  %v4054_v41 = vpop.eup %4053  ;;  %4079 = vrcp.f32 %v812_v19  ;;  %v813_v36 = vadd.f32 1.0, %v4052_v7  ;;  %v3365_v7 = vmul.f32 -1.442695, %v5337_v5 }
 0x24b   : > { %v4056_v54 = vpop.eup %4055  ;;  %4081 = vrcp.f32 %v1514_v29  ;;  %v1515_v30 = vadd.f32 1.0, %v4054_v41  ;;  %v4685_v41 = vld [vmem:[%s5973_s1 + $0x70] sm:$0xff] }
 0x24c   : > { %v4058_v31 = vpop.eup %4057  ;;  %4083 = vrcp.f32 %v813_v36  ;;  %v814_v37 = vadd.f32 1.0, %v4056_v54  ;;  %3443 = vmatmul.mubr.msk.f32.gmra.mxu1 %vm216_vm0, %v4681_v39  ;;  %v3366_v36 = vmul.f32 -1.442695, %v5341_v20 }
 0x24d   : > { %3585 = vmatmul.mubr.msk.f32.gmra.mxu0 %vm216_vm0, %v4681_v39  ;;  %v4060_v27 = vpop.eup %4059  ;;  %4085 = vrcp.f32 %v1515_v30  ;;  %v1516_v45 = vadd.f32 1.0, %v4058_v31  ;;  %1909 = vmatprep.mubr.f32.mxu1 %v5982_v35  ;;  %v4686_v31 = vld [vmem:[%s5973_s1 + $0x78] sm:$0xff] }
 0x24e   : > { %2611 = vmatprep.mubr.f32.mxu0 %v5982_v35  ;;  %v4062_v47 = vpop.eup %4061  ;;  %4087 = vrcp.f32 %v814_v37  ;;  %v815_v50 = vadd.f32 1.0, %v4060_v27 }
 0x24f   : > { %v4064_v46 = vpop.eup %4063  ;;  %4089 = vrcp.f32 %v1516_v45  ;;  %v1517_v56 = vadd.f32 1.0, %v4062_v47 }
 0x250   : > { %v4066_v55 = vpop.eup %4065  ;;  %977 = vst [vmem:[%s5139_s20 + $0x100] sm:$0xff] %v4064_v46  ;;  %4091 = vrcp.f32 %v815_v50  ;;  %3444 = vmatmul.mubr.msk.f32.gmra.mxu1 %vm216_vm0, %v4682_v57  ;;  %v4687_v46 = vld [vmem:[%s5973_s1 + $0x80] sm:$0xff] }
 0x251   : > { %3586 = vmatmul.mubr.msk.f32.gmra.mxu0 %vm216_vm0, %v4682_v57  ;;  %v4068_v52 = vpop.eup %4067  ;;  %3407 = vst [vmem:[%s5139_s20 + $0x2c0] sm:$0xff] %v4066_v55  ;;  %4093 = vrcp.f32 %v1517_v56  ;;  %1915 = vmatprep.mubr.f32.mxu1 %v5982_v35 }
 0x252   : > { %2617 = vmatprep.mubr.f32.mxu0 %v5982_v35  ;;  %v4070_v42 = vpop.eup %4069  ;;  %978 = vst.msk [vmem:[%s5139_s20 + $0x108] sm:$0xff] %vm945_vm1, %v4068_v52  ;;  %4095 = vpow2.f32 %v3273_v17 }
 0x253   : > { %v4072_v1 = vpop.eup %4071  ;;  %3408 = vst.msk [vmem:[%s5139_s20 + $0x2c8] sm:$0xff] %vm945_vm1, %v4070_v42  ;;  %4097 = vpow2.f32 %v3359_v28 }
 0x254   : > { %v4074_v0 = vpop.eup %4073  ;;  %979 = vst [vmem:[%s5139_s20 + $0x110] sm:$0xff] %v4072_v1  ;;  %4099 = vpow2.f32 %v3274_v25  ;;  %3445 = vmatmul.mubr.msk.f32.gmra.mxu1 %vm216_vm0, %v4683_v11 }
 0x255   : > { %3587 = vmatmul.mubr.msk.f32.gmra.mxu0 %vm216_vm0, %v4683_v11  ;;  %v4076_v8 = vpop.eup %4075  ;;  %3409 = vst [vmem:[%s5139_s20 + $0x2d0] sm:$0xff] %v4074_v0  ;;  %4101 = vpow2.f32 %v3360_v38  ;;  %1921 = vmatprep.mubr.f32.mxu1 %v5982_v35 }
 0x256   : > { %2623 = vmatprep.mubr.f32.mxu0 %v5982_v35  ;;  %v4078_v43 = vpop.eup %4077  ;;  %980 = vst.msk [vmem:[%s5139_s20 + $0x118] sm:$0xff] %vm945_vm1, %v4076_v8  ;;  %4103 = vpow2.f32 %v3275_v58  ;;  %v4688_v58 = vld [vmem:[%s5973_s1 + $0x88] sm:$0xff] }
 0x257   : > { %v4080_v62 = vpop.eup %4079  ;;  %3410 = vst.msk [vmem:[%s5139_s20 + $0x2d8] sm:$0xff] %vm945_vm1, %v4078_v43  ;;  %4105 = vpow2.f32 %v3361_v3 }
 0x258   : > { %v4082_v12 = vpop.eup %4081  ;;  %981 = vst [vmem:[%s5139_s20 + $0x120] sm:$0xff] %v4080_v62  ;;  %4107 = vpow2.f32 %v3276_v61  ;;  %3446 = vmatmul.mubr.msk.f32.gmra.mxu1 %vm216_vm0, %v4684_v10 }
 0x259   : > { %3588 = vmatmul.mubr.msk.f32.gmra.mxu0 %vm216_vm0, %v4684_v10  ;;  %v4084_v26 = vpop.eup %4083  ;;  %3411 = vst [vmem:[%s5139_s20 + $0x2e0] sm:$0xff] %v4082_v12  ;;  %4109 = vpow2.f32 %v3362_v9  ;;  %1927 = vmatprep.mubr.f32.mxu1 %v5982_v35  ;;  %v3281_v10 = vmul.f32 -1.442695, %v5345_v33 }
 0x25a   : > { %2629 = vmatprep.mubr.f32.mxu0 %v5982_v35  ;;  %v4086_v19 = vpop.eup %4085  ;;  %982 = vst.msk [vmem:[%s5139_s20 + $0x128] sm:$0xff] %vm945_vm1, %v4084_v26  ;;  %4111 = vpow2.f32 %v3277_v23  ;;  %v4689_v23 = vld [vmem:[%s5973_s1 + $0x90] sm:$0xff] }
 0x25b   : > { %v4088_v15 = vpop.eup %4087  ;;  %3412 = vst.msk [vmem:[%s5139_s20 + $0x2e8] sm:$0xff] %vm945_vm1, %v4086_v19  ;;  %4113 = vpow2.f32 %v3363_v16  ;;  %v3367_v19 = vmul.f32 -1.442695, %v5347_v59  ;;  %v3368_v59 = vmul.f32 -1.442695, %v5355_v13 }
 0x25c   : > { %v4090_v29 = vpop.eup %4089  ;;  %983 = vst [vmem:[%s5139_s20 + $0x130] sm:$0xff] %v4088_v15  ;;  %4115 = vpow2.f32 %v3278_v24  ;;  %3447 = vmatmul.mubr.msk.f32.gmra.mxu1 %vm216_vm0, %v4685_v41  ;;  %v3282_v15 = vmul.f32 -1.442695, %v5353_v6  ;;  %v3283_v6 = vmul.f32 -1.442695, %v5363_v21 }
 0x25d   : > { %3589 = vmatmul.mubr.msk.f32.gmra.mxu0 %vm216_vm0, %v4685_v41  ;;  %v4092_v4 = vpop.eup %4091  ;;  %3413 = vst [vmem:[%s5139_s20 + $0x2f0] sm:$0xff] %v4090_v29  ;;  %4117 = vpow2.f32 %v3364_v40  ;;  %1933 = vmatprep.mubr.f32.mxu1 %v5982_v35  ;;  %v3369_v41 = vmul.f32 -1.442695, %v5365_v49  ;;  %v3284_v13 = vmul.f32 -1.442695, %v5371_v44 }
 0x25e   : > { %2635 = vmatprep.mubr.f32.mxu0 %v5982_v35  ;;  %v4094_v5 = vpop.eup %4093  ;;  %984 = vst.msk [vmem:[%s5139_s20 + $0x138] sm:$0xff] %vm945_vm1, %v4092_v4  ;;  %4119 = vpow2.f32 %v3279_v51  ;;  %v3370_v49 = vmul.f32 -1.442695, %v5373_v32  ;;  %v3285_v44 = vmul.f32 -1.442695, %v5381_v2 }
 0x25f   : > { %v4096_v22 = vpop.eup %4095  ;;  %3414 = vst.msk [vmem:[%s5139_s20 + $0x2f8] sm:$0xff] %vm945_vm1, %v4094_v5  ;;  %4121 = vpow2.f32 %v3365_v7  ;;  %v4690_v7 = vld [vmem:[%s5973_s1 + $0x98] sm:$0xff]  ;;  %v3286_v32 = vmul.f32 -1.442695, %v5389_v14  ;;  %v3287_v14 = vmul.f32 -1.442695, %v5399_v34 }
 0x260   : > { %v4098_v54 = vpop.eup %4097  ;;  %v816_v30 = vadd.f32 1.0, %v4096_v22  ;;  %4123 = vpow2.f32 %v3280_v53  ;;  %3448 = vmatmul.mubr.msk.f32.gmra.mxu1 %vm216_vm0, %v4686_v31 }
 0x261   : > { %3590 = vmatmul.mubr.msk.f32.gmra.mxu0 %vm216_vm0, %v4686_v31  ;;  %v4100_v20 = vpop.eup %4099  ;;  %v1518_v37 = vadd.f32 1.0, %v4098_v54  ;;  %4125 = vpow2.f32 %v3366_v36  ;;  %1939 = vmatprep.mubr.f32.mxu1 %v5982_v35  ;;  %v4691_v36 = vld [vmem:[%s5973_s1 + $0xa0] sm:$0xff]  ;;  %v3371_v54 = vmul.f32 -1.442695, %v5383_v63  ;;  %v4692_v31 = vld [vmem:[%s5973_s1 + $0xa8] sm:$0xff] }
 0x262   : > { %2641 = vmatprep.mubr.f32.mxu0 %v5982_v35  ;;  %v4102_v39 = vpop.eup %4101  ;;  %4127 = vrcp.f32 %v816_v30  ;;  %v817_v27 = vadd.f32 1.0, %v4100_v20  ;;  %v3372_v63 = vmul.f32 -1.442695, %v5391_v48  ;;  %v3288_v48 = vmul.f32 -1.442695, %v5407_v60 }
 0x263   : > { %v4104_v45 = vpop.eup %4103  ;;  %4129 = vrcp.f32 %v1518_v37  ;;  %v1519_v47 = vadd.f32 1.0, %v4102_v39  ;;  %v3373_v39 = vmul.f32 -1.442695, %v5401_v18 }
 0x264   : > { %v4106_v50 = vpop.eup %4105  ;;  %4131 = vrcp.f32 %v817_v27  ;;  %v818_v17 = vadd.f32 1.0, %v4104_v45  ;;  %3449 = vmatmul.mubr.msk.f32.gmra.mxu1 %vm216_vm0, %v4687_v46  ;;  %v4693_v45 = vld [vmem:[%s5973_s1 + $0xb0] sm:$0xff] }
 0x265   : > { %3591 = vmatmul.mubr.msk.f32.gmra.mxu0 %vm216_vm0, %v4687_v46  ;;  %v4108_v56 = vpop.eup %4107  ;;  %4133 = vrcp.f32 %v1519_v47  ;;  %v1520_v28 = vadd.f32 1.0, %v4106_v50  ;;  %1945 = vmatprep.mubr.f32.mxu1 %v5982_v35  ;;  %v5983_v47 = vld [vmem:[#allocation8_spill] sm:$0xff] }
 0x266   : > { %2647 = vmatprep.mubr.f32.mxu0 %v5982_v35  ;;  %v4110_v55 = vpop.eup %4109  ;;  %4135 = vrcp.f32 %v818_v17  ;;  %v819_v25 = vadd.f32 1.0, %v4108_v56  ;;  %v3374_v50 = vmul.f32 -1.442695, %v5983_v47  ;;  %v4694_v56 = vld [vmem:[%s5973_s1 + $0xb8] sm:$0xff] }
 0x267   : > { %v4112_v57 = vpop.eup %4111  ;;  %4137 = vrcp.f32 %v1520_v28  ;;  %v1521_v52 = vadd.f32 1.0, %v4110_v55 }
 0x268   : > { %v4114_v38 = vpop.eup %4113  ;;  %4139 = vrcp.f32 %v819_v25  ;;  %v820_v42 = vadd.f32 1.0, %v4112_v57  ;;  %3450 = vmatmul.mubr.msk.f32.gmra.mxu1 %vm216_vm0, %v4688_v58 }
 0x269   : > { %3592 = vmatmul.mubr.msk.f32.gmra.mxu0 %vm216_vm0, %v4688_v58  ;;  %v4116_v1 = vpop.eup %4115  ;;  %4141 = vrcp.f32 %v1521_v52  ;;  %v1522_v3 = vadd.f32 1.0, %v4114_v38  ;;  %1951 = vmatprep.mubr.f32.mxu1 %v5982_v35 }
 0x26a   : > { %2653 = vmatprep.mubr.f32.mxu0 %v5982_v35  ;;  %v4118_v0 = vpop.eup %4117  ;;  %4143 = vrcp.f32 %v820_v42  ;;  %v821_v61 = vadd.f32 1.0, %v4116_v1  ;;  %v4695_v1 = vld [vmem:[%s5973_s1 + $0xc0] sm:$0xff] }
 0x26b   : > { %v4120_v11 = vpop.eup %4119  ;;  %4145 = vrcp.f32 %v1522_v3  ;;  %v1523_v8 = vadd.f32 1.0, %v4118_v0 }
 0x26c   : > { %v4122_v9 = vpop.eup %4121  ;;  %4147 = vrcp.f32 %v821_v61  ;;  %v822_v43 = vadd.f32 1.0, %v4120_v11  ;;  %3451 = vmatmul.mubr.msk.f32.gmra.mxu1 %vm216_vm0, %v4689_v23 }
 0x26d   : > { %3593 = vmatmul.mubr.msk.f32.gmra.mxu0 %vm216_vm0, %v4689_v23  ;;  %v4124_v62 = vpop.eup %4123  ;;  %4149 = vrcp.f32 %v1523_v8  ;;  %v1524_v16 = vadd.f32 1.0, %v4122_v9  ;;  %1957 = vmatprep.mubr.f32.mxu1 %v5982_v35 }
 0x26e   : > { %2659 = vmatprep.mubr.f32.mxu0 %v5982_v35  ;;  %v4126_v12 = vpop.eup %4125  ;;  %4151 = vrcp.f32 %v822_v43  ;;  %v823_v24 = vadd.f32 1.0, %v4124_v62  ;;  %v4696_v62 = vld [vmem:[%s5973_s1 + $0xc8] sm:$0xff] }
 0x26f   : > { %v4128_v26 = vpop.eup %4127  ;;  %4153 = vrcp.f32 %v1524_v16  ;;  %v1525_v40 = vadd.f32 1.0, %v4126_v12 }
 0x270   : > { %v4130_v51 = vpop.eup %4129  ;;  %985 = vst [vmem:[%s5139_s20 + $0x140] sm:$0xff] %v4128_v26  ;;  %4155 = vrcp.f32 %v823_v24  ;;  %3452 = vmatmul.mubr.msk.f32.gmra.mxu1 %vm216_vm0, %v4690_v7 }
 0x271   : > { %3594 = vmatmul.mubr.msk.f32.gmra.mxu0 %vm216_vm0, %v4690_v7  ;;  %v4132_v33 = vpop.eup %4131  ;;  %3415 = vst [vmem:[%s5139_s20 + $0x300] sm:$0xff] %v4130_v51  ;;  %4157 = vrcp.f32 %v1525_v40  ;;  %1963 = vmatprep.mubr.f32.mxu1 %v5982_v35 }
 0x272   : > { %2665 = vmatprep.mubr.f32.mxu0 %v5982_v35  ;;  %v4134_v29 = vpop.eup %4133  ;;  %986 = vst.msk [vmem:[%s5139_s20 + $0x148] sm:$0xff] %vm945_vm1, %v4132_v33  ;;  %4159 = vpow2.f32 %v3281_v10 }
 0x273   : > { %v4136_v53 = vpop.eup %4135  ;;  %3416 = vst.msk [vmem:[%s5139_s20 + $0x308] sm:$0xff] %vm945_vm1, %v4134_v29  ;;  %4161 = vpow2.f32 %v3367_v19 }
 0x274   : > { %v4138_v4 = vpop.eup %4137  ;;  %987 = vst [vmem:[%s5139_s20 + $0x150] sm:$0xff] %v4136_v53  ;;  %4163 = vpow2.f32 %v3282_v15  ;;  %3453 = vmatmul.mubr.msk.f32.gmra.mxu1 %vm216_vm0, %v4691_v36  ;;  %v4697_v15 = vld [vmem:[%s5973_s1 + $0xd0] sm:$0xff] }
 0x275   : > { %3595 = vmatmul.mubr.msk.f32.gmra.mxu0 %vm216_vm0, %v4691_v36  ;;  %v4140_v21 = vpop.eup %4139  ;;  %3417 = vst [vmem:[%s5139_s20 + $0x310] sm:$0xff] %v4138_v4  ;;  %4165 = vpow2.f32 %v3368_v59  ;;  %1969 = vmatprep.mubr.f32.mxu1 %v5982_v35  ;;  %v4698_v4 = vld [vmem:[%s5973_s1 + $0xd8] sm:$0xff] }
 0x276   : > { %2671 = vmatprep.mubr.f32.mxu0 %v5982_v35  ;;  %v4142_v5 = vpop.eup %4141  ;;  %988 = vst.msk [vmem:[%s5139_s20 + $0x158] sm:$0xff] %vm945_vm1, %v4140_v21  ;;  %4167 = vpow2.f32 %v3283_v6 }
 0x277   : > { %v4144_v22 = vpop.eup %4143  ;;  %3418 = vst.msk [vmem:[%s5139_s20 + $0x318] sm:$0xff] %vm945_vm1, %v4142_v5  ;;  %4169 = vpow2.f32 %v3369_v41 }
 0x278   : > { %v4146_v30 = vpop.eup %4145  ;;  %989 = vst [vmem:[%s5139_s20 + $0x160] sm:$0xff] %v4144_v22  ;;  %4171 = vpow2.f32 %v3284_v13  ;;  %3454 = vmatmul.mubr.msk.f32.gmra.mxu1 %vm216_vm0, %v4692_v31 }
 0x279   : > { %3596 = vmatmul.mubr.msk.f32.gmra.mxu0 %vm216_vm0, %v4692_v31  ;;  %v4148_v2 = vpop.eup %4147  ;;  %3419 = vst [vmem:[%s5139_s20 + $0x320] sm:$0xff] %v4146_v30  ;;  %4173 = vpow2.f32 %v3370_v49  ;;  %1975 = vmatprep.mubr.f32.mxu1 %v5982_v35 }
 0x27a   : > { %2677 = vmatprep.mubr.f32.mxu0 %v5982_v35  ;;  %v4150_v20 = vpop.eup %4149  ;;  %990 = vst.msk [vmem:[%s5139_s20 + $0x168] sm:$0xff] %vm945_vm1, %v4148_v2  ;;  %4175 = vpow2.f32 %v3285_v44 }
 0x27b   : > { %v4152_v37 = vpop.eup %4151  ;;  %3420 = vst.msk [vmem:[%s5139_s20 + $0x328] sm:$0xff] %vm945_vm1, %v4150_v20  ;;  %4177 = vpow2.f32 %v3371_v54 }
 0x27c   : > { %v4154_v27 = vpop.eup %4153  ;;  %991 = vst [vmem:[%s5139_s20 + $0x170] sm:$0xff] %v4152_v37  ;;  %4179 = vpow2.f32 %v3286_v32  ;;  %3455 = vmatmul.mubr.msk.f32.gmra.mxu1 %vm216_vm0, %v4693_v45 }
 0x27d   : > { %3597 = vmatmul.mubr.msk.f32.gmra.mxu0 %vm216_vm0, %v4693_v45  ;;  %v4156_v34 = vpop.eup %4155  ;;  %3421 = vst [vmem:[%s5139_s20 + $0x330] sm:$0xff] %v4154_v27  ;;  %4181 = vpow2.f32 %v3372_v63  ;;  %1981 = vmatprep.mubr.f32.mxu1 %v5982_v35 }
 0x27e   : > { %2683 = vmatprep.mubr.f32.mxu0 %v5982_v35  ;;  %v4158_v18 = vpop.eup %4157  ;;  %992 = vst.msk [vmem:[%s5139_s20 + $0x178] sm:$0xff] %vm945_vm1, %v4156_v34  ;;  %4183 = vpow2.f32 %v3287_v14 }
 0x27f   : > { %v4160_v60 = vpop.eup %4159  ;;  %3422 = vst.msk [vmem:[%s5139_s20 + $0x338] sm:$0xff] %vm945_vm1, %v4158_v18  ;;  %4185 = vpow2.f32 %v3373_v39 }
 0x280   : > { %v4162_v17 = vpop.eup %4161  ;;  %v824_v46 = vadd.f32 1.0, %v4160_v60  ;;  %4187 = vpow2.f32 %v3288_v48  ;;  %3456 = vmatmul.mubr.msk.f32.gmra.mxu1 %vm216_vm0, %v4694_v56 }
 0x281   : > { %3598 = vmatmul.mubr.msk.f32.gmra.mxu0 %vm216_vm0, %v4694_v56  ;;  %v4164_v28 = vpop.eup %4163  ;;  %v1526_v55 = vadd.f32 1.0, %v4162_v17  ;;  %4189 = vpow2.f32 %v3374_v50  ;;  %1987 = vmatprep.mubr.f32.mxu1 %v5982_v35 }
 0x282   : > { %2689 = vmatprep.mubr.f32.mxu0 %v5982_v35  ;;  %v4166_v25 = vpop.eup %4165  ;;  %4191 = vrcp.f32 %v824_v46  ;;  %v825_v57 = vadd.f32 1.0, %v4164_v28 }
 0x283   : > { %v4168_v52 = vpop.eup %4167  ;;  %4193 = vrcp.f32 %v1526_v55  ;;  %v1527_v38 = vadd.f32 1.0, %v4166_v25 }
 0x284   : > { %v4170_v42 = vpop.eup %4169  ;;  %4195 = vrcp.f32 %v825_v57  ;;  %v826_v58 = vadd.f32 1.0, %v4168_v52  ;;  %3457 = vmatmul.mubr.msk.f32.gmra.mxu1 %vm216_vm0, %v4695_v1 }
 0x285   : > { %3599 = vmatmul.mubr.msk.f32.gmra.mxu0 %vm216_vm0, %v4695_v1  ;;  %v4172_v3 = vpop.eup %4171  ;;  %4197 = vrcp.f32 %v1527_v38  ;;  %v1528_v0 = vadd.f32 1.0, %v4170_v42  ;;  %1993 = vmatprep.mubr.f32.mxu1 %v5982_v35 }
 0x286   : > { %2695 = vmatprep.mubr.f32.mxu0 %v5982_v35  ;;  %v4174_v61 = vpop.eup %4173  ;;  %4199 = vrcp.f32 %v826_v58  ;;  %v827_v11 = vadd.f32 1.0, %v4172_v3 }
 0x287   : > { %v4176_v8 = vpop.eup %4175  ;;  %4201 = vrcp.f32 %v1528_v0  ;;  %v1529_v9 = vadd.f32 1.0, %v4174_v61 }
 0x288   : > { %v4178_v43 = vpop.eup %4177  ;;  %4203 = vrcp.f32 %v827_v11  ;;  %v828_v23 = vadd.f32 1.0, %v4176_v8  ;;  %3458 = vmatmul.mubr.msk.f32.gmra.mxu1 %vm216_vm0, %v4696_v62 }
 0x289   : > { %3600 = vmatmul.mubr.msk.f32.gmra.mxu0 %vm216_vm0, %v4696_v62  ;;  %v4180_v16 = vpop.eup %4179  ;;  %4205 = vrcp.f32 %v1529_v9  ;;  %v1530_v12 = vadd.f32 1.0, %v4178_v43  ;;  %1999 = vmatprep.mubr.f32.mxu1 %v5982_v35 }
 0x28a   : > { %2701 = vmatprep.mubr.f32.mxu0 %v5982_v35  ;;  %v4182_v24 = vpop.eup %4181  ;;  %4207 = vrcp.f32 %v828_v23  ;;  %v829_v10 = vadd.f32 1.0, %v4180_v16 }
 0x28b   : > { %v4184_v26 = vpop.eup %4183  ;;  %4209 = vrcp.f32 %v1530_v12  ;;  %v1531_v40 = vadd.f32 1.0, %v4182_v24 }
 0x28c   : > { %v4186_v19 = vpop.eup %4185  ;;  %4211 = vrcp.f32 %v829_v10  ;;  %v830_v51 = vadd.f32 1.0, %v4184_v26  ;;  %3459 = vmatmul.mubr.msk.f32.gmra.mxu1 %vm216_vm0, %v4697_v15 }
 0x28d   : > { %3601 = vmatmul.mubr.msk.f32.gmra.mxu0 %vm216_vm0, %v4697_v15  ;;  %v4188_v7 = vpop.eup %4187  ;;  %4213 = vrcp.f32 %v1531_v40  ;;  %v1532_v33 = vadd.f32 1.0, %v4186_v19  ;;  %2005 = vmatprep.mubr.f32.mxu1 %v5982_v35 }
 0x28e   : > { %2707 = vmatprep.mubr.f32.mxu0 %v5982_v35  ;;  %v4190_v59 = vpop.eup %4189  ;;  %4215 = vrcp.f32 %v830_v51  ;;  %v831_v29 = vadd.f32 1.0, %v4188_v7 }
 0x28f   : > { %v4192_v6 = vpop.eup %4191  ;;  %4217 = vrcp.f32 %v1532_v33  ;;  %v1533_v53 = vadd.f32 1.0, %v4190_v59 }
 0x290   : > { %v4194_v41 = vpop.eup %4193  ;;  %993 = vst [vmem:[%s5139_s20 + $0x180] sm:$0xff] %v4192_v6  ;;  %4219 = vrcp.f32 %v831_v29  ;;  %3460 = vmatmul.mubr.msk.f32.gmra.mxu1 %vm216_vm0, %v4698_v4 }
 0x291   : > { %3602 = vmatmul.mubr.msk.f32.gmra.mxu0 %vm216_vm0, %v4698_v4  ;;  %v4196_v35 = vpop.eup %4195  ;;  %3423 = vst [vmem:[%s5139_s20 + $0x340] sm:$0xff] %v4194_v41  ;;  %4221 = vrcp.f32 %v1533_v53 }
 0x292   : > { %v4198_v13 = vpop.eup %4197  ;;  %994 = vst.msk [vmem:[%s5139_s20 + $0x188] sm:$0xff] %vm945_vm1, %v4196_v35 }
 0x293   : > { %v4200_v36 = vpop.eup %4199  ;;  %3424 = vst.msk [vmem:[%s5139_s20 + $0x348] sm:$0xff] %vm945_vm1, %v4198_v13 }
 0x294   : > { %v4202_v21 = vpop.eup %4201  ;;  %995 = vst [vmem:[%s5139_s20 + $0x190] sm:$0xff] %v4200_v36 }
 0x295   : > { %v4204_v49 = vpop.eup %4203  ;;  %3425 = vst [vmem:[%s5139_s20 + $0x350] sm:$0xff] %v4202_v21 }
 0x296   : > { %v4206_v5 = vpop.eup %4205  ;;  %996 = vst.msk [vmem:[%s5139_s20 + $0x198] sm:$0xff] %vm945_vm1, %v4204_v49 }
 0x297   : > { %v4208_v44 = vpop.eup %4207  ;;  %3426 = vst.msk [vmem:[%s5139_s20 + $0x358] sm:$0xff] %vm945_vm1, %v4206_v5 }
 0x298   : > { %v4210_v22 = vpop.eup %4209  ;;  %997 = vst [vmem:[%s5139_s20 + $0x1a0] sm:$0xff] %v4208_v44 }
 0x299   : > { %v4212_v54 = vpop.eup %4211  ;;  %3427 = vst [vmem:[%s5139_s20 + $0x360] sm:$0xff] %v4210_v22 }
 0x29a   : > { %v4214_v30 = vpop.eup %4213  ;;  %998 = vst.msk [vmem:[%s5139_s20 + $0x1a8] sm:$0xff] %vm945_vm1, %v4212_v54 }
 0x29b   : > { %v4216_v32 = vpop.eup %4215  ;;  %3428 = vst.msk [vmem:[%s5139_s20 + $0x368] sm:$0xff] %vm945_vm1, %v4214_v30 }
 0x29c   : > { %v4218_v31 = vpop.eup %4217  ;;  %999 = vst [vmem:[%s5139_s20 + $0x1b0] sm:$0xff] %v4216_v32 }
 0x29d   : > { %v4220_v2 = vpop.eup %4219  ;;  %3429 = vst [vmem:[%s5139_s20 + $0x370] sm:$0xff] %v4218_v31 }
 0x29e   : > { %v4222_v63 = vpop.eup %4221  ;;  %1000 = vst.msk [vmem:[%s5139_s20 + $0x1b8] sm:$0xff] %vm945_vm1, %v4220_v2 }
 0x29f   : > { %3430 = vst.msk [vmem:[%s5139_s20 + $0x378] sm:$0xff] %vm945_vm1, %v4222_v63 }
 0x2e4   : > { %v1845_v20 = vpop.f32.mrf.mxu1 }
 0x2e5   : > { %v2547_v14 = vpop.f32.mrf.mxu0  ;;  %v3461_v37 = vmul.f32 -1.442695, %v1845_v20 }
 0x2e6   : > { %v3603_v39 = vmul.f32 -1.442695, %v2547_v14  ;;  %v1847_v27 = vpop.f32.mrf.mxu1 }
 0x2e7   : > { %v2549_v48 = vpop.f32.mrf.mxu0  ;;  %4223 = vpow2.f32 %v3461_v37  ;;  %v3462_v45 = vmul.f32 -1.442695, %v1847_v27 }
 0x2e8   : > { %v3604_v34 = vmul.f32 -1.442695, %v2549_v48  ;;  %4225 = vpow2.f32 %v3603_v39  ;;  %v1851_v47 = vpop.f32.mrf.mxu1 }
 0x2e9   : > { %v2553_v50 = vpop.f32.mrf.mxu0  ;;  %4227 = vpow2.f32 %v3462_v45  ;;  %v3463_v18 = vmul.f32 -1.442695, %v1851_v47 }
 0x2ea   : > { %v3605_v60 = vmul.f32 -1.442695, %v2553_v50  ;;  %4229 = vpow2.f32 %v3604_v34  ;;  %v1853_v17 = vpop.f32.mrf.mxu1 }
 0x2eb   : > { %v2555_v46 = vpop.f32.mrf.mxu0  ;;  %4231 = vpow2.f32 %v3463_v18  ;;  %v3464_v56 = vmul.f32 -1.442695, %v1853_v17 }
 0x2ec   : > { %v3606_v28 = vmul.f32 -1.442695, %v2555_v46  ;;  %4233 = vpow2.f32 %v3605_v60  ;;  %v1857_v55 = vpop.f32.mrf.mxu1 }
 0x2ed   : > { %v2559_v25 = vpop.f32.mrf.mxu0  ;;  %4235 = vpow2.f32 %v3464_v56  ;;  %v3465_v57 = vmul.f32 -1.442695, %v1857_v55 }
 0x2ee   : > { %v3607_v52 = vmul.f32 -1.442695, %v2559_v25  ;;  %4237 = vpow2.f32 %v3606_v28  ;;  %v1859_v38 = vpop.f32.mrf.mxu1 }
 0x2ef   : > { %v2561_v42 = vpop.f32.mrf.mxu0  ;;  %4239 = vpow2.f32 %v3465_v57  ;;  %v3466_v58 = vmul.f32 -1.442695, %v1859_v38 }
 0x2f0   : > { %v3608_v1 = vmul.f32 -1.442695, %v2561_v42  ;;  %4241 = vpow2.f32 %v3607_v52  ;;  %v1863_v3 = vpop.f32.mrf.mxu1 }
 0x2f1   : > { %v2565_v0 = vpop.f32.mrf.mxu0  ;;  %4243 = vpow2.f32 %v3466_v58  ;;  %v3467_v61 = vmul.f32 -1.442695, %v1863_v3 }
 0x2f2   : > { %v3609_v11 = vmul.f32 -1.442695, %v2565_v0  ;;  %4245 = vpow2.f32 %v3608_v1  ;;  %v1865_v8 = vpop.f32.mrf.mxu1 }
 0x2f3   : > { %v2567_v9 = vpop.f32.mrf.mxu0  ;;  %4247 = vpow2.f32 %v3467_v61  ;;  %v3468_v43 = vmul.f32 -1.442695, %v1865_v8 }
 0x2f4   : > { %v3610_v23 = vmul.f32 -1.442695, %v2567_v9  ;;  %v4224_v62 = vpop.eup %4223  ;;  %4249 = vpow2.f32 %v3609_v11  ;;  %v1869_v16 = vpop.f32.mrf.mxu1 }
 0x2f5   : > { %v2571_v12 = vpop.f32.mrf.mxu0  ;;  %v4226_v24 = vpop.eup %4225  ;;  %v2180_v10 = vadd.f32 1.0, %v4224_v62  ;;  %4251 = vpow2.f32 %v3468_v43  ;;  %v3469_v47 = vmul.f32 -1.442695, %v1869_v16 }
 0x2f6   : > { %v4228_v26 = vpop.eup %4227  ;;  %v2882_v40 = vadd.f32 1.0, %v4226_v24  ;;  %4253 = vpow2.f32 %v3610_v23  ;;  %v1871_v19 = vpop.f32.mrf.mxu1  ;;  %v3611_v17 = vmul.f32 -1.442695, %v2571_v12 }
 0x2f7   : > { %v4230_v51 = vpop.eup %4229  ;;  %4255 = vrcp.f32 %v2180_v10  ;;  %v2181_v15 = vadd.f32 1.0, %v4228_v26  ;;  %v2573_v7 = vpop.f32.mrf.mxu0  ;;  %v3470_v56 = vmul.f32 -1.442695, %v1871_v19 }
 0x2f8   : > { %v4232_v33 = vpop.eup %4231  ;;  %4257 = vrcp.f32 %v2882_v40  ;;  %v2883_v59 = vadd.f32 1.0, %v4230_v51  ;;  %v1875_v4 = vpop.f32.mrf.mxu1  ;;  %v3612_v55 = vmul.f32 -1.442695, %v2573_v7 }
 0x2f9   : > { %v4234_v29 = vpop.eup %4233  ;;  %4259 = vrcp.f32 %v2181_v15  ;;  %v2182_v6 = vadd.f32 1.0, %v4232_v33  ;;  %v2577_v36 = vpop.f32.mrf.mxu0  ;;  %v3471_v52 = vmul.f32 -1.442695, %v1875_v4 }
 0x2fa   : > { %v4236_v53 = vpop.eup %4235  ;;  %4261 = vrcp.f32 %v2883_v59  ;;  %v2884_v41 = vadd.f32 1.0, %v4234_v29  ;;  %v1877_v30 = vpop.f32.mrf.mxu1  ;;  %v3613_v58 = vmul.f32 -1.442695, %v2577_v36 }
 0x2fb   : > { %v4238_v35 = vpop.eup %4237  ;;  %4263 = vrcp.f32 %v2182_v6  ;;  %v2183_v13 = vadd.f32 1.0, %v4236_v53  ;;  %v2579_v2 = vpop.f32.mrf.mxu0  ;;  %v3472_v3 = vmul.f32 -1.442695, %v1877_v30 }
 0x2fc   : > { %v4240_v21 = vpop.eup %4239  ;;  %4265 = vrcp.f32 %v2884_v41  ;;  %v2885_v49 = vadd.f32 1.0, %v4238_v35  ;;  %v1881_v48 = vpop.f32.mrf.mxu1  ;;  %v3614_v61 = vmul.f32 -1.442695, %v2579_v2 }
 0x2fd   : > { %v4242_v5 = vpop.eup %4241  ;;  %4267 = vrcp.f32 %v2183_v13  ;;  %v2184_v44 = vadd.f32 1.0, %v4240_v21  ;;  %v2583_v50 = vpop.f32.mrf.mxu0  ;;  %v3473_v9 = vmul.f32 -1.442695, %v1881_v48 }
 0x2fe   : > { %v4244_v22 = vpop.eup %4243  ;;  %4269 = vrcp.f32 %v2885_v49  ;;  %v2886_v54 = vadd.f32 1.0, %v4242_v5  ;;  %v1883_v25 = vpop.f32.mrf.mxu1  ;;  %v3615_v62 = vmul.f32 -1.442695, %v2583_v50 }
 0x2ff   : > { %v4246_v32 = vpop.eup %4245  ;;  %4271 = vrcp.f32 %v2184_v44  ;;  %v2185_v31 = vadd.f32 1.0, %v4244_v22  ;;  %v2585_v38 = vpop.f32.mrf.mxu0  ;;  %v3474_v12 = vmul.f32 -1.442695, %v1883_v25 }
 0x300   : > { %v4248_v63 = vpop.eup %4247  ;;  %4273 = vrcp.f32 %v2886_v54  ;;  %v2887_v20 = vadd.f32 1.0, %v4246_v32  ;;  %v1887_v11 = vpop.f32.mrf.mxu1  ;;  %v3616_v10 = vmul.f32 -1.442695, %v2585_v38 }
 0x301   : > { %v4250_v14 = vpop.eup %4249  ;;  %4275 = vrcp.f32 %v2185_v31  ;;  %v2186_v37 = vadd.f32 1.0, %v4248_v63  ;;  %v2589_v43 = vpop.f32.mrf.mxu0  ;;  %v3475_v19 = vmul.f32 -1.442695, %v1887_v11 }
 0x302   : > { %v4252_v39 = vpop.eup %4251  ;;  %4277 = vrcp.f32 %v2887_v20  ;;  %v2888_v27 = vadd.f32 1.0, %v4250_v14  ;;  %v1889_v26 = vpop.f32.mrf.mxu1  ;;  %v3617_v7 = vmul.f32 -1.442695, %v2589_v43 }
 0x303   : > { %v4254_v45 = vpop.eup %4253  ;;  %4279 = vrcp.f32 %v2186_v37  ;;  %v2187_v34 = vadd.f32 1.0, %v4252_v39  ;;  %v2591_v51 = vpop.f32.mrf.mxu0  ;;  %v3476_v59 = vmul.f32 -1.442695, %v1889_v26 }
 0x304   : > { %v4256_v18 = vpop.eup %4255  ;;  %4281 = vrcp.f32 %v2888_v27  ;;  %v2889_v60 = vadd.f32 1.0, %v4254_v45  ;;  %v3618_v6 = vmul.f32 -1.442695, %v2591_v51  ;;  %v1893_v53 = vpop.f32.mrf.mxu1 }
 0x305   : > { %v4258_v46 = vpop.eup %4257  ;;  %3517 = vst [vmem:[%s5139_s20 + $0x380] sm:$0xff] %v4256_v18  ;;  %4283 = vrcp.f32 %v2187_v34  ;;  %v2595_v4 = vpop.f32.mrf.mxu0 }
 0x306   : > { %v4260_v28 = vpop.eup %4259  ;;  %3659 = vst [vmem:[%s5139_s20 + $0x540] sm:$0xff] %v4258_v46  ;;  %4285 = vrcp.f32 %v2889_v60  ;;  %v1895_v5 = vpop.f32.mrf.mxu1 }
 0x307   : > { %v4262_v57 = vpop.eup %4261  ;;  %3518 = vst.msk [vmem:[%s5139_s20 + $0x388] sm:$0xff] %vm945_vm1, %v4260_v28  ;;  %4287 = vpow2.f32 %v3469_v47  ;;  %v2597_v54 = vpop.f32.mrf.mxu0  ;;  %v3478_v43 = vmul.f32 -1.442695, %v1895_v5 }
 0x308   : > { %v4264_v42 = vpop.eup %4263  ;;  %3660 = vst.msk [vmem:[%s5139_s20 + $0x548] sm:$0xff] %vm945_vm1, %v4262_v57  ;;  %4289 = vpow2.f32 %v3611_v17  ;;  %v1899_v14 = vpop.f32.mrf.mxu1 }
 0x309   : > { %v4266_v1 = vpop.eup %4265  ;;  %3519 = vst [vmem:[%s5139_s20 + $0x390] sm:$0xff] %v4264_v42  ;;  %4291 = vpow2.f32 %v3470_v56  ;;  %v2601_v27 = vpop.f32.mrf.mxu0 }
 0x30a   : > { %v4268_v0 = vpop.eup %4267  ;;  %3661 = vst [vmem:[%s5139_s20 + $0x550] sm:$0xff] %v4266_v1  ;;  %4293 = vpow2.f32 %v3612_v55  ;;  %v1901_v60 = vpop.f32.mrf.mxu1 }
 0x30b   : > { %v4270_v8 = vpop.eup %4269  ;;  %3520 = vst.msk [vmem:[%s5139_s20 + $0x398] sm:$0xff] %vm945_vm1, %v4268_v0  ;;  %4295 = vpow2.f32 %v3471_v52  ;;  %v2603_v56 = vpop.f32.mrf.mxu0  ;;  %v3480_v51 = vmul.f32 -1.442695, %v1901_v60 }
 0x30c   : > { %v4272_v23 = vpop.eup %4271  ;;  %3662 = vst.msk [vmem:[%s5139_s20 + $0x558] sm:$0xff] %vm945_vm1, %v4270_v8  ;;  %4297 = vpow2.f32 %v3613_v58  ;;  %v1905_v42 = vpop.f32.mrf.mxu1  ;;  %v3619_v8 = vmul.f32 -1.442695, %v2595_v4 }
 0x30d   : > { %v4274_v16 = vpop.eup %4273  ;;  %3521 = vst [vmem:[%s5139_s20 + $0x3a0] sm:$0xff] %v4272_v23  ;;  %4299 = vpow2.f32 %v3472_v3  ;;  %v3477_v3 = vmul.f32 -1.442695, %v1893_v53  ;;  %v2607_v0 = vpop.f32.mrf.mxu0 }
 0x30e   : > { %v4276_v24 = vpop.eup %4275  ;;  %3663 = vst [vmem:[%s5139_s20 + $0x560] sm:$0xff] %v4274_v16  ;;  %4301 = vpow2.f32 %v3614_v61  ;;  %v1907_v16 = vpop.f32.mrf.mxu1 }
 0x30f   : > { %v4278_v40 = vpop.eup %4277  ;;  %3522 = vst.msk [vmem:[%s5139_s20 + $0x3a8] sm:$0xff] %vm945_vm1, %v4276_v24  ;;  %4303 = vpow2.f32 %v3473_v9  ;;  %v3479_v24 = vmul.f32 -1.442695, %v1899_v14 }
 0x310   : > { %v4280_v15 = vpop.eup %4279  ;;  %3664 = vst.msk [vmem:[%s5139_s20 + $0x568] sm:$0xff] %vm945_vm1, %v4278_v40  ;;  %4305 = vpow2.f32 %v3615_v62  ;;  %v3620_v62 = vmul.f32 -1.442695, %v2597_v54  ;;  %v3621_v40 = vmul.f32 -1.442695, %v2601_v27 }
 0x311   : > { %v4282_v33 = vpop.eup %4281  ;;  %3523 = vst [vmem:[%s5139_s20 + $0x3b0] sm:$0xff] %v4280_v15  ;;  %4307 = vpow2.f32 %v3474_v12 }
 0x312   : > { %v4284_v29 = vpop.eup %4283  ;;  %3665 = vst [vmem:[%s5139_s20 + $0x570] sm:$0xff] %v4282_v33  ;;  %4309 = vpow2.f32 %v3616_v10  ;;  %v2609_v10 = vpop.f32.mrf.mxu0 }
 0x313   : > { %v4286_v41 = vpop.eup %4285  ;;  %3524 = vst.msk [vmem:[%s5139_s20 + $0x3b8] sm:$0xff] %vm945_vm1, %v4284_v29  ;;  %4311 = vpow2.f32 %v3475_v19  ;;  %v1911_v33 = vpop.f32.mrf.mxu1  ;;  %v3481_v29 = vmul.f32 -1.442695, %v1905_v42 }
 0x314   : > { %v4288_v35 = vpop.eup %4287  ;;  %3666 = vst.msk [vmem:[%s5139_s20 + $0x578] sm:$0xff] %vm945_vm1, %v4286_v41  ;;  %4313 = vpow2.f32 %v3617_v7  ;;  %v3622_v7 = vmul.f32 -1.442695, %v2603_v56  ;;  %v3623_v41 = vmul.f32 -1.442695, %v2607_v0 }
 0x315   : > { %v4290_v13 = vpop.eup %4289  ;;  %v2188_v36 = vadd.f32 1.0, %v4288_v35  ;;  %4315 = vpow2.f32 %v3476_v59  ;;  %v3482_v35 = vmul.f32 -1.442695, %v1907_v16  ;;  %v3483_v5 = vmul.f32 -1.442695, %v1911_v33 }
 0x316   : > { %v4292_v21 = vpop.eup %4291  ;;  %v2890_v49 = vadd.f32 1.0, %v4290_v13  ;;  %4317 = vpow2.f32 %v3618_v6  ;;  %v2613_v6 = vpop.f32.mrf.mxu0 }
 0x317   : > { %v4294_v44 = vpop.eup %4293  ;;  %4319 = vrcp.f32 %v2188_v36  ;;  %v2189_v22 = vadd.f32 1.0, %v4292_v21  ;;  %v3624_v36 = vmul.f32 -1.442695, %v2609_v10  ;;  %v1913_v21 = vpop.f32.mrf.mxu1  ;;  %v3625_v54 = vmul.f32 -1.442695, %v2613_v6 }
 0x318   : > { %v4296_v30 = vpop.eup %4295  ;;  %4321 = vrcp.f32 %v2890_v49  ;;  %v2891_v32 = vadd.f32 1.0, %v4294_v44  ;;  %v2615_v44 = vpop.f32.mrf.mxu0 }
 0x319   : > { %v4298_v31 = vpop.eup %4297  ;;  %4323 = vrcp.f32 %v2189_v22  ;;  %v2190_v2 = vadd.f32 1.0, %v4296_v30 }
 0x31a   : > { %v4300_v63 = vpop.eup %4299  ;;  %4325 = vrcp.f32 %v2891_v32  ;;  %v2892_v20 = vadd.f32 1.0, %v4298_v31  ;;  %v3484_v32 = vmul.f32 -1.442695, %v1913_v21  ;;  %v2619_v14 = vpop.f32.mrf.mxu0 }
 0x31b   : > { %v4302_v37 = vpop.eup %4301  ;;  %4327 = vrcp.f32 %v2190_v2  ;;  %v2191_v39 = vadd.f32 1.0, %v4300_v63  ;;  %v3626_v2 = vmul.f32 -1.442695, %v2615_v44  ;;  %v1917_v63 = vpop.f32.mrf.mxu1 }
 0x31c   : > { %v4304_v48 = vpop.eup %4303  ;;  %4329 = vrcp.f32 %v2892_v20  ;;  %v2893_v45 = vadd.f32 1.0, %v4302_v37 }
 0x31d   : > { %v4306_v34 = vpop.eup %4305  ;;  %4331 = vrcp.f32 %v2191_v39  ;;  %v2192_v47 = vadd.f32 1.0, %v4304_v48 }
 0x31e   : > { %v4308_v50 = vpop.eup %4307  ;;  %4333 = vrcp.f32 %v2893_v45  ;;  %v2894_v18 = vadd.f32 1.0, %v4306_v34  ;;  %v1919_v34 = vpop.f32.mrf.mxu1 }
 0x31f   : > { %v4310_v17 = vpop.eup %4309  ;;  %4335 = vrcp.f32 %v2192_v47  ;;  %v2193_v46 = vadd.f32 1.0, %v4308_v50  ;;  %v3486_v6 = vmul.f32 -1.442695, %v1919_v34 }
 0x320   : > { %v4312_v28 = vpop.eup %4311  ;;  %4337 = vrcp.f32 %v2894_v18  ;;  %v2895_v55 = vadd.f32 1.0, %v4310_v17  ;;  %v2621_v18 = vpop.f32.mrf.mxu0 }
 0x321   : > { %v4314_v25 = vpop.eup %4313  ;;  %4339 = vrcp.f32 %v2193_v46  ;;  %v2194_v57 = vadd.f32 1.0, %v4312_v28 }
 0x322   : > { %v4316_v52 = vpop.eup %4315  ;;  %4341 = vrcp.f32 %v2895_v55  ;;  %v2896_v38 = vadd.f32 1.0, %v4314_v25  ;;  %v1923_v25 = vpop.f32.mrf.mxu1 }
 0x323   : > { %v4318_v58 = vpop.eup %4317  ;;  %4343 = vrcp.f32 %v2194_v57  ;;  %v2195_v1 = vadd.f32 1.0, %v4316_v52 }
 0x324   : > { %v4320_v61 = vpop.eup %4319  ;;  %4345 = vrcp.f32 %v2896_v38  ;;  %v2897_v11 = vadd.f32 1.0, %v4318_v58  ;;  %v2625_v38 = vpop.f32.mrf.mxu0 }
 0x325   : > { %v4322_v9 = vpop.eup %4321  ;;  %3525 = vst [vmem:[%s5139_s20 + $0x3c0] sm:$0xff] %v4320_v61  ;;  %4347 = vrcp.f32 %v2195_v1 }
 0x326   : > { %v4324_v23 = vpop.eup %4323  ;;  %3667 = vst [vmem:[%s5139_s20 + $0x580] sm:$0xff] %v4322_v9  ;;  %4349 = vrcp.f32 %v2897_v11  ;;  %v1925_v11 = vpop.f32.mrf.mxu1 }
 0x327   : > { %v4326_v12 = vpop.eup %4325  ;;  %3526 = vst.msk [vmem:[%s5139_s20 + $0x3c8] sm:$0xff] %vm945_vm1, %v4324_v23  ;;  %4351 = vpow2.f32 %v3477_v3  ;;  %v3488_v44 = vmul.f32 -1.442695, %v1925_v11 }
 0x328   : > { %v4328_v26 = vpop.eup %4327  ;;  %3668 = vst.msk [vmem:[%s5139_s20 + $0x588] sm:$0xff] %vm945_vm1, %v4326_v12  ;;  %4353 = vpow2.f32 %v3619_v8 }
 0x329   : > { %v4330_v19 = vpop.eup %4329  ;;  %3527 = vst [vmem:[%s5139_s20 + $0x3d0] sm:$0xff] %v4328_v26  ;;  %4355 = vpow2.f32 %v3478_v43  ;;  %v2627_v43 = vpop.f32.mrf.mxu0 }
 0x32a   : > { %v4332_v15 = vpop.eup %4331  ;;  %3669 = vst [vmem:[%s5139_s20 + $0x590] sm:$0xff] %v4330_v19  ;;  %4357 = vpow2.f32 %v3620_v62  ;;  %v1929_v26 = vpop.f32.mrf.mxu1 }
 0x32b   : > { %v4334_v59 = vpop.eup %4333  ;;  %3528 = vst.msk [vmem:[%s5139_s20 + $0x3d8] sm:$0xff] %vm945_vm1, %v4332_v15  ;;  %4359 = vpow2.f32 %v3479_v24  ;;  %v2631_v15 = vpop.f32.mrf.mxu0 }
 0x32c   : > { %v4336_v53 = vpop.eup %4335  ;;  %3670 = vst.msk [vmem:[%s5139_s20 + $0x598] sm:$0xff] %vm945_vm1, %v4334_v59  ;;  %4361 = vpow2.f32 %v3621_v40  ;;  %v3627_v59 = vmul.f32 -1.442695, %v2619_v14 }
 0x32d   : > { %v4338_v4 = vpop.eup %4337  ;;  %3529 = vst [vmem:[%s5139_s20 + $0x3e0] sm:$0xff] %v4336_v53  ;;  %4363 = vpow2.f32 %v3480_v51  ;;  %v3485_v51 = vmul.f32 -1.442695, %v1917_v63 }
 0x32e   : > { %v4340_v13 = vpop.eup %4339  ;;  %3671 = vst [vmem:[%s5139_s20 + $0x5a0] sm:$0xff] %v4338_v4  ;;  %4365 = vpow2.f32 %v3622_v7  ;;  %v1931_v4 = vpop.f32.mrf.mxu1 }
 0x32f   : > { %v4342_v49 = vpop.eup %4341  ;;  %3530 = vst.msk [vmem:[%s5139_s20 + $0x3e8] sm:$0xff] %vm945_vm1, %v4340_v13  ;;  %4367 = vpow2.f32 %v3481_v29  ;;  %v3487_v13 = vmul.f32 -1.442695, %v1923_v25 }
 0x330   : > { %v4344_v22 = vpop.eup %4343  ;;  %3672 = vst.msk [vmem:[%s5139_s20 + $0x5a8] sm:$0xff] %vm945_vm1, %v4342_v49  ;;  %4369 = vpow2.f32 %v3623_v41  ;;  %v3628_v41 = vmul.f32 -1.442695, %v2621_v18  ;;  %v3629_v49 = vmul.f32 -1.442695, %v2625_v38 }
 0x331   : > { %v4346_v30 = vpop.eup %4345  ;;  %3531 = vst [vmem:[%s5139_s20 + $0x3f0] sm:$0xff] %v4344_v22  ;;  %4371 = vpow2.f32 %v3482_v35 }
 0x332   : > { %v4348_v31 = vpop.eup %4347  ;;  %3673 = vst [vmem:[%s5139_s20 + $0x5b0] sm:$0xff] %v4346_v30  ;;  %4373 = vpow2.f32 %v3624_v36  ;;  %v2633_v36 = vpop.f32.mrf.mxu0 }
 0x333   : > { %v4350_v20 = vpop.eup %4349  ;;  %3532 = vst.msk [vmem:[%s5139_s20 + $0x3f8] sm:$0xff] %vm945_vm1, %v4348_v31  ;;  %4375 = vpow2.f32 %v3483_v5  ;;  %v1935_v30 = vpop.f32.mrf.mxu1  ;;  %v3489_v31 = vmul.f32 -1.442695, %v1929_v26 }
 0x334   : > { %v4352_v37 = vpop.eup %4351  ;;  %3674 = vst.msk [vmem:[%s5139_s20 + $0x5b8] sm:$0xff] %vm945_vm1, %v4350_v20  ;;  %4377 = vpow2.f32 %v3625_v54  ;;  %v3630_v54 = vmul.f32 -1.442695, %v2627_v43  ;;  %v3631_v20 = vmul.f32 -1.442695, %v2631_v15 }
 0x335   : > { %v4354_v39 = vpop.eup %4353  ;;  %v2196_v27 = vadd.f32 1.0, %v4352_v37  ;;  %4379 = vpow2.f32 %v3484_v32  ;;  %v3490_v37 = vmul.f32 -1.442695, %v1931_v4  ;;  %v3491_v34 = vmul.f32 -1.442695, %v1935_v30 }
 0x336   : > { %v4356_v48 = vpop.eup %4355  ;;  %v2898_v45 = vadd.f32 1.0, %v4354_v39  ;;  %4381 = vpow2.f32 %v3626_v2  ;;  %v2637_v2 = vpop.f32.mrf.mxu0 }
 0x337   : > { %v4358_v47 = vpop.eup %4357  ;;  %4383 = vrcp.f32 %v2196_v27  ;;  %v2197_v50 = vadd.f32 1.0, %v4356_v48  ;;  %v3632_v27 = vmul.f32 -1.442695, %v2633_v36  ;;  %v1937_v48 = vpop.f32.mrf.mxu1  ;;  %v3633_v18 = vmul.f32 -1.442695, %v2637_v2 }
 0x338   : > { %v4360_v60 = vpop.eup %4359  ;;  %4385 = vrcp.f32 %v2898_v45  ;;  %v2899_v17 = vadd.f32 1.0, %v4358_v47  ;;  %v2639_v47 = vpop.f32.mrf.mxu0 }
 0x339   : > { %v4362_v46 = vpop.eup %4361  ;;  %4387 = vrcp.f32 %v2197_v50  ;;  %v2198_v56 = vadd.f32 1.0, %v4360_v60 }
 0x33a   : > { %v4364_v28 = vpop.eup %4363  ;;  %4389 = vrcp.f32 %v2899_v17  ;;  %v2900_v55 = vadd.f32 1.0, %v4362_v46  ;;  %v3492_v17 = vmul.f32 -1.442695, %v1937_v48  ;;  %v2643_v25 = vpop.f32.mrf.mxu0 }
 0x33b   : > { %v4366_v57 = vpop.eup %4365  ;;  %4391 = vrcp.f32 %v2198_v56  ;;  %v2199_v52 = vadd.f32 1.0, %v4364_v28  ;;  %v3634_v56 = vmul.f32 -1.442695, %v2639_v47  ;;  %v1941_v28 = vpop.f32.mrf.mxu1 }
 0x33c   : > { %v4368_v42 = vpop.eup %4367  ;;  %4393 = vrcp.f32 %v2900_v55  ;;  %v2901_v58 = vadd.f32 1.0, %v4366_v57 }
 0x33d   : > { %v4370_v1 = vpop.eup %4369  ;;  %4395 = vrcp.f32 %v2199_v52  ;;  %v2200_v3 = vadd.f32 1.0, %v4368_v42 }
 0x33e   : > { %v4372_v0 = vpop.eup %4371  ;;  %4397 = vrcp.f32 %v2901_v58  ;;  %v2902_v61 = vadd.f32 1.0, %v4370_v1  ;;  %v1943_v1 = vpop.f32.mrf.mxu1 }
 0x33f   : > { %v4374_v8 = vpop.eup %4373  ;;  %4399 = vrcp.f32 %v2200_v3  ;;  %v2201_v9 = vadd.f32 1.0, %v4372_v0  ;;  %v3494_v2 = vmul.f32 -1.442695, %v1943_v1 }
 0x340   : > { %v4376_v23 = vpop.eup %4375  ;;  %4401 = vrcp.f32 %v2902_v61  ;;  %v2903_v62 = vadd.f32 1.0, %v4374_v8  ;;  %v2645_v61 = vpop.f32.mrf.mxu0 }
 0x341   : > { %v4378_v16 = vpop.eup %4377  ;;  %4403 = vrcp.f32 %v2201_v9  ;;  %v2202_v12 = vadd.f32 1.0, %v4376_v23 }
 0x342   : > { %v4380_v24 = vpop.eup %4379  ;;  %4405 = vrcp.f32 %v2903_v62  ;;  %v2904_v10 = vadd.f32 1.0, %v4378_v16  ;;  %v1947_v16 = vpop.f32.mrf.mxu1 }
 0x343   : > { %v4382_v40 = vpop.eup %4381  ;;  %4407 = vrcp.f32 %v2202_v12  ;;  %v2203_v19 = vadd.f32 1.0, %v4380_v24 }
 0x344   : > { %v4384_v7 = vpop.eup %4383  ;;  %4409 = vrcp.f32 %v2904_v10  ;;  %v2905_v33 = vadd.f32 1.0, %v4382_v40  ;;  %v2649_v10 = vpop.f32.mrf.mxu0 }
 0x345   : > { %v4386_v29 = vpop.eup %4385  ;;  %3533 = vst [vmem:[%s5139_s20 + $0x400] sm:$0xff] %v4384_v7  ;;  %4411 = vrcp.f32 %v2203_v19 }
 0x346   : > { %v4388_v53 = vpop.eup %4387  ;;  %3675 = vst [vmem:[%s5139_s20 + $0x5c0] sm:$0xff] %v4386_v29  ;;  %4413 = vrcp.f32 %v2905_v33  ;;  %v1949_v33 = vpop.f32.mrf.mxu1 }
 0x347   : > { %v4390_v35 = vpop.eup %4389  ;;  %3534 = vst.msk [vmem:[%s5139_s20 + $0x408] sm:$0xff] %vm945_vm1, %v4388_v53  ;;  %4415 = vpow2.f32 %v3485_v51  ;;  %v3496_v47 = vmul.f32 -1.442695, %v1949_v33 }
 0x348   : > { %v4392_v21 = vpop.eup %4391  ;;  %3676 = vst.msk [vmem:[%s5139_s20 + $0x5c8] sm:$0xff] %vm945_vm1, %v4390_v35  ;;  %4417 = vpow2.f32 %v3627_v59 }
 0x349   : > { %v4394_v5 = vpop.eup %4393  ;;  %3535 = vst [vmem:[%s5139_s20 + $0x410] sm:$0xff] %v4392_v21  ;;  %4419 = vpow2.f32 %v3486_v6  ;;  %v2651_v6 = vpop.f32.mrf.mxu0 }
 0x34a   : > { %v4396_v22 = vpop.eup %4395  ;;  %3677 = vst [vmem:[%s5139_s20 + $0x5d0] sm:$0xff] %v4394_v5  ;;  %4421 = vpow2.f32 %v3628_v41  ;;  %v1953_v21 = vpop.f32.mrf.mxu1 }
 0x34b   : > { %v4398_v32 = vpop.eup %4397  ;;  %3536 = vst.msk [vmem:[%s5139_s20 + $0x418] sm:$0xff] %vm945_vm1, %v4396_v22  ;;  %4423 = vpow2.f32 %v3487_v13  ;;  %v2655_v22 = vpop.f32.mrf.mxu0 }
 0x34c   : > { %v4400_v63 = vpop.eup %4399  ;;  %3678 = vst.msk [vmem:[%s5139_s20 + $0x5d8] sm:$0xff] %vm945_vm1, %v4398_v32  ;;  %4425 = vpow2.f32 %v3629_v49  ;;  %v3635_v32 = vmul.f32 -1.442695, %v2643_v25 }
 0x34d   : > { %v4402_v14 = vpop.eup %4401  ;;  %3537 = vst [vmem:[%s5139_s20 + $0x420] sm:$0xff] %v4400_v63  ;;  %4427 = vpow2.f32 %v3488_v44  ;;  %v3493_v44 = vmul.f32 -1.442695, %v1941_v28 }
 0x34e   : > { %v4404_v39 = vpop.eup %4403  ;;  %3679 = vst [vmem:[%s5139_s20 + $0x5e0] sm:$0xff] %v4402_v14  ;;  %4429 = vpow2.f32 %v3630_v54  ;;  %v1955_v14 = vpop.f32.mrf.mxu1 }
 0x34f   : > { %v4406_v45 = vpop.eup %4405  ;;  %3538 = vst.msk [vmem:[%s5139_s20 + $0x428] sm:$0xff] %vm945_vm1, %v4404_v39  ;;  %4431 = vpow2.f32 %v3489_v31  ;;  %v3495_v39 = vmul.f32 -1.442695, %v1947_v16 }
 0x350   : > { %v4408_v50 = vpop.eup %4407  ;;  %3680 = vst.msk [vmem:[%s5139_s20 + $0x5e8] sm:$0xff] %vm945_vm1, %v4406_v45  ;;  %4433 = vpow2.f32 %v3631_v20  ;;  %v3636_v20 = vmul.f32 -1.442695, %v2645_v61  ;;  %v3637_v45 = vmul.f32 -1.442695, %v2649_v10 }
 0x351   : > { %v4410_v60 = vpop.eup %4409  ;;  %3539 = vst [vmem:[%s5139_s20 + $0x430] sm:$0xff] %v4408_v50  ;;  %4435 = vpow2.f32 %v3490_v37 }
 0x352   : > { %v4412_v46 = vpop.eup %4411  ;;  %3681 = vst [vmem:[%s5139_s20 + $0x5f0] sm:$0xff] %v4410_v60  ;;  %4437 = vpow2.f32 %v3632_v27  ;;  %v2657_v27 = vpop.f32.mrf.mxu0 }
 0x353   : > { %v4414_v55 = vpop.eup %4413  ;;  %3540 = vst.msk [vmem:[%s5139_s20 + $0x438] sm:$0xff] %vm945_vm1, %v4412_v46  ;;  %4439 = vpow2.f32 %v3491_v34  ;;  %v1959_v60 = vpop.f32.mrf.mxu1  ;;  %v3497_v46 = vmul.f32 -1.442695, %v1953_v21 }
 0x354   : > { %v4416_v57 = vpop.eup %4415  ;;  %3682 = vst.msk [vmem:[%s5139_s20 + $0x5f8] sm:$0xff] %vm945_vm1, %v4414_v55  ;;  %4441 = vpow2.f32 %v3633_v18  ;;  %v3638_v18 = vmul.f32 -1.442695, %v2651_v6  ;;  %v3639_v55 = vmul.f32 -1.442695, %v2655_v22 }
 0x355   : > { %v4418_v52 = vpop.eup %4417  ;;  %v2204_v38 = vadd.f32 1.0, %v4416_v57  ;;  %4443 = vpow2.f32 %v3492_v17  ;;  %v3498_v57 = vmul.f32 -1.442695, %v1955_v14  ;;  %v3499_v1 = vmul.f32 -1.442695, %v1959_v60 }
 0x356   : > { %v4420_v42 = vpop.eup %4419  ;;  %v2906_v58 = vadd.f32 1.0, %v4418_v52  ;;  %4445 = vpow2.f32 %v3634_v56  ;;  %v2661_v56 = vpop.f32.mrf.mxu0 }
 0x357   : > { %v4422_v3 = vpop.eup %4421  ;;  %4447 = vrcp.f32 %v2204_v38  ;;  %v2205_v0 = vadd.f32 1.0, %v4420_v42  ;;  %v3640_v38 = vmul.f32 -1.442695, %v2657_v27  ;;  %v1961_v42 = vpop.f32.mrf.mxu1  ;;  %v3641_v61 = vmul.f32 -1.442695, %v2661_v56 }
 0x358   : > { %v4424_v11 = vpop.eup %4423  ;;  %4449 = vrcp.f32 %v2906_v58  ;;  %v2907_v8 = vadd.f32 1.0, %v4422_v3  ;;  %v2663_v3 = vpop.f32.mrf.mxu0 }
 0x359   : > { %v4426_v9 = vpop.eup %4425  ;;  %4451 = vrcp.f32 %v2205_v0  ;;  %v2206_v43 = vadd.f32 1.0, %v4424_v11 }
 0x35a   : > { %v4428_v23 = vpop.eup %4427  ;;  %4453 = vrcp.f32 %v2907_v8  ;;  %v2908_v62 = vadd.f32 1.0, %v4426_v9  ;;  %v3500_v8 = vmul.f32 -1.442695, %v1961_v42  ;;  %v2667_v16 = vpop.f32.mrf.mxu0 }
 0x35b   : > { %v4430_v12 = vpop.eup %4429  ;;  %4455 = vrcp.f32 %v2206_v43  ;;  %v2207_v24 = vadd.f32 1.0, %v4428_v23  ;;  %v3642_v43 = vmul.f32 -1.442695, %v2663_v3  ;;  %v1965_v23 = vpop.f32.mrf.mxu1 }
 0x35c   : > { %v4432_v26 = vpop.eup %4431  ;;  %4457 = vrcp.f32 %v2908_v62  ;;  %v2909_v40 = vadd.f32 1.0, %v4430_v12 }
 0x35d   : > { %v4434_v19 = vpop.eup %4433  ;;  %4459 = vrcp.f32 %v2207_v24  ;;  %v2208_v51 = vadd.f32 1.0, %v4432_v26 }
 0x35e   : > { %v4436_v15 = vpop.eup %4435  ;;  %4461 = vrcp.f32 %v2909_v40  ;;  %v2910_v7 = vadd.f32 1.0, %v4434_v19  ;;  %v1967_v19 = vpop.f32.mrf.mxu1 }
 0x35f   : > { %v4438_v59 = vpop.eup %4437  ;;  %4463 = vrcp.f32 %v2208_v51  ;;  %v2209_v29 = vadd.f32 1.0, %v4436_v15  ;;  %v3502_v56 = vmul.f32 -1.442695, %v1967_v19 }
 0x360   : > { %v4440_v53 = vpop.eup %4439  ;;  %4465 = vrcp.f32 %v2910_v7  ;;  %v2911_v41 = vadd.f32 1.0, %v4438_v59  ;;  %v2669_v7 = vpop.f32.mrf.mxu0 }
 0x361   : > { %v4442_v4 = vpop.eup %4441  ;;  %4467 = vrcp.f32 %v2209_v29  ;;  %v2210_v35 = vadd.f32 1.0, %v4440_v53 }
 0x362   : > { %v4444_v13 = vpop.eup %4443  ;;  %4469 = vrcp.f32 %v2911_v41  ;;  %v2912_v36 = vadd.f32 1.0, %v4442_v4  ;;  %v1971_v4 = vpop.f32.mrf.mxu1 }
 0x363   : > { %v4446_v49 = vpop.eup %4445  ;;  %4471 = vrcp.f32 %v2210_v35  ;;  %v2211_v5 = vadd.f32 1.0, %v4444_v13 }
 0x364   : > { %v4448_v54 = vpop.eup %4447  ;;  %4473 = vrcp.f32 %v2912_v36  ;;  %v2913_v30 = vadd.f32 1.0, %v4446_v49  ;;  %v2673_v36 = vpop.f32.mrf.mxu0 }
 0x365   : > { %v4450_v31 = vpop.eup %4449  ;;  %3541 = vst [vmem:[%s5139_s20 + $0x440] sm:$0xff] %v4448_v54  ;;  %4475 = vrcp.f32 %v2211_v5 }
 0x366   : > { %v4452_v63 = vpop.eup %4451  ;;  %3683 = vst [vmem:[%s5139_s20 + $0x600] sm:$0xff] %v4450_v31  ;;  %4477 = vrcp.f32 %v2913_v30  ;;  %v1973_v30 = vpop.f32.mrf.mxu1 }
 0x367   : > { %v4454_v37 = vpop.eup %4453  ;;  %3542 = vst.msk [vmem:[%s5139_s20 + $0x448] sm:$0xff] %vm945_vm1, %v4452_v63  ;;  %4479 = vpow2.f32 %v3493_v44  ;;  %v3504_v3 = vmul.f32 -1.442695, %v1973_v30 }
 0x368   : > { %v4456_v48 = vpop.eup %4455  ;;  %3684 = vst.msk [vmem:[%s5139_s20 + $0x608] sm:$0xff] %vm945_vm1, %v4454_v37  ;;  %4481 = vpow2.f32 %v3635_v32 }
 0x369   : > { %v4458_v34 = vpop.eup %4457  ;;  %3543 = vst [vmem:[%s5139_s20 + $0x450] sm:$0xff] %v4456_v48  ;;  %4483 = vpow2.f32 %v3494_v2  ;;  %v2675_v2 = vpop.f32.mrf.mxu0 }
 0x36a   : > { %v4460_v50 = vpop.eup %4459  ;;  %3685 = vst [vmem:[%s5139_s20 + $0x610] sm:$0xff] %v4458_v34  ;;  %4485 = vpow2.f32 %v3636_v20  ;;  %v1977_v48 = vpop.f32.mrf.mxu1 }
 0x36b   : > { %v4462_v17 = vpop.eup %4461  ;;  %3544 = vst.msk [vmem:[%s5139_s20 + $0x458] sm:$0xff] %vm945_vm1, %v4460_v50  ;;  %4487 = vpow2.f32 %v3495_v39  ;;  %v2679_v50 = vpop.f32.mrf.mxu0 }
 0x36c   : > { %v4464_v28 = vpop.eup %4463  ;;  %3686 = vst.msk [vmem:[%s5139_s20 + $0x618] sm:$0xff] %vm945_vm1, %v4462_v17  ;;  %4489 = vpow2.f32 %v3637_v45  ;;  %v3643_v17 = vmul.f32 -1.442695, %v2667_v16 }
 0x36d   : > { %v4466_v25 = vpop.eup %4465  ;;  %3545 = vst [vmem:[%s5139_s20 + $0x460] sm:$0xff] %v4464_v28  ;;  %4491 = vpow2.f32 %v3496_v47  ;;  %v3501_v47 = vmul.f32 -1.442695, %v1965_v23 }
 0x36e   : > { %v4468_v52 = vpop.eup %4467  ;;  %3687 = vst [vmem:[%s5139_s20 + $0x620] sm:$0xff] %v4466_v25  ;;  %4493 = vpow2.f32 %v3638_v18  ;;  %v1979_v25 = vpop.f32.mrf.mxu1 }
 0x36f   : > { %v4470_v58 = vpop.eup %4469  ;;  %3546 = vst.msk [vmem:[%s5139_s20 + $0x468] sm:$0xff] %vm945_vm1, %v4468_v52  ;;  %4495 = vpow2.f32 %v3497_v46  ;;  %v3503_v52 = vmul.f32 -1.442695, %v1971_v4 }
 0x370   : > { %v4472_v0 = vpop.eup %4471  ;;  %3688 = vst.msk [vmem:[%s5139_s20 + $0x628] sm:$0xff] %vm945_vm1, %v4470_v58  ;;  %4497 = vpow2.f32 %v3639_v55  ;;  %v3644_v55 = vmul.f32 -1.442695, %v2669_v7  ;;  %v3645_v58 = vmul.f32 -1.442695, %v2673_v36 }
 0x371   : > { %v4474_v11 = vpop.eup %4473  ;;  %3547 = vst [vmem:[%s5139_s20 + $0x470] sm:$0xff] %v4472_v0  ;;  %4499 = vpow2.f32 %v3498_v57 }
 0x372   : > { %v4476_v9 = vpop.eup %4475  ;;  %3689 = vst [vmem:[%s5139_s20 + $0x630] sm:$0xff] %v4474_v11  ;;  %4501 = vpow2.f32 %v3640_v38  ;;  %v2681_v38 = vpop.f32.mrf.mxu0 }
 0x373   : > { %v4478_v62 = vpop.eup %4477  ;;  %3548 = vst.msk [vmem:[%s5139_s20 + $0x478] sm:$0xff] %vm945_vm1, %v4476_v9  ;;  %4503 = vpow2.f32 %v3499_v1  ;;  %v1983_v11 = vpop.f32.mrf.mxu1  ;;  %v3505_v9 = vmul.f32 -1.442695, %v1977_v48 }
 0x374   : > { %v4480_v12 = vpop.eup %4479  ;;  %3690 = vst.msk [vmem:[%s5139_s20 + $0x638] sm:$0xff] %vm945_vm1, %v4478_v62  ;;  %4505 = vpow2.f32 %v3641_v61  ;;  %v3646_v61 = vmul.f32 -1.442695, %v2675_v2  ;;  %v3647_v62 = vmul.f32 -1.442695, %v2679_v50 }
 0x375   : > { %v4482_v24 = vpop.eup %4481  ;;  %v2212_v10 = vadd.f32 1.0, %v4480_v12  ;;  %4507 = vpow2.f32 %v3500_v8  ;;  %v3506_v12 = vmul.f32 -1.442695, %v1979_v25  ;;  %v3507_v19 = vmul.f32 -1.442695, %v1983_v11 }
 0x376   : > { %v4484_v26 = vpop.eup %4483  ;;  %v2914_v40 = vadd.f32 1.0, %v4482_v24  ;;  %4509 = vpow2.f32 %v3642_v43  ;;  %v2685_v43 = vpop.f32.mrf.mxu0 }
 0x377   : > { %v4486_v51 = vpop.eup %4485  ;;  %4511 = vrcp.f32 %v2212_v10  ;;  %v2213_v15 = vadd.f32 1.0, %v4484_v26  ;;  %v3648_v10 = vmul.f32 -1.442695, %v2681_v38  ;;  %v1985_v26 = vpop.f32.mrf.mxu1  ;;  %v3649_v7 = vmul.f32 -1.442695, %v2685_v43 }
 0x378   : > { %v4488_v33 = vpop.eup %4487  ;;  %4513 = vrcp.f32 %v2914_v40  ;;  %v2915_v59 = vadd.f32 1.0, %v4486_v51  ;;  %v2687_v51 = vpop.f32.mrf.mxu0 }
 0x379   : > { %v4490_v29 = vpop.eup %4489  ;;  %4515 = vrcp.f32 %v2213_v15  ;;  %v2214_v6 = vadd.f32 1.0, %v4488_v33 }
 0x37a   : > { %v4492_v53 = vpop.eup %4491  ;;  %4517 = vrcp.f32 %v2915_v59  ;;  %v2916_v41 = vadd.f32 1.0, %v4490_v29  ;;  %v3508_v59 = vmul.f32 -1.442695, %v1985_v26  ;;  %v2691_v4 = vpop.f32.mrf.mxu0 }
 0x37b   : > { %v4494_v35 = vpop.eup %4493  ;;  %4519 = vrcp.f32 %v2214_v6  ;;  %v2215_v13 = vadd.f32 1.0, %v4492_v53  ;;  %v3650_v6 = vmul.f32 -1.442695, %v2687_v51  ;;  %v1989_v53 = vpop.f32.mrf.mxu1 }
 0x37c   : > { %v4496_v21 = vpop.eup %4495  ;;  %4521 = vrcp.f32 %v2916_v41  ;;  %v2917_v49 = vadd.f32 1.0, %v4494_v35 }
 0x37d   : > { %v4498_v5 = vpop.eup %4497  ;;  %4523 = vrcp.f32 %v2215_v13  ;;  %v2216_v44 = vadd.f32 1.0, %v4496_v21 }
 0x37e   : > { %v4500_v22 = vpop.eup %4499  ;;  %4525 = vrcp.f32 %v2917_v49  ;;  %v2918_v54 = vadd.f32 1.0, %v4498_v5  ;;  %v1991_v5 = vpop.f32.mrf.mxu1 }
 0x37f   : > { %v4502_v32 = vpop.eup %4501  ;;  %4527 = vrcp.f32 %v2216_v44  ;;  %v2217_v31 = vadd.f32 1.0, %v4500_v22  ;;  %v3510_v43 = vmul.f32 -1.442695, %v1991_v5 }
 0x380   : > { %v4504_v63 = vpop.eup %4503  ;;  %4529 = vrcp.f32 %v2918_v54  ;;  %v2919_v20 = vadd.f32 1.0, %v4502_v32  ;;  %v2693_v54 = vpop.f32.mrf.mxu0 }
 0x381   : > { %v4506_v14 = vpop.eup %4505  ;;  %4531 = vrcp.f32 %v2217_v31  ;;  %v2218_v37 = vadd.f32 1.0, %v4504_v63 }
 0x382   : > { %v4508_v39 = vpop.eup %4507  ;;  %4533 = vrcp.f32 %v2919_v20  ;;  %v2920_v27 = vadd.f32 1.0, %v4506_v14  ;;  %v1995_v14 = vpop.f32.mrf.mxu1 }
 0x383   : > { %v4510_v45 = vpop.eup %4509  ;;  %4535 = vrcp.f32 %v2218_v37  ;;  %v2219_v34 = vadd.f32 1.0, %v4508_v39 }
 0x384   : > { %v4512_v18 = vpop.eup %4511  ;;  %4537 = vrcp.f32 %v2920_v27  ;;  %v2921_v60 = vadd.f32 1.0, %v4510_v45  ;;  %v2697_v27 = vpop.f32.mrf.mxu0 }
 0x385   : > { %v4514_v46 = vpop.eup %4513  ;;  %3549 = vst [vmem:[%s5139_s20 + $0x480] sm:$0xff] %v4512_v18  ;;  %4539 = vrcp.f32 %v2219_v34 }
 0x386   : > { %v4516_v28 = vpop.eup %4515  ;;  %3691 = vst [vmem:[%s5139_s20 + $0x640] sm:$0xff] %v4514_v46  ;;  %4541 = vrcp.f32 %v2921_v60  ;;  %v1997_v60 = vpop.f32.mrf.mxu1 }
 0x387   : > { %v4518_v57 = vpop.eup %4517  ;;  %3550 = vst.msk [vmem:[%s5139_s20 + $0x488] sm:$0xff] %vm945_vm1, %v4516_v28  ;;  %4543 = vpow2.f32 %v3501_v47  ;;  %v3512_v51 = vmul.f32 -1.442695, %v1997_v60 }
 0x388   : > { %v4520_v42 = vpop.eup %4519  ;;  %3692 = vst.msk [vmem:[%s5139_s20 + $0x648] sm:$0xff] %vm945_vm1, %v4518_v57  ;;  %4545 = vpow2.f32 %v3643_v17 }
 0x389   : > { %v4522_v1 = vpop.eup %4521  ;;  %3551 = vst [vmem:[%s5139_s20 + $0x490] sm:$0xff] %v4520_v42  ;;  %4547 = vpow2.f32 %v3502_v56  ;;  %v2699_v56 = vpop.f32.mrf.mxu0 }
 0x38a   : > { %v4524_v0 = vpop.eup %4523  ;;  %3693 = vst [vmem:[%s5139_s20 + $0x650] sm:$0xff] %v4522_v1  ;;  %4549 = vpow2.f32 %v3644_v55  ;;  %v2001_v42 = vpop.f32.mrf.mxu1 }
 0x38b   : > { %v4526_v8 = vpop.eup %4525  ;;  %3552 = vst.msk [vmem:[%s5139_s20 + $0x498] sm:$0xff] %vm945_vm1, %v4524_v0  ;;  %4551 = vpow2.f32 %v3503_v52  ;;  %v2703_v0 = vpop.f32.mrf.mxu0 }
 0x38c   : > { %v4528_v23 = vpop.eup %4527  ;;  %3694 = vst.msk [vmem:[%s5139_s20 + $0x658] sm:$0xff] %vm945_vm1, %v4526_v8  ;;  %4553 = vpow2.f32 %v3645_v58  ;;  %v3651_v8 = vmul.f32 -1.442695, %v2691_v4 }
 0x38d   : > { %v4530_v16 = vpop.eup %4529  ;;  %3553 = vst [vmem:[%s5139_s20 + $0x4a0] sm:$0xff] %v4528_v23  ;;  %4555 = vpow2.f32 %v3504_v3  ;;  %v3509_v3 = vmul.f32 -1.442695, %v1989_v53 }
 0x38e   : > { %v4532_v24 = vpop.eup %4531  ;;  %3695 = vst [vmem:[%s5139_s20 + $0x660] sm:$0xff] %v4530_v16  ;;  %4557 = vpow2.f32 %v3646_v61  ;;  %v2003_v16 = vpop.f32.mrf.mxu1 }
 0x38f   : > { %v4534_v40 = vpop.eup %4533  ;;  %3554 = vst.msk [vmem:[%s5139_s20 + $0x4a8] sm:$0xff] %vm945_vm1, %v4532_v24  ;;  %4559 = vpow2.f32 %v3505_v9  ;;  %v3511_v24 = vmul.f32 -1.442695, %v1995_v14 }
 0x390   : > { %v4536_v15 = vpop.eup %4535  ;;  %3696 = vst.msk [vmem:[%s5139_s20 + $0x668] sm:$0xff] %vm945_vm1, %v4534_v40  ;;  %4561 = vpow2.f32 %v3647_v62  ;;  %v3652_v62 = vmul.f32 -1.442695, %v2693_v54  ;;  %v3653_v40 = vmul.f32 -1.442695, %v2697_v27 }
 0x391   : > { %v4538_v33 = vpop.eup %4537  ;;  %3555 = vst [vmem:[%s5139_s20 + $0x4b0] sm:$0xff] %v4536_v15  ;;  %4563 = vpow2.f32 %v3506_v12 }
 0x392   : > { %v4540_v29 = vpop.eup %4539  ;;  %3697 = vst [vmem:[%s5139_s20 + $0x670] sm:$0xff] %v4538_v33  ;;  %4565 = vpow2.f32 %v3648_v10  ;;  %v2705_v10 = vpop.f32.mrf.mxu0 }
 0x393   : > { %v4542_v41 = vpop.eup %4541  ;;  %3556 = vst.msk [vmem:[%s5139_s20 + $0x4b8] sm:$0xff] %vm945_vm1, %v4540_v29  ;;  %4567 = vpow2.f32 %v3507_v19  ;;  %v2007_v33 = vpop.f32.mrf.mxu1  ;;  %v3513_v29 = vmul.f32 -1.442695, %v2001_v42 }
 0x394   : > { %v4544_v35 = vpop.eup %4543  ;;  %3698 = vst.msk [vmem:[%s5139_s20 + $0x678] sm:$0xff] %vm945_vm1, %v4542_v41  ;;  %4569 = vpow2.f32 %v3649_v7  ;;  %v3654_v7 = vmul.f32 -1.442695, %v2699_v56  ;;  %v3655_v41 = vmul.f32 -1.442695, %v2703_v0 }
 0x395   : > { %v4546_v13 = vpop.eup %4545  ;;  %v2220_v36 = vadd.f32 1.0, %v4544_v35  ;;  %4571 = vpow2.f32 %v3508_v59  ;;  %v3514_v35 = vmul.f32 -1.442695, %v2003_v16  ;;  %v3515_v5 = vmul.f32 -1.442695, %v2007_v33 }
 0x396   : > { %v4548_v21 = vpop.eup %4547  ;;  %v2922_v49 = vadd.f32 1.0, %v4546_v13  ;;  %4573 = vpow2.f32 %v3650_v6  ;;  %v2709_v6 = vpop.f32.mrf.mxu0 }
 0x397   : > { %v4550_v44 = vpop.eup %4549  ;;  %4575 = vrcp.f32 %v2220_v36  ;;  %v2221_v22 = vadd.f32 1.0, %v4548_v21  ;;  %v3656_v36 = vmul.f32 -1.442695, %v2705_v10  ;;  %v2009_v21 = vpop.f32.mrf.mxu1  ;;  %v3657_v54 = vmul.f32 -1.442695, %v2709_v6 }
 0x398   : > { %v4552_v30 = vpop.eup %4551  ;;  %4577 = vrcp.f32 %v2922_v49  ;;  %v2923_v32 = vadd.f32 1.0, %v4550_v44  ;;  %v2711_v44 = vpop.f32.mrf.mxu0 }
 0x399   : > { %v4554_v31 = vpop.eup %4553  ;;  %4579 = vrcp.f32 %v2221_v22  ;;  %v2222_v2 = vadd.f32 1.0, %v4552_v30 }
 0x39a   : > { %v4556_v63 = vpop.eup %4555  ;;  %4581 = vrcp.f32 %v2923_v32  ;;  %v2924_v20 = vadd.f32 1.0, %v4554_v31  ;;  %v3516_v32 = vmul.f32 -1.442695, %v2009_v21 }
 0x39b   : > { %v4558_v37 = vpop.eup %4557  ;;  %4583 = vrcp.f32 %v2222_v2  ;;  %v2223_v39 = vadd.f32 1.0, %v4556_v63  ;;  %v3658_v2 = vmul.f32 -1.442695, %v2711_v44 }
 0x39c   : > { %v4560_v48 = vpop.eup %4559  ;;  %4585 = vrcp.f32 %v2924_v20  ;;  %v2925_v45 = vadd.f32 1.0, %v4558_v37 }
 0x39d   : > { %v4562_v34 = vpop.eup %4561  ;;  %4587 = vrcp.f32 %v2223_v39  ;;  %v2224_v47 = vadd.f32 1.0, %v4560_v48 }
 0x39e   : > { %v4564_v50 = vpop.eup %4563  ;;  %4589 = vrcp.f32 %v2925_v45  ;;  %v2926_v18 = vadd.f32 1.0, %v4562_v34 }
 0x39f   : > { %v4566_v17 = vpop.eup %4565  ;;  %4591 = vrcp.f32 %v2224_v47  ;;  %v2225_v46 = vadd.f32 1.0, %v4564_v50 }
 0x3a0   : > { %v4568_v28 = vpop.eup %4567  ;;  %4593 = vrcp.f32 %v2926_v18  ;;  %v2927_v55 = vadd.f32 1.0, %v4566_v17 }
 0x3a1   : > { %v4570_v25 = vpop.eup %4569  ;;  %4595 = vrcp.f32 %v2225_v46  ;;  %v2226_v57 = vadd.f32 1.0, %v4568_v28 }
 0x3a2   : > { %v4572_v52 = vpop.eup %4571  ;;  %4597 = vrcp.f32 %v2927_v55  ;;  %v2928_v38 = vadd.f32 1.0, %v4570_v25 }
 0x3a3   : > { %v4574_v58 = vpop.eup %4573  ;;  %4599 = vrcp.f32 %v2226_v57  ;;  %v2227_v1 = vadd.f32 1.0, %v4572_v52 }
 0x3a4   : > { %v4576_v61 = vpop.eup %4575  ;;  %4601 = vrcp.f32 %v2928_v38  ;;  %v2929_v11 = vadd.f32 1.0, %v4574_v58 }
 0x3a5   : > { %v4578_v9 = vpop.eup %4577  ;;  %3557 = vst [vmem:[%s5139_s20 + $0x4c0] sm:$0xff] %v4576_v61  ;;  %4603 = vrcp.f32 %v2227_v1 }
 0x3a6   : > { %v4580_v23 = vpop.eup %4579  ;;  %3699 = vst [vmem:[%s5139_s20 + $0x680] sm:$0xff] %v4578_v9  ;;  %4605 = vrcp.f32 %v2929_v11 }
 0x3a7   : > { %v4582_v12 = vpop.eup %4581  ;;  %3558 = vst.msk [vmem:[%s5139_s20 + $0x4c8] sm:$0xff] %vm945_vm1, %v4580_v23  ;;  %4607 = vpow2.f32 %v3509_v3 }
 0x3a8   : > { %v4584_v26 = vpop.eup %4583  ;;  %3700 = vst.msk [vmem:[%s5139_s20 + $0x688] sm:$0xff] %vm945_vm1, %v4582_v12  ;;  %4609 = vpow2.f32 %v3651_v8 }
 0x3a9   : > { %v4586_v19 = vpop.eup %4585  ;;  %3559 = vst [vmem:[%s5139_s20 + $0x4d0] sm:$0xff] %v4584_v26  ;;  %4611 = vpow2.f32 %v3510_v43 }
 0x3aa   : > { %v4588_v15 = vpop.eup %4587  ;;  %3701 = vst [vmem:[%s5139_s20 + $0x690] sm:$0xff] %v4586_v19  ;;  %4613 = vpow2.f32 %v3652_v62 }
 0x3ab   : > { %v4590_v59 = vpop.eup %4589  ;;  %3560 = vst.msk [vmem:[%s5139_s20 + $0x4d8] sm:$0xff] %vm945_vm1, %v4588_v15  ;;  %4615 = vpow2.f32 %v3511_v24 }
 0x3ac   : > { %v4592_v53 = vpop.eup %4591  ;;  %3702 = vst.msk [vmem:[%s5139_s20 + $0x698] sm:$0xff] %vm945_vm1, %v4590_v59  ;;  %4617 = vpow2.f32 %v3653_v40 }
 0x3ad   : > { %v4594_v4 = vpop.eup %4593  ;;  %3561 = vst [vmem:[%s5139_s20 + $0x4e0] sm:$0xff] %v4592_v53  ;;  %4619 = vpow2.f32 %v3512_v51 }
 0x3ae   : > { %v4596_v13 = vpop.eup %4595  ;;  %3703 = vst [vmem:[%s5139_s20 + $0x6a0] sm:$0xff] %v4594_v4  ;;  %4621 = vpow2.f32 %v3654_v7 }
 0x3af   : > { %v4598_v49 = vpop.eup %4597  ;;  %3562 = vst.msk [vmem:[%s5139_s20 + $0x4e8] sm:$0xff] %vm945_vm1, %v4596_v13  ;;  %4623 = vpow2.f32 %v3513_v29 }
 0x3b0   : > { %v4600_v22 = vpop.eup %4599  ;;  %3704 = vst.msk [vmem:[%s5139_s20 + $0x6a8] sm:$0xff] %vm945_vm1, %v4598_v49  ;;  %4625 = vpow2.f32 %v3655_v41 }
 0x3b1   : > { %v4602_v30 = vpop.eup %4601  ;;  %3563 = vst [vmem:[%s5139_s20 + $0x4f0] sm:$0xff] %v4600_v22  ;;  %4627 = vpow2.f32 %v3514_v35 }
 0x3b2   : > { %v4604_v31 = vpop.eup %4603  ;;  %3705 = vst [vmem:[%s5139_s20 + $0x6b0] sm:$0xff] %v4602_v30  ;;  %4629 = vpow2.f32 %v3656_v36 }
 0x3b3   : > { %v4606_v63 = vpop.eup %4605  ;;  %3564 = vst.msk [vmem:[%s5139_s20 + $0x4f8] sm:$0xff] %vm945_vm1, %v4604_v31  ;;  %4631 = vpow2.f32 %v3515_v5 }
 0x3b4   : > { %v4608_v20 = vpop.eup %4607  ;;  %3706 = vst.msk [vmem:[%s5139_s20 + $0x6b8] sm:$0xff] %vm945_vm1, %v4606_v63  ;;  %4633 = vpow2.f32 %v3657_v54 }
 0x3b5   : > { %v4610_v14 = vpop.eup %4609  ;;  %v2228_v37 = vadd.f32 1.0, %v4608_v20  ;;  %4635 = vpow2.f32 %v3516_v32 }
 0x3b6   : > { %v4612_v39 = vpop.eup %4611  ;;  %v2930_v27 = vadd.f32 1.0, %v4610_v14  ;;  %4637 = vpow2.f32 %v3658_v2 }
 0x3b7   : > { %v4614_v48 = vpop.eup %4613  ;;  %4639 = vrcp.f32 %v2228_v37  ;;  %v2229_v45 = vadd.f32 1.0, %v4612_v39 }
 0x3b8   : > { %v4616_v34 = vpop.eup %4615  ;;  %4641 = vrcp.f32 %v2930_v27  ;;  %v2931_v47 = vadd.f32 1.0, %v4614_v48 }
 0x3b9   : > { %v4618_v50 = vpop.eup %4617  ;;  %4643 = vrcp.f32 %v2229_v45  ;;  %v2230_v18 = vadd.f32 1.0, %v4616_v34 }
 0x3ba   : > { %v4620_v60 = vpop.eup %4619  ;;  %4645 = vrcp.f32 %v2931_v47  ;;  %v2932_v17 = vadd.f32 1.0, %v4618_v50 }
 0x3bb   : > { %v4622_v46 = vpop.eup %4621  ;;  %4647 = vrcp.f32 %v2230_v18  ;;  %v2231_v56 = vadd.f32 1.0, %v4620_v60 }
 0x3bc   : > { %v4624_v28 = vpop.eup %4623  ;;  %4649 = vrcp.f32 %v2932_v17  ;;  %v2933_v55 = vadd.f32 1.0, %v4622_v46 }
 0x3bd   : > { %v4626_v25 = vpop.eup %4625  ;;  %4651 = vrcp.f32 %v2231_v56  ;;  %v2232_v57 = vadd.f32 1.0, %v4624_v28 }
 0x3be   : > { %v4628_v52 = vpop.eup %4627  ;;  %4653 = vrcp.f32 %v2933_v55  ;;  %v2934_v38 = vadd.f32 1.0, %v4626_v25 }
 0x3bf   : > { %v4630_v42 = vpop.eup %4629  ;;  %4655 = vrcp.f32 %v2232_v57  ;;  %v2233_v58 = vadd.f32 1.0, %v4628_v52 }
 0x3c0   : > { %v4632_v1 = vpop.eup %4631  ;;  %4657 = vrcp.f32 %v2934_v38  ;;  %v2935_v3 = vadd.f32 1.0, %v4630_v42 }
 0x3c1   : > { %v4634_v0 = vpop.eup %4633  ;;  %4659 = vrcp.f32 %v2233_v58  ;;  %v2234_v61 = vadd.f32 1.0, %v4632_v1 }
 0x3c2   : > { %v4636_v11 = vpop.eup %4635  ;;  %4661 = vrcp.f32 %v2935_v3  ;;  %v2936_v8 = vadd.f32 1.0, %v4634_v0 }
 0x3c3   : > { %v4638_v9 = vpop.eup %4637  ;;  %4663 = vrcp.f32 %v2234_v61  ;;  %v2235_v43 = vadd.f32 1.0, %v4636_v11 }
 0x3c4   : > { %v4640_v23 = vpop.eup %4639  ;;  %4665 = vrcp.f32 %v2936_v8  ;;  %v2937_v62 = vadd.f32 1.0, %v4638_v9 }
 0x3c5   : > { %v4642_v16 = vpop.eup %4641  ;;  %3565 = vst [vmem:[%s5139_s20 + $0x500] sm:$0xff] %v4640_v23  ;;  %4667 = vrcp.f32 %v2235_v43 }
 0x3c6   : > { %v4644_v12 = vpop.eup %4643  ;;  %3707 = vst [vmem:[%s5139_s20 + $0x6c0] sm:$0xff] %v4642_v16  ;;  %4669 = vrcp.f32 %v2937_v62 }
 0x3c7   : > { %v4646_v24 = vpop.eup %4645  ;;  %3566 = vst.msk [vmem:[%s5139_s20 + $0x508] sm:$0xff] %vm945_vm1, %v4644_v12 }
 0x3c8   : > { %v4648_v10 = vpop.eup %4647  ;;  %3708 = vst.msk [vmem:[%s5139_s20 + $0x6c8] sm:$0xff] %vm945_vm1, %v4646_v24 }
 0x3c9   : > { %v4650_v26 = vpop.eup %4649  ;;  %3567 = vst [vmem:[%s5139_s20 + $0x510] sm:$0xff] %v4648_v10 }
 0x3ca   : > { %v4652_v40 = vpop.eup %4651  ;;  %3709 = vst [vmem:[%s5139_s20 + $0x6d0] sm:$0xff] %v4650_v26 }
 0x3cb   : > { %v4654_v19 = vpop.eup %4653  ;;  %3568 = vst.msk [vmem:[%s5139_s20 + $0x518] sm:$0xff] %vm945_vm1, %v4652_v40 }
 0x3cc   : > { %v4656_v51 = vpop.eup %4655  ;;  %3710 = vst.msk [vmem:[%s5139_s20 + $0x6d8] sm:$0xff] %vm945_vm1, %v4654_v19 }
 0x3cd   : > { %v4658_v15 = vpop.eup %4657  ;;  %3569 = vst [vmem:[%s5139_s20 + $0x520] sm:$0xff] %v4656_v51 }
 0x3ce   : > { %v4660_v7 = vpop.eup %4659  ;;  %3711 = vst [vmem:[%s5139_s20 + $0x6e0] sm:$0xff] %v4658_v15 }
 0x3cf   : > { %v4662_v33 = vpop.eup %4661  ;;  %3570 = vst.msk [vmem:[%s5139_s20 + $0x528] sm:$0xff] %vm945_vm1, %v4660_v7 }
 0x3d0   : > { %v4664_v59 = vpop.eup %4663  ;;  %3712 = vst.msk [vmem:[%s5139_s20 + $0x6e8] sm:$0xff] %vm945_vm1, %v4662_v33 }
 0x3d1   : > { %v4666_v29 = vpop.eup %4665  ;;  %3571 = vst [vmem:[%s5139_s20 + $0x530] sm:$0xff] %v4664_v59 }
 0x3d2   : > { %v4668_v6 = vpop.eup %4667  ;;  %3713 = vst [vmem:[%s5139_s20 + $0x6f0] sm:$0xff] %v4666_v29 }
 0x3d3   : > { %v4670_v53 = vpop.eup %4669  ;;  %3572 = vst.msk [vmem:[%s5139_s20 + $0x538] sm:$0xff] %vm945_vm1, %v4668_v6 }
 0x3d4   : > { %3714 = vst.msk [vmem:[%s5139_s20 + $0x6f8] sm:$0xff] %vm945_vm1, %v4670_v53 }
 0x3d5   : > { %4738 = shalt.err (!%p4735_p0)
}
 0x3d6   : > { %s4739_s7 = scalar_lea.hbm %s5921_s10, 28672  ;;  %s4743_s26 = scalar_lea.hbm %s5975_s3, 57344 }
 0x3d7   : > { %p4740_p1 = scmp.ne.s32.totalorder %s5921_s10, %s4739_s7  ;;  %p4744_p4 = scmp.lt.s32.totalorder %s5921_s10, %s5975_s3 }
 0x3d8   : > { %p4745_p7 = scmp.lt.s32.totalorder %s4743_s26, %s4739_s7 }
 0x3d9   : > { %p4741_p2 = pnand %p4740_p1, %p4854_p5 }
 0x3da   : > { %p4746_p6 = por %p4745_p7, %p4744_p4 }
 0x3db   : > { %p4742_p3 = pneg %p4741_p2 }
 0x3dd   : > { %p4747_p8 = pnand %p4746_p6, %p4742_p3 }
 0x3df   : > { %4750 = shalt.err (!%p4747_p8)
}
 0x3e0   : > { %s4794_s29 = smov 256   ;;  %s4795_s30 = smov 16  }
 0x3e1   : > { %3726 = dma.vmem_to_hbm [thread:$0]  (%p4854_p5), %s5923_s6, 28672, %s5921_s10, %s5932_s16, %s4794_s29, %s4794_s29, %s4795_s30  }
 0x3e2 PF: > { %p3738_p9 = scmp.ge.s32.totalorder %s4789_s15, 2  ;;  %s3137_s4 = sand.u32 1, %s4777_s12  }
 0x3e3   : > { %p5984_p10 = scmp.ne.s32.totalorder %s5979_s23, 0  ;;  %s3138_s5 = scalar_lea.sflag [#allocation4], %s3137_s4 }
 0x3e5   : > { %p3733_p11 = pnand %p3738_p9, %p5984_p10 }
 0x3e7   : > { %p3734_p12 = pneg %p3733_p11 }
 0x3e9   : > { %4772 = dma.done.wait (%p3734_p12), %s3138_s5, 28672  }
 0x3ea   : > { %4774 = vsyncadd (%p3734_p12), %s3138_s5, 4294938624  ;;  %p14_p13 = scmp.ge.s32.totalorder %s4841_s18, 4   ;;  %s5985_s12 = smov %s4781_s13 }
 0x3eb   : > { %s5986_s13 = smov %s4785_s14  ;;  %s5987_s14 = smov %s4852_s21 }
 0x3ec   : > { %s5988_s15 = smov %s4841_s18  ;;  %16 = sbr.rel (!%p14_p13) target bundleno = 4 (0x4), region = 78 }
 0x3f1   :  { %3143 = vsyncpa [#allocation3], 1 }
 0x3f2   :  { %3145 = vsyncpa [#allocation3 + $0x1], 1 }
 0x3f3   :  { %3146 = vsyncpa [#allocation4], 1 }
 0x3f4   :  { %3148 = vsyncpa [#allocation4 + $0x1], 1 }

</bundles_post_ra>
